<compile_context>
chip_gen: v6e
topology: v6e:2x2x1
jax: 0.10.0
libtpu: 0.0.40
codegen_flags: <defaults>
</compile_context>

<pallas_src>
import jax
import jax.numpy as jnp
from jax.experimental import pallas as pl
from jax.experimental.pallas import tpu as pltpu

IN_OUT_DIM = 4
HIDDEN_DIM = 32
WIDTH = 32
BLOCKSIZE = WIDTH * IN_OUT_DIM                 # 128
OUT_DIM = 3 * BLOCKSIZE + WIDTH                # 416 (torch fc3 out_features)
OUT_PAD = 4 * BLOCKSIZE                        # 512 (lane-padded fc3 width)
PACK_DIM = 3 * BLOCKSIZE                       # 384 packed out: [W | gated U | B+pad]
MAX_TM = 512                                   # rows per grid step (tile of T)


def _hyper_kernel(t_ref, w1_ref, b1_ref, w2_ref, b2_ref, w3_ref, b3_ref, out_ref):
    # fc1: Linear(1, H). K=1 matmul would waste the MXU -> VPU broadcast multiply.
    t = t_ref[...]                                                 # (TM, 1)
    h1 = jnp.tanh(t * w1_ref[...] + b1_ref[...])                   # (TM, H)

    # fc2: Linear(H, H) on the MXU.
    h2 = jnp.tanh(
        jnp.dot(h1, w2_ref[...], preferred_element_type=jnp.float32)
        + b2_ref[...])                                             # (TM, H)

    # fc3: Linear(H, 512) (zero-padded from 416 so slices are lane-aligned).
    p = (jnp.dot(h2, w3_ref[...], preferred_element_type=jnp.float32)
         + b3_ref[...])                                            # (TM, 512)

    w = p[:, 0:BLOCKSIZE]
    u = p[:, BLOCKSIZE:2 * BLOCKSIZE]
    g = p[:, 2 * BLOCKSIZE:3 * BLOCKSIZE]
    tail = p[:, 3 * BLOCKSIZE:]                  # B in cols 0:32, zeros elsewhere

    # One lane-dense (TM, 384) slab; three unmasked, 128-lane-aligned stores.
    out_ref[:, 0:BLOCKSIZE] = w
    out_ref[:, BLOCKSIZE:2 * BLOCKSIZE] = u * jax.nn.sigmoid(g)
    out_ref[:, 2 * BLOCKSIZE:3 * BLOCKSIZE] = tail


def _round_up(x, m):
    return ((x + m - 1) // m) * m


@jax.jit
def hypernetwork_forward_batched(ts, w1t, b1, w2t, b2, w3t, b3):
    """Batched forward: ts is (T,) or (T,1) f32 times.

    Returns [W, B, U] with a leading T axis:
      W: (T, width, in_out_dim, 1), B: (T, width, 1, 1), U: (T, width, 1, in_out_dim)
    """
    ts = jnp.asarray(ts, jnp.float32).reshape(-1, 1)
    T = ts.shape[0]

    # Zero-pad fc3 from 416 -> 512 output features (semantics preserved: the
    # extra columns are zero and never read back).
    w3t_p = jnp.pad(w3t, ((0, 0), (0, OUT_PAD - OUT_DIM)))
    b3_p = jnp.pad(b3, ((0, 0), (0, OUT_PAD - OUT_DIM)))

    # T tiling: one big (up to 512-row) sublane-aligned tile per grid step.
    tm = min(MAX_TM, _round_up(T, 8))
    t_pad = _round_up(T, tm)
    ts_p = jnp.pad(ts, ((0, t_pad - T), (0, 0)))
    grid = (t_pad // tm,)

    const = lambda i: (0, 0)   # weights: same block every step -> stay VMEM-resident

    packed = pl.pallas_call(
        _hyper_kernel,
        out_shape=jax.ShapeDtypeStruct((t_pad, PACK_DIM), jnp.float32),
        grid=grid,
        in_specs=[
            pl.BlockSpec((tm, 1), lambda i: (i, 0)),               # ts
            pl.BlockSpec((1, HIDDEN_DIM), const),                  # w1^T
            pl.BlockSpec((1, HIDDEN_DIM), const),                  # b1
            pl.BlockSpec((HIDDEN_DIM, HIDDEN_DIM), const),         # w2^T
            pl.BlockSpec((1, HIDDEN_DIM), const),                  # b2
            pl.BlockSpec((HIDDEN_DIM, OUT_PAD), const),            # w3^T (padded)
            pl.BlockSpec((1, OUT_PAD), const),                     # b3   (padded)
        ],
        out_specs=pl.BlockSpec((tm, PACK_DIM), lambda i: (i, 0)),
        compiler_params=pltpu.CompilerParams(
            dimension_semantics=("parallel",)),
    )(ts_p, w1t, b1, w2t, b2, w3t_p, b3_p)

    packed = packed[:T]
    W = packed[:, :BLOCKSIZE].reshape(T, WIDTH, IN_OUT_DIM, 1)
    U = packed[:, BLOCKSIZE:2 * BLOCKSIZE].reshape(T, WIDTH, 1, IN_OUT_DIM)
    B = packed[:, 2 * BLOCKSIZE:2 * BLOCKSIZE + WIDTH].reshape(T, WIDTH, 1, 1)
    return [W, B, U]


@jax.jit
def hypernetwork_forward(t, w1t, b1, w2t, b2, w3t, b3):
    """Single-t forward, exact PyTorch module semantics (no leading batch axis)."""
    W, B, U = hypernetwork_forward_batched(
        jnp.reshape(jnp.asarray(t, jnp.float32), (1, 1)), w1t, b1, w2t, b2, w3t, b3)
    return [W[0], B[0], U[0]]


def _init_linear(key, fan_in, fan_out):
    """Deterministic nn.Linear-style init; weight stored transposed (fan_in, fan_out)."""
    kw, kb = jax.random.split(key)
    bound = 1.0 / jnp.sqrt(jnp.float32(fan_in))
    wt = jax.random.uniform(kw, (fan_in, fan_out), jnp.float32, -bound, bound)
    b = jax.random.uniform(kb, (1, fan_out), jnp.float32, -bound, bound)
    return wt, b


def _reference_single(t, w1t, b1, w2t, b2, w3t, b3):
    """Pure-JAX reference mirroring the PyTorch forward for one scalar t."""
    p = jnp.asarray(t, jnp.float32).reshape(1, 1)
    p = jnp.tanh(p @ w1t + b1)
    p = jnp.tanh(p @ w2t + b2)
    p = (p @ w3t + b3).reshape(-1)
    W = p[:BLOCKSIZE].reshape(WIDTH, IN_OUT_DIM, 1)
    U = p[BLOCKSIZE:2 * BLOCKSIZE].reshape(WIDTH, 1, IN_OUT_DIM)
    G = p[2 * BLOCKSIZE:3 * BLOCKSIZE].reshape(WIDTH, 1, IN_OUT_DIM)
    U = U * jax.nn.sigmoid(G)
    B = p[3 * BLOCKSIZE:].reshape(WIDTH, 1, 1)
    return [W, B, U]


if __name__ == "__main__":
    key = jax.random.PRNGKey(0)
    k1, k2, k3, kt = jax.random.split(key, 4)

    w1t, b1 = _init_linear(k1, 1, HIDDEN_DIM)
    w2t, b2 = _init_linear(k2, HIDDEN_DIM, HIDDEN_DIM)
    w3t, b3 = _init_linear(k3, HIDDEN_DIM, OUT_DIM)

    # ---- batched path: 640 ODE-step times -> two 512-row grid steps (one padded) ----
    T = 640
    ts = jax.random.uniform(kt, (T,), jnp.float32)
    Wb, Bb, Ub = hypernetwork_forward_batched(ts, w1t, b1, w2t, b2, w3t, b3)
    jax.block_until_ready((Wb, Bb, Ub))

    ref_batched = jax.vmap(_reference_single, in_axes=(0,) + (None,) * 6)
    Wr, Br, Ur = ref_batched(ts, w1t, b1, w2t, b2, w3t, b3)
    assert Wb.shape == (T, WIDTH, IN_OUT_DIM, 1)
    assert Bb.shape == (T, WIDTH, 1, 1)
    assert Ub.shape == (T, WIDTH, 1, IN_OUT_DIM)
    assert jnp.allclose(Wb, Wr, atol=1e-5, rtol=1e-4)
    assert jnp.allclose(Bb, Br, atol=1e-5, rtol=1e-4)
    assert jnp.allclose(Ub, Ur, atol=1e-5, rtol=1e-4)

    # ---- single-scalar path: exact PyTorch module semantics ----
    t = ts[0]
    W, B, U = hypernetwork_forward(t, w1t, b1, w2t, b2, w3t, b3)
    jax.block_until_ready((W, B, U))
    W_ref, B_ref, U_ref = _reference_single(t, w1t, b1, w2t, b2, w3t, b3)
    assert W.shape == (WIDTH, IN_OUT_DIM, 1)
    assert B.shape == (WIDTH, 1, 1)
    assert U.shape == (WIDTH, 1, IN_OUT_DIM)
    assert jnp.allclose(W, W_ref, atol=1e-5, rtol=1e-4)
    assert jnp.allclose(B, B_ref, atol=1e-5, rtol=1e-4)
    assert jnp.allclose(U, U_ref, atol=1e-5, rtol=1e-4)

    print("KERNEL_OK")
</pallas_src>

<mosaic_0001>
module attributes {stable_mosaic.version = 11 : i64} {
  func.func @_hyper_kernel(%arg0: i32, %arg1: memref<512x1xf32, #tpu.memory_space<vmem>>, %arg2: memref<1x32xf32, #tpu.memory_space<vmem>>, %arg3: memref<1x32xf32, #tpu.memory_space<vmem>>, %arg4: memref<32x32xf32, #tpu.memory_space<vmem>>, %arg5: memref<1x32xf32, #tpu.memory_space<vmem>>, %arg6: memref<32x512xf32, #tpu.memory_space<vmem>>, %arg7: memref<1x512xf32, #tpu.memory_space<vmem>>, %arg8: memref<512x384xf32, #tpu.memory_space<vmem>>) attributes {dimension_semantics = [#tpu.dimension_semantics<parallel>], iteration_bounds = array<i64: 2>, scalar_prefetch = 0 : i64, scratch_operands = 0 : i64, tpu.core_type = #tpu.core_type<tc>, window_params = [{transform_indices = @transform_0, window_bounds = array<i64: 512, 1>}, {pipeline_mode = #tpu.pipeline_mode<synchronous>, transform_indices = @transform_1, window_bounds = array<i64: 1, 32>}, {pipeline_mode = #tpu.pipeline_mode<synchronous>, transform_indices = @transform_2, window_bounds = array<i64: 1, 32>}, {pipeline_mode = #tpu.pipeline_mode<synchronous>, transform_indices = @transform_3, window_bounds = array<i64: 32, 32>}, {pipeline_mode = #tpu.pipeline_mode<synchronous>, transform_indices = @transform_4, window_bounds = array<i64: 1, 32>}, {pipeline_mode = #tpu.pipeline_mode<synchronous>, transform_indices = @transform_5, window_bounds = array<i64: 32, 512>}, {pipeline_mode = #tpu.pipeline_mode<synchronous>, transform_indices = @transform_6, window_bounds = array<i64: 1, 512>}, {transform_indices = @transform_7, window_bounds = array<i64: 512, 384>}]} {
    %c0 = arith.constant 0 : index
    %c0_0 = arith.constant 0 : index
    %0 = vector.load %arg1[%c0, %c0_0] : memref<512x1xf32, #tpu.memory_space<vmem>>, vector<512x1xf32>
    %c0_1 = arith.constant 0 : index
    %c0_2 = arith.constant 0 : index
    %1 = vector.load %arg2[%c0_1, %c0_2] : memref<1x32xf32, #tpu.memory_space<vmem>>, vector<1x32xf32>
    %2 = vector.broadcast %0 : vector<512x1xf32> to vector<512x32xf32>
    %3 = vector.broadcast %1 : vector<1x32xf32> to vector<512x32xf32>
    %4 = arith.mulf %2, %3 : vector<512x32xf32>
    %c0_3 = arith.constant 0 : index
    %c0_4 = arith.constant 0 : index
    %5 = vector.load %arg3[%c0_3, %c0_4] : memref<1x32xf32, #tpu.memory_space<vmem>>, vector<1x32xf32>
    %6 = vector.broadcast %5 : vector<1x32xf32> to vector<512x32xf32>
    %7 = arith.addf %4, %6 : vector<512x32xf32>
    %8 = math.tanh %7 : vector<512x32xf32>
    %c0_5 = arith.constant 0 : index
    %c0_6 = arith.constant 0 : index
    %9 = vector.load %arg4[%c0_5, %c0_6] : memref<32x32xf32, #tpu.memory_space<vmem>>, vector<32x32xf32>
    %cst = arith.constant dense<0.000000e+00> : vector<512x32xf32>
    %10 = tpu.matmul %8, %9, %cst {dimension_numbers = #tpu.dot_dimension_numbers<[1], [0], [0], [1], [0, 0, 1, 1], [], []>} : vector<512x32xf32>, vector<32x32xf32>, vector<512x32xf32> -> vector<512x32xf32>
    %c0_7 = arith.constant 0 : index
    %c0_8 = arith.constant 0 : index
    %11 = vector.load %arg5[%c0_7, %c0_8] : memref<1x32xf32, #tpu.memory_space<vmem>>, vector<1x32xf32>
    %12 = vector.broadcast %11 : vector<1x32xf32> to vector<512x32xf32>
    %13 = arith.addf %10, %12 : vector<512x32xf32>
    %14 = math.tanh %13 : vector<512x32xf32>
    %c0_9 = arith.constant 0 : index
    %c0_10 = arith.constant 0 : index
    %15 = vector.load %arg6[%c0_9, %c0_10] : memref<32x512xf32, #tpu.memory_space<vmem>>, vector<32x512xf32>
    %cst_11 = arith.constant dense<0.000000e+00> : vector<512x512xf32>
    %16 = tpu.matmul %14, %15, %cst_11 {dimension_numbers = #tpu.dot_dimension_numbers<[1], [0], [0], [1], [0, 0, 1, 1], [], []>} : vector<512x32xf32>, vector<32x512xf32>, vector<512x512xf32> -> vector<512x512xf32>
    %c0_12 = arith.constant 0 : index
    %c0_13 = arith.constant 0 : index
    %17 = vector.load %arg7[%c0_12, %c0_13] : memref<1x512xf32, #tpu.memory_space<vmem>>, vector<1x512xf32>
    %18 = vector.broadcast %17 : vector<1x512xf32> to vector<512x512xf32>
    %19 = arith.addf %16, %18 : vector<512x512xf32>
    %20 = vector.extract_strided_slice %19 {offsets = [0, 0], sizes = [512, 128], strides = [1, 1]} : vector<512x512xf32> to vector<512x128xf32>
    %21 = vector.extract_strided_slice %19 {offsets = [0, 128], sizes = [512, 128], strides = [1, 1]} : vector<512x512xf32> to vector<512x128xf32>
    %22 = vector.extract_strided_slice %19 {offsets = [0, 256], sizes = [512, 128], strides = [1, 1]} : vector<512x512xf32> to vector<512x128xf32>
    %23 = vector.extract_strided_slice %19 {offsets = [0, 384], sizes = [512, 128], strides = [1, 1]} : vector<512x512xf32> to vector<512x128xf32>
    %c0_14 = arith.constant 0 : index
    %c0_15 = arith.constant 0 : index
    %24 = vector.load %arg8[%c0_14, %c0_15] : memref<512x384xf32, #tpu.memory_space<vmem>>, vector<512x128xf32>
    tpu.vector_store %arg8[%c0_14, %c0_15], %20 {strides = array<i32>} : memref<512x384xf32, #tpu.memory_space<vmem>>, vector<512x128xf32>,
    %25 = arith.negf %22 : vector<512x128xf32>
    %26 = math.exp %25 : vector<512x128xf32>
    %cst_16 = arith.constant 1.000000e+00 : f32
    %27 = vector.broadcast %cst_16 : f32 to vector<512x128xf32>
    %28 = arith.addf %27, %26 : vector<512x128xf32>
    %29 = arith.divf %27, %28 : vector<512x128xf32>
    %30 = arith.mulf %21, %29 : vector<512x128xf32>
    %c0_17 = arith.constant 0 : index
    %c128 = arith.constant 128 : index
    %31 = vector.load %arg8[%c0_17, %c128] : memref<512x384xf32, #tpu.memory_space<vmem>>, vector<512x128xf32>
    tpu.vector_store %arg8[%c0_17, %c128], %30 {strides = array<i32>} : memref<512x384xf32, #tpu.memory_space<vmem>>, vector<512x128xf32>,
    %c0_18 = arith.constant 0 : index
    %c256 = arith.constant 256 : index
    %32 = vector.load %arg8[%c0_18, %c256] : memref<512x384xf32, #tpu.memory_space<vmem>>, vector<512x128xf32>
    tpu.vector_store %arg8[%c0_18, %c256], %23 {strides = array<i32>} : memref<512x384xf32, #tpu.memory_space<vmem>>, vector<512x128xf32>,
    return
  }
  func.func @transform_0(%arg0: i32) -> (i32, i32) {
    %c0_i32 = arith.constant 0 : i32
    %c0_i32_0 = arith.constant 0 : i32
    return %arg0, %c0_i32 : i32, i32
  }
  func.func @transform_1(%arg0: i32) -> (i32, i32) {
    %c0_i32 = arith.constant 0 : i32
    %c0_i32_0 = arith.constant 0 : i32
    %c0_i32_1 = arith.constant 0 : i32
    return %c0_i32, %c0_i32_0 : i32, i32
  }
  func.func @transform_2(%arg0: i32) -> (i32, i32) {
    %c0_i32 = arith.constant 0 : i32
    %c0_i32_0 = arith.constant 0 : i32
    %c0_i32_1 = arith.constant 0 : i32
    return %c0_i32, %c0_i32_0 : i32, i32
  }
  func.func @transform_3(%arg0: i32) -> (i32, i32) {
    %c0_i32 = arith.constant 0 : i32
    %c0_i32_0 = arith.constant 0 : i32
    %c0_i32_1 = arith.constant 0 : i32
    return %c0_i32, %c0_i32_0 : i32, i32
  }
  func.func @transform_4(%arg0: i32) -> (i32, i32) {
    %c0_i32 = arith.constant 0 : i32
    %c0_i32_0 = arith.constant 0 : i32
    %c0_i32_1 = arith.constant 0 : i32
    return %c0_i32, %c0_i32_0 : i32, i32
  }
  func.func @transform_5(%arg0: i32) -> (i32, i32) {
    %c0_i32 = arith.constant 0 : i32
    %c0_i32_0 = arith.constant 0 : i32
    %c0_i32_1 = arith.constant 0 : i32
    return %c0_i32, %c0_i32_0 : i32, i32
  }
  func.func @transform_6(%arg0: i32) -> (i32, i32) {
    %c0_i32 = arith.constant 0 : i32
    %c0_i32_0 = arith.constant 0 : i32
    %c0_i32_1 = arith.constant 0 : i32
    return %c0_i32, %c0_i32_0 : i32, i32
  }
  func.func @transform_7(%arg0: i32) -> (i32, i32) {
    %c0_i32 = arith.constant 0 : i32
    %c0_i32_0 = arith.constant 0 : i32
    return %arg0, %c0_i32 : i32, i32
  }
}

</mosaic_0001>

<bundles_post_ra>
// kernel: hypernetwork_forward_batched.1
= control target key start
LH: loop header
LB: loop body
LE: loop exit
PB: predicated region body
PF: predicated region fallthrough
CT: control target
= control target key end

     0   :  { %12 = vsyncpa [#allocation3], 0  ;;  %s6145_s0 = inlined_call_operand.vmem [shape: f32[1024,1], index: 0, kind: input, shape index: {}]   ;;  %s6146_s1 = inlined_call_operand.hbm [shape: f32[1,32], index: 1, kind: input, shape index: {}]   ;;  %s6147_s2 = inlined_call_operand.hbm [shape: f32[1,32], index: 2, kind: input, shape index: {}]   ;;  %s6148_s3 = inlined_call_operand.hbm [shape: f32[32,32], index: 3, kind: input, shape index: {}]   ;;  %s6149_s4 = inlined_call_operand.hbm [shape: f32[1,32], index: 4, kind: input, shape index: {}]   ;;  %s6150_s5 = inlined_call_operand.vmem [shape: f32[32,512], index: 5, kind: input, shape index: {}]   ;;  %s6151_s6 = inlined_call_operand.vmem [shape: f32[1,512], index: 6, kind: input, shape index: {}]   ;;  %s6152_s7 = inlined_call_operand.vmem [shape: f32[1024,384], index: 7, kind: output, shape index: {}]  }
   0x1   :  { %13 = vsyncpa [#allocation5], 0 }
   0x2   :  { %14 = vsyncpa [#allocation8], 0  ;;  %s4646_s24 = smov 0  }
   0x3 LB: > { %s4598_s25 = smov [#allocation4]   ;;  %s3447_s27 = sadd.s32 4294967295, %s4596_s24   ;;  %s4596_s24 = sphi %s4646_s24, %s20_s24  }
   0x4   : > { %s227_s26 = sshll.u32 %s4598_s25, 4  ;;  %p3449_p0 = scmp.ge.s32.totalorder %s4596_s24, 1  ;;  %s228_s26 = int_to_ptr.vmem [resolvable:$true] %s227_s26 }
   0x5   : > { %p203_p1 = scmp.lt.s32.totalorder %s4596_s24, 3  ;;  %p4656_p2 = scmp.eq.s32.totalorder %s3447_s27, 0 }
   0x6   : > { %s4599_s30 = smov [#allocation2]   ;;  %s4600_s9 = smov [#allocation6]  }
   0x7   : > { %p4660_p3 = pnand %p3449_p0, %p203_p1  ;;  %s216_s8 = sshll.u32 %s4599_s30, 4  ;;  %s4666_s8 = int_to_ptr.vmem [resolvable:$true] %s216_s8 }
   0x8   : > { %s237_s10 = sshll.u32 %s4600_s9, 4  ;;  %s4601_s12 = smov [#allocation7]   ;;  %s4674_s10 = int_to_ptr.vmem [resolvable:$true] %s237_s10 }
   0x9   : > { %p3922_p4 = pneg %p4660_p3  ;;  %s4676_s13 = sshll.u32 %s4601_s12, 4  ;;  %s252_s13 = int_to_ptr.vmem [resolvable:$true] %s4676_s13 }
   0xa   : > { %s4485_s14 = scalar_lea.vmem %s228_s26, 16  ;;  %s4492_s15 = scalar_lea.vmem %s228_s26, 32 }
   0xb   : > { %p4670_p5 = pnand %p4656_p2, %p3922_p4  ;;  %p4486_p7 = scmp.ne.s32.totalorder %s228_s26, %s4485_s14 }
   0xc   : > { %p4493_p10 = scmp.lt.s32.totalorder %s228_s26, %s228_s26  ;;  %p4494_p11 = scmp.lt.s32.totalorder %s4492_s15, %s4485_s14 }
   0xd   : > { %p4476_p6 = pneg %p4670_p5 }
   0xe   : > { %p4495_p12 = por %p4494_p11, %p4493_p10 }
   0xf   : > { %p4488_p8 = pnand %p4486_p7, %p4476_p6 }
  0x11   : > { %p4489_p9 = pneg %p4488_p8 }
  0x13   : > { %p4496_p13 = pnand %p4495_p12, %p4489_p9 }
  0x15   : > { %4499 = shalt.err (!%p4496_p13)
}
  0x16   : > { %3928 = dma.hbm_to_vmem [thread:$0]  (!%p4670_p5), %s6147_s2, 16, %s228_s26, [#allocation5]  }
  0x17   : > { %s4511_s18 = scalar_lea.vmem %s4666_s8, 16  ;;  %s4518_s19 = scalar_lea.vmem %s4666_s8, 32 }
  0x18   : > { %p4512_p0 = scmp.ne.s32.totalorder %s4666_s8, %s4511_s18  ;;  %p4519_p7 = scmp.lt.s32.totalorder %s4666_s8, %s4666_s8 }
  0x19   : > { %p4520_p8 = scmp.lt.s32.totalorder %s4518_s19, %s4511_s18 }
  0x1a   : > { %p4514_p1 = pnand %p4512_p0, %p4476_p6 }
  0x1b   : > { %p4521_p9 = por %p4520_p8, %p4519_p7 }
  0x1c   : > { %p4515_p4 = pneg %p4514_p1 }
  0x1e   : > { %p4522_p10 = pnand %p4521_p9, %p4515_p4 }
  0x20   : > { %4525 = shalt.err (!%p4522_p10)
}
  0x21   : > { %3925 = dma.hbm_to_vmem [thread:$0]  (!%p4670_p5), %s6146_s1, 16, %s4666_s8, [#allocation3]  }
  0x22   : > { %s4537_s22 = scalar_lea.vmem %s4674_s10, 512  ;;  %p4545_p0 = scmp.lt.s32.totalorder %s4674_s10, %s4674_s10 }
  0x23   : > { %p4538_p11 = scmp.ne.s32.totalorder %s4674_s10, %s4537_s22  ;;  %p4546_p1 = scmp.lt.s32.totalorder %s4537_s22, %s4537_s22 }
  0x25   : > { %p4540_p12 = pnand %p4538_p11, %p4476_p6  ;;  %p4547_p4 = por %p4546_p1, %p4545_p0 }
  0x27   : > { %p4541_p13 = pneg %p4540_p12 }
  0x29   : > { %p4548_p7 = pnand %p4547_p4, %p4541_p13 }
  0x2b   : > { %4551 = shalt.err (!%p4548_p7)
}
  0x2c   : > { %s4602_s23 = smov 128   ;;  %s4603_s25 = smov 8  }
  0x2d   : > { %3931 = dma.hbm_to_vmem [thread:$0]  (!%p4670_p5), %s6148_s3, 512, %s4674_s10, [#allocation5], %s4602_s23, %s4602_s23, %s4603_s25  }
  0x2e   : > { %s4563_s8 = scalar_lea.vmem %s252_s13, 16  ;;  %s4570_s9 = scalar_lea.vmem %s252_s13, 32 }
  0x2f   : > { %p4564_p8 = scmp.ne.s32.totalorder %s252_s13, %s4563_s8  ;;  %p4571_p11 = scmp.lt.s32.totalorder %s252_s13, %s252_s13 }
  0x30   : > { %p4572_p12 = scmp.lt.s32.totalorder %s4570_s9, %s4563_s8 }
  0x31   : > { %p4566_p9 = pnand %p4564_p8, %p4476_p6 }
  0x32   : > { %p4573_p13 = por %p4572_p12, %p4571_p11 }
  0x33   : > { %p4567_p10 = pneg %p4566_p9 }
  0x35   : > { %p4574_p0 = pnand %p4573_p13, %p4567_p10 }
  0x37   : > { %4577 = shalt.err (!%p4574_p0)
}
  0x38   : > { %3934 = dma.hbm_to_vmem [thread:$0]  (!%p4670_p5), %s6149_s4, 16, %s252_s13, [#allocation8]  }
  0x39   : > { %279 = sbr.rel (%p4660_p3) target bundleno = 915 (0x393), region = 48 }
  0x3e   : > { %4583 = dma.done.wait (%p4656_p2), [#allocation3], 16  }
  0x3f   : > { %4585 = vsyncadd (%p4656_p2), [#allocation3], 4294967280 }
  0x40   : > { %4587 = dma.done.wait (%p4656_p2), [#allocation5], 528  }
  0x41   : > { %4589 = vsyncadd (%p4656_p2), [#allocation5], 4294966768 }
  0x42   : > { %4591 = dma.done.wait (%p4656_p2), [#allocation8], 16  }
  0x43   : > { %4593 = vsyncadd (%p4656_p2), [#allocation8], 4294967280  ;;  %s3460_s29 = sshll.u32 %s3447_s27, 6  ;;  %v4604_v0 = vmov 0   ;;  %v930_v15 = vld [vmem:[#allocation6 + $0x18] sm:$0xff]  ;;  %v929_v16 = vld [vmem:[#allocation6 + $0x10] sm:$0xff] }
  0x44   : > { %3960 = vset.pattern.permute.xlu1 %v4604_v0  ;;  %3959 = vset.pattern.permute.xlu0 %v4604_v0  ;;  %p325_p3 = scmp.lt.s32.totalorder %s3460_s29, 127  ;;  %v928_v17 = vld [vmem:[#allocation6 + $0x8] sm:$0xff]  ;;  %v927_v20 = vld [vmem:[#allocation6] sm:$0xff]  ;;  %vm938_vm0 = vcmask 261120  }
  0x45   : > { %3793 = vmatprep.subr.mxu0 %v930_v15  ;;  %3897 = vmatprep.subr.mxu1 %v930_v15 }
  0x46   : > { %s6157_s29 = smov (!%p325_p3, %s3460_s29), 127  ;;  %3794 = vmatpush3.msra.mxu0 %v930_v15  ;;  %3901 = vmatpush3.msra.mxu1 %v930_v15 }
  0x47   : > { %s3461_s10 = sshll.u32 %s6157_s29, 3  ;;  %3795 = vmatprep.subr.mxu0 %v929_v16  ;;  %3898 = vmatprep.subr.mxu1 %v929_v16  ;;  %s3905_s8 = smul.u32 24, %s6157_s29 }
  0x48   : > { %s4746_s15 = scalar_lea.vmem %s6145_s0, %s3461_s10  ;;  %3796 = vmatpush3.msra.mxu0 %v929_v16  ;;  %3902 = vmatpush3.msra.mxu1 %v929_v16 }
  0x49   : > { %v339_v1 = vld [vmem:[%s4746_s15 + $0x10] sm:$0xff]  ;;  %v337_v2 = vld [vmem:[%s4746_s15] sm:$0xff]  ;;  %v340_v3 = vld [vmem:[%s4746_s15 + $0x18] sm:$0xff]  ;;  %3797 = vmatprep.subr.mxu0 %v928_v17  ;;  %3899 = vmatprep.subr.mxu1 %v928_v17  ;;  %s5413_s12 = scalar_lea.vmem %s6152_s7, %s3905_s8 }
  0x4a   : > { %414 = vperm.xlu1 %3960, %v339_v1   ;;  %404 = vperm.xlu0 %3959, %v337_v2   ;;  %v338_v4 = vld [vmem:[%s4746_s15 + $0x8] sm:$0xff]  ;;  %v341_v6 = vld [vmem:[%s4746_s15 + $0x20] sm:$0xff]  ;;  %v344_v7 = vld [vmem:[%s4746_s15 + $0x38] sm:$0xff] }
  0x4b   : > { %v342_v5 = vld [vmem:[%s4746_s15 + $0x28] sm:$0xff]  ;;  %v343_v8 = vld [vmem:[%s4746_s15 + $0x30] sm:$0xff]  ;;  %v345_v10 = vld [vmem:[%s4746_s15 + $0x40] sm:$0xff]  ;;  %3798 = vmatpush3.msra.mxu0 %v928_v17  ;;  %3903 = vmatpush3.msra.mxu1 %v928_v17 }
  0x4c   : > { %v346_v9 = vld [vmem:[%s4746_s15 + $0x48] sm:$0xff]  ;;  %v348_v11 = vld [vmem:[%s4746_s15 + $0x58] sm:$0xff]  ;;  %v347_v12 = vld [vmem:[%s4746_s15 + $0x50] sm:$0xff]  ;;  %3799 = vmatprep.subr.mxu0 %v927_v20  ;;  %3900 = vmatprep.subr.mxu1 %v927_v20 }
  0x4d   : > { %v350_v13 = vld [vmem:[%s4746_s15 + $0x68] sm:$0xff]  ;;  %v349_v14 = vld [vmem:[%s4746_s15 + $0x60] sm:$0xff]  ;;  %v352_v18 = vld [vmem:[%s4746_s15 + $0x78] sm:$0xff]  ;;  %3800 = vmatpush3.msra.mxu0 %v927_v20  ;;  %3904 = vmatpush3.msra.mxu1 %v927_v20 }
  0x4e   : > { %419 = vperm.xlu1 %3960, %v340_v3   ;;  %409 = vperm.xlu0 %3959, %v338_v4   ;;  %v351_v19 = vld [vmem:[%s4746_s15 + $0x70] sm:$0xff]  ;;  %v354_v21 = vld [vmem:[%s4746_s15 + $0x88] sm:$0xff]  ;;  %v353_v22 = vld [vmem:[%s4746_s15 + $0x80] sm:$0xff] }
  0x4f   : > { %v356_v23 = vld [vmem:[%s4746_s15 + $0x98] sm:$0xff]  ;;  %v355_v24 = vld [vmem:[%s4746_s15 + $0x90] sm:$0xff]  ;;  %v358_v25 = vld [vmem:[%s4746_s15 + $0xa8] sm:$0xff] }
  0x50   : > { %v357_v26 = vld [vmem:[%s4746_s15 + $0xa0] sm:$0xff]  ;;  %v360_v27 = vld [vmem:[%s4746_s15 + $0xb8] sm:$0xff]  ;;  %v359_v28 = vld [vmem:[%s4746_s15 + $0xb0] sm:$0xff] }
  0x51   : > { %v362_v29 = vld [vmem:[%s4746_s15 + $0xc8] sm:$0xff]  ;;  %v361_v30 = vld [vmem:[%s4746_s15 + $0xc0] sm:$0xff]  ;;  %v364_v31 = vld [vmem:[%s4746_s15 + $0xd8] sm:$0xff] }
  0x52   : > { %429 = vperm.xlu1 %3960, %v342_v5   ;;  %424 = vperm.xlu0 %3959, %v341_v6   ;;  %v363_v32 = vld [vmem:[%s4746_s15 + $0xd0] sm:$0xff]  ;;  %v366_v33 = vld [vmem:[%s4746_s15 + $0xe8] sm:$0xff]  ;;  %v365_v34 = vld [vmem:[%s4746_s15 + $0xe0] sm:$0xff] }
  0x53   : > { %v368_v35 = vld [vmem:[%s4746_s15 + $0xf8] sm:$0xff]  ;;  %v367_v36 = vld [vmem:[%s4746_s15 + $0xf0] sm:$0xff]  ;;  %v370_v37 = vld [vmem:[%s4746_s15 + $0x108] sm:$0xff] }
  0x54   : > { %v369_v38 = vld [vmem:[%s4746_s15 + $0x100] sm:$0xff]  ;;  %v372_v39 = vld [vmem:[%s4746_s15 + $0x118] sm:$0xff]  ;;  %v371_v40 = vld [vmem:[%s4746_s15 + $0x110] sm:$0xff] }
  0x55   : > { %v374_v41 = vld [vmem:[%s4746_s15 + $0x128] sm:$0xff]  ;;  %v373_v42 = vld [vmem:[%s4746_s15 + $0x120] sm:$0xff]  ;;  %v376_v43 = vld [vmem:[%s4746_s15 + $0x138] sm:$0xff] }
  0x56   : > { %439 = vperm.xlu1 %3960, %v344_v7   ;;  %434 = vperm.xlu0 %3959, %v343_v8   ;;  %v375_v44 = vld [vmem:[%s4746_s15 + $0x130] sm:$0xff]  ;;  %v378_v45 = vld [vmem:[%s4746_s15 + $0x148] sm:$0xff]  ;;  %v377_v46 = vld [vmem:[%s4746_s15 + $0x140] sm:$0xff] }
  0x57   : > { %v380_v47 = vld [vmem:[%s4746_s15 + $0x158] sm:$0xff]  ;;  %v379_v48 = vld [vmem:[%s4746_s15 + $0x150] sm:$0xff]  ;;  %v382_v49 = vld [vmem:[%s4746_s15 + $0x168] sm:$0xff] }
  0x58   : > { %v381_v50 = vld [vmem:[%s4746_s15 + $0x160] sm:$0xff]  ;;  %v384_v51 = vld [vmem:[%s4746_s15 + $0x178] sm:$0xff]  ;;  %v383_v52 = vld [vmem:[%s4746_s15 + $0x170] sm:$0xff] }
  0x59   : > { %v386_v53 = vld [vmem:[%s4746_s15 + $0x188] sm:$0xff]  ;;  %v385_v54 = vld [vmem:[%s4746_s15 + $0x180] sm:$0xff]  ;;  %v388_v55 = vld [vmem:[%s4746_s15 + $0x198] sm:$0xff] }
  0x5a   : > { %449 = vperm.xlu1 %3960, %v346_v9   ;;  %444 = vperm.xlu0 %3959, %v345_v10   ;;  %v387_v56 = vld [vmem:[%s4746_s15 + $0x190] sm:$0xff]  ;;  %v390_v57 = vld [vmem:[%s4746_s15 + $0x1a8] sm:$0xff]  ;;  %v389_v58 = vld [vmem:[%s4746_s15 + $0x1a0] sm:$0xff] }
  0x5b   : > { %v392_v59 = vld [vmem:[%s4746_s15 + $0x1b8] sm:$0xff]  ;;  %v391_v60 = vld [vmem:[%s4746_s15 + $0x1b0] sm:$0xff]  ;;  %v394_v61 = vld [vmem:[%s4746_s15 + $0x1c8] sm:$0xff] }
  0x5c   : > { %v393_v62 = vld [vmem:[%s4746_s15 + $0x1c0] sm:$0xff]  ;;  %v396_v63 = vld [vmem:[%s4746_s15 + $0x1d8] sm:$0xff]  ;;  %v395_v0 = vld [vmem:[%s4746_s15 + $0x1d0] sm:$0xff] }
  0x5d   : > { %v398_v1 = vld [vmem:[%s4746_s15 + $0x1e8] sm:$0xff]  ;;  %v397_v2 = vld [vmem:[%s4746_s15 + $0x1e0] sm:$0xff]  ;;  %v400_v4 = vld [vmem:[%s4746_s15 + $0x1f8] sm:$0xff] }
  0x5e   : > { %459 = vperm.xlu1 %3960, %v348_v11   ;;  %454 = vperm.xlu0 %3959, %v347_v12   ;;  %v4810_v3 = vld [vmem:[#allocation2] ss:$0 sm:$0xff]  ;;  %v399_v5 = vld [vmem:[%s4746_s15 + $0x1f0] sm:$0xff]  ;;  %v4814_v6 = vld [vmem:[#allocation4] ss:$0 sm:$0xff] }
  0x62   : > { %469 = vperm.xlu1 %3960, %v350_v13   ;;  %464 = vperm.xlu0 %3959, %v349_v14  }
  0x66   : > { %479 = vperm.xlu1 %3960, %v352_v18   ;;  %474 = vperm.xlu0 %3959, %v351_v19  }
  0x6a   : > { %489 = vperm.xlu1 %3960, %v354_v21   ;;  %484 = vperm.xlu0 %3959, %v353_v22  }
  0x6e   : > { %499 = vperm.xlu1 %3960, %v356_v23   ;;  %494 = vperm.xlu0 %3959, %v355_v24  }
  0x72   : > { %509 = vperm.xlu1 %3960, %v358_v25   ;;  %504 = vperm.xlu0 %3959, %v357_v26  }
  0x76   : > { %519 = vperm.xlu1 %3960, %v360_v27   ;;  %514 = vperm.xlu0 %3959, %v359_v28  }
  0x7a   : > { %529 = vperm.xlu1 %3960, %v362_v29   ;;  %524 = vperm.xlu0 %3959, %v361_v30  }
  0x7e   : > { %539 = vperm.xlu1 %3960, %v364_v31   ;;  %534 = vperm.xlu0 %3959, %v363_v32  }
  0x82   : > { %549 = vperm.xlu1 %3960, %v366_v33   ;;  %544 = vperm.xlu0 %3959, %v365_v34  }
  0x86   : > { %559 = vperm.xlu1 %3960, %v368_v35   ;;  %554 = vperm.xlu0 %3959, %v367_v36   ;;  %v1595_v35 = vld [vmem:[%s6150_s5 + $0x78] sm:$0xff]  ;;  %v1593_v36 = vld [vmem:[%s6150_s5 + $0x68] sm:$0xff] }
  0x87   : > { %2283 = vmatprep.subr.mxu0 %v1595_v35  ;;  %1834 = vmatprep.subr.mxu1 %v1593_v36 }
  0x8a   : > { %569 = vperm.xlu1 %3960, %v370_v37   ;;  %564 = vperm.xlu0 %3959, %v369_v38  }
  0x8e   : > { %579 = vperm.xlu1 %3960, %v372_v39   ;;  %574 = vperm.xlu0 %3959, %v371_v40  }
  0x92   : > { %589 = vperm.xlu1 %3960, %v374_v41   ;;  %584 = vperm.xlu0 %3959, %v373_v42  }
  0x96   : > { %599 = vperm.xlu1 %3960, %v376_v43   ;;  %594 = vperm.xlu0 %3959, %v375_v44  }
  0x9a   : > { %609 = vperm.xlu1 %3960, %v378_v45   ;;  %604 = vperm.xlu0 %3959, %v377_v46   ;;  %v1594_v45 = vld [vmem:[%s6150_s5 + $0x70] sm:$0xff] }
  0x9e   : > { %619 = vperm.xlu1 %3960, %v380_v47   ;;  %614 = vperm.xlu0 %3959, %v379_v48   ;;  %v1591_v48 = vld [vmem:[%s6150_s5 + $0x58] sm:$0xff] }
  0xa2   : > { %629 = vperm.xlu1 %3960, %v382_v49   ;;  %624 = vperm.xlu0 %3959, %v381_v50  }
  0xa6   : > { %639 = vperm.xlu1 %3960, %v384_v51   ;;  %634 = vperm.xlu0 %3959, %v383_v52   ;;  %v1590_v51 = vld [vmem:[%s6150_s5 + $0x50] sm:$0xff] }
  0xaa   : > { %649 = vperm.xlu1 %3960, %v386_v53   ;;  %644 = vperm.xlu0 %3959, %v385_v54  }
  0xae   : > { %659 = vperm.xlu1 %3960, %v388_v55   ;;  %654 = vperm.xlu0 %3959, %v387_v56   ;;  %v1587_v56 = vld [vmem:[%s6150_s5 + $0x38] sm:$0xff] }
  0xb2   : > { %669 = vperm.xlu1 %3960, %v390_v57   ;;  %664 = vperm.xlu0 %3959, %v389_v58   ;;  %v1586_v57 = vld [vmem:[%s6150_s5 + $0x30] sm:$0xff] }
  0xb6   : > { %679 = vperm.xlu1 %3960, %v392_v59   ;;  %674 = vperm.xlu0 %3959, %v391_v60  }
  0xba   : > { %689 = vperm.xlu1 %3960, %v394_v61   ;;  %684 = vperm.xlu0 %3959, %v393_v62  }
  0xbe   : > { %699 = vperm.xlu1 %3960, %v396_v63   ;;  %694 = vperm.xlu0 %3959, %v395_v0  }
  0xc2   : > { %709 = vperm.xlu1 %3960, %v398_v1   ;;  %704 = vperm.xlu0 %3959, %v397_v2  }
  0xc5   : > { %v415_v7 = vpop.permute.xlu1 %414  ;;  %v405_v8 = vpop.permute.xlu0 %404 }
  0xc6   : > { %v730_v9 = vmul.f32 %v4810_v3, %v415_v7  ;;  %v728_v10 = vmul.f32 %v4810_v3, %v405_v8  ;;  %719 = vperm.xlu1 %3960, %v400_v4   ;;  %714 = vperm.xlu0 %3959, %v399_v5  }
  0xc8   : > { %v799_v11 = vadd.f32 %v4814_v6, %v728_v10  ;;  %v801_v14 = vadd.f32 %v4814_v6, %v730_v9 }
  0xc9   : > { %v420_v12 = vpop.permute.xlu1 %419  ;;  %v410_v13 = vpop.permute.xlu0 %409 }
  0xca   : > { %v731_v15 = vmul.f32 %v4810_v3, %v420_v12  ;;  %v729_v16 = vmul.f32 %v4810_v3, %v410_v13  ;;  %3961 = vtanh.f32 %v799_v11 }
  0xcb   : > { %3963 = vtanh.f32 %v801_v14 }
  0xcc   : > { %v800_v17 = vadd.f32 %v4814_v6, %v729_v16  ;;  %v802_v18 = vadd.f32 %v4814_v6, %v731_v15 }
  0xcd   : > { %v430_v19 = vpop.permute.xlu1 %429  ;;  %v425_v20 = vpop.permute.xlu0 %424 }
  0xce   : > { %v733_v21 = vmul.f32 %v4810_v3, %v430_v19  ;;  %v732_v22 = vmul.f32 %v4810_v3, %v425_v20  ;;  %3965 = vtanh.f32 %v800_v17 }
  0xcf   : > { %3967 = vtanh.f32 %v802_v18 }
  0xd0   : > { %v803_v23 = vadd.f32 %v4814_v6, %v732_v22  ;;  %v804_v26 = vadd.f32 %v4814_v6, %v733_v21 }
  0xd1   : > { %v440_v24 = vpop.permute.xlu1 %439  ;;  %v435_v25 = vpop.permute.xlu0 %434 }
  0xd2   : > { %v735_v27 = vmul.f32 %v4810_v3, %v440_v24  ;;  %v734_v28 = vmul.f32 %v4810_v3, %v435_v25  ;;  %3969 = vtanh.f32 %v803_v23 }
  0xd3   : > { %3971 = vtanh.f32 %v804_v26 }
  0xd4   : > { %v805_v29 = vadd.f32 %v4814_v6, %v734_v28  ;;  %v806_v32 = vadd.f32 %v4814_v6, %v735_v27 }
  0xd5   : > { %v450_v30 = vpop.permute.xlu1 %449  ;;  %v445_v31 = vpop.permute.xlu0 %444 }
  0xd6   : > { %v737_v33 = vmul.f32 %v4810_v3, %v450_v30  ;;  %v736_v34 = vmul.f32 %v4810_v3, %v445_v31  ;;  %3973 = vtanh.f32 %v805_v29 }
  0xd7   : > { %v3962_v37 = vpop.eup %3961  ;;  %3975 = vtanh.f32 %v806_v32 }
  0xd8   : > { %v807_v38 = vadd.f32 %v4814_v6, %v736_v34  ;;  %3801 = vmatprep.mubr.msk.f32.mxu0 %vm938_vm0, %v3962_v37  ;;  %v808_v41 = vadd.f32 %v4814_v6, %v737_v33  ;;  %v3964_v44 = vpop.eup %3963 }
  0xd9   : > { %v460_v39 = vpop.permute.xlu1 %459  ;;  %v455_v40 = vpop.permute.xlu0 %454 }
  0xda   : > { %v739_v42 = vmul.f32 %v4810_v3, %v460_v39  ;;  %v738_v43 = vmul.f32 %v4810_v3, %v455_v40  ;;  %3977 = vtanh.f32 %v807_v38 }
  0xdb   : > { %v3966_v46 = vpop.eup %3965  ;;  %3979 = vtanh.f32 %v808_v41 }
  0xdc   : > { %v809_v47 = vadd.f32 %v4814_v6, %v738_v43  ;;  %3802 = vmatmul.mubr.msk.f32.vlgmr.msra.gmra.mxu0 %vm938_vm0, %v3966_v46  ;;  %v3968_v52 = vpop.eup %3967  ;;  %v810_v53 = vadd.f32 %v4814_v6, %v739_v42 }
  0xdd   : > { %v470_v49 = vpop.permute.xlu1 %469  ;;  %v465_v50 = vpop.permute.xlu0 %464  ;;  %3804 = vmatprep.mubr.msk.f32.mxu0 %vm938_vm0, %v3964_v44  ;;  %2284 = vmatpush1.msra.mxu0 %v1594_v45 }
  0xde   : > { %v741_v54 = vmul.f32 %v4810_v3, %v470_v49  ;;  %v740_v55 = vmul.f32 %v4810_v3, %v465_v50  ;;  %3981 = vtanh.f32 %v809_v47  ;;  %2285 = vmatprep.subr.mxu0 %v1591_v48 }
  0xdf   : > { %v3970_v58 = vpop.eup %3969  ;;  %2286 = vmatpush1.msra.mxu0 %v1590_v51  ;;  %3983 = vtanh.f32 %v810_v53 }
  0xe0   : > { %v811_v59 = vadd.f32 %v4814_v6, %v740_v55  ;;  %3805 = vmatmul.mubr.msk.f32.gmra.mxu0 %vm938_vm0, %v3968_v52  ;;  %2287 = vmatprep.subr.mxu0 %v1587_v56  ;;  %v812_v62 = vadd.f32 %v4814_v6, %v741_v54  ;;  %v3972_v1 = vpop.eup %3971 }
  0xe1   : > { %v480_v60 = vpop.permute.xlu1 %479  ;;  %v475_v61 = vpop.permute.xlu0 %474  ;;  %3807 = vmatprep.mubr.msk.f32.mxu0 %vm938_vm0, %v3970_v58  ;;  %2288 = vmatpush1.msra.mxu0 %v1586_v57 }
  0xe2   : > { %v743_v63 = vmul.f32 %v4810_v3, %v480_v60  ;;  %v742_v0 = vmul.f32 %v4810_v3, %v475_v61  ;;  %3985 = vtanh.f32 %v811_v59 }
  0xe3   : > { %v3974_v2 = vpop.eup %3973  ;;  %3987 = vtanh.f32 %v812_v62 }
  0xe4   : > { %v813_v4 = vadd.f32 %v4814_v6, %v742_v0  ;;  %3808 = vmatmul.mubr.msk.f32.gmra.mxu0 %vm938_vm0, %v3972_v1  ;;  %v814_v8 = vadd.f32 %v4814_v6, %v743_v63  ;;  %v3976_v11 = vpop.eup %3975 }
  0xe5   : > { %v490_v5 = vpop.permute.xlu1 %489  ;;  %v485_v7 = vpop.permute.xlu0 %484  ;;  %3810 = vmatprep.mubr.msk.f32.mxu0 %vm938_vm0, %v3974_v2 }
  0xe6   : > { %v745_v9 = vmul.f32 %v4810_v3, %v490_v5  ;;  %v744_v10 = vmul.f32 %v4810_v3, %v485_v7  ;;  %3989 = vtanh.f32 %v813_v4 }
  0xe7   : > { %v3978_v12 = vpop.eup %3977  ;;  %3991 = vtanh.f32 %v814_v8 }
  0xe8   : > { %v815_v13 = vadd.f32 %v4814_v6, %v744_v10  ;;  %3811 = vmatmul.mubr.msk.f32.gmra.mxu0 %vm938_vm0, %v3976_v11  ;;  %v816_v16 = vadd.f32 %v4814_v6, %v745_v9  ;;  %v3980_v19 = vpop.eup %3979 }
  0xe9   : > { %v500_v14 = vpop.permute.xlu1 %499  ;;  %v495_v15 = vpop.permute.xlu0 %494  ;;  %3813 = vmatprep.mubr.msk.f32.mxu0 %vm938_vm0, %v3978_v12 }
  0xea   : > { %v747_v17 = vmul.f32 %v4810_v3, %v500_v14  ;;  %v746_v18 = vmul.f32 %v4810_v3, %v495_v15  ;;  %3993 = vtanh.f32 %v815_v13 }
  0xeb   : > { %v3982_v20 = vpop.eup %3981  ;;  %3995 = vtanh.f32 %v816_v16 }
  0xec   : > { %v817_v21 = vadd.f32 %v4814_v6, %v746_v18  ;;  %3814 = vmatmul.mubr.msk.f32.gmra.mxu0 %vm938_vm0, %v3980_v19  ;;  %v818_v24 = vadd.f32 %v4814_v6, %v747_v17  ;;  %v3984_v27 = vpop.eup %3983 }
  0xed   : > { %v510_v22 = vpop.permute.xlu1 %509  ;;  %v505_v23 = vpop.permute.xlu0 %504  ;;  %3816 = vmatprep.mubr.msk.f32.mxu0 %vm938_vm0, %v3982_v20 }
  0xee   : > { %v749_v25 = vmul.f32 %v4810_v3, %v510_v22  ;;  %v748_v26 = vmul.f32 %v4810_v3, %v505_v23  ;;  %3997 = vtanh.f32 %v817_v21 }
  0xef   : > { %v3986_v28 = vpop.eup %3985  ;;  %3999 = vtanh.f32 %v818_v24 }
  0xf0   : > { %v819_v29 = vadd.f32 %v4814_v6, %v748_v26  ;;  %3817 = vmatmul.mubr.msk.f32.gmra.mxu0 %vm938_vm0, %v3984_v27  ;;  %v820_v32 = vadd.f32 %v4814_v6, %v749_v25  ;;  %v3988_v35 = vpop.eup %3987 }
  0xf1   : > { %v520_v30 = vpop.permute.xlu1 %519  ;;  %v515_v31 = vpop.permute.xlu0 %514  ;;  %3819 = vmatprep.mubr.msk.f32.mxu0 %vm938_vm0, %v3986_v28 }
  0xf2   : > { %v751_v33 = vmul.f32 %v4810_v3, %v520_v30  ;;  %v750_v34 = vmul.f32 %v4810_v3, %v515_v31  ;;  %4001 = vtanh.f32 %v819_v29 }
  0xf3   : > { %v3990_v36 = vpop.eup %3989  ;;  %4003 = vtanh.f32 %v820_v32 }
  0xf4   : > { %v821_v37 = vadd.f32 %v4814_v6, %v750_v34  ;;  %3820 = vmatmul.mubr.msk.f32.gmra.mxu0 %vm938_vm0, %v3988_v35  ;;  %v822_v40 = vadd.f32 %v4814_v6, %v751_v33  ;;  %v3992_v43 = vpop.eup %3991 }
  0xf5   : > { %v530_v38 = vpop.permute.xlu1 %529  ;;  %v525_v39 = vpop.permute.xlu0 %524  ;;  %3822 = vmatprep.mubr.msk.f32.mxu0 %vm938_vm0, %v3990_v36 }
  0xf6   : > { %v753_v41 = vmul.f32 %v4810_v3, %v530_v38  ;;  %v752_v42 = vmul.f32 %v4810_v3, %v525_v39  ;;  %4005 = vtanh.f32 %v821_v37 }
  0xf7   : > { %v3994_v44 = vpop.eup %3993  ;;  %4007 = vtanh.f32 %v822_v40 }
  0xf8   : > { %v823_v45 = vadd.f32 %v4814_v6, %v752_v42  ;;  %3823 = vmatmul.mubr.msk.f32.gmra.mxu0 %vm938_vm0, %v3992_v43  ;;  %v824_v48 = vadd.f32 %v4814_v6, %v753_v41  ;;  %v3996_v51 = vpop.eup %3995 }
  0xf9   : > { %v540_v46 = vpop.permute.xlu1 %539  ;;  %v535_v47 = vpop.permute.xlu0 %534  ;;  %3825 = vmatprep.mubr.msk.f32.mxu0 %vm938_vm0, %v3994_v44 }
  0xfa   : > { %v755_v49 = vmul.f32 %v4810_v3, %v540_v46  ;;  %v754_v50 = vmul.f32 %v4810_v3, %v535_v47  ;;  %4009 = vtanh.f32 %v823_v45 }
  0xfb   : > { %v3998_v52 = vpop.eup %3997  ;;  %4011 = vtanh.f32 %v824_v48 }
  0xfc   : > { %v825_v53 = vadd.f32 %v4814_v6, %v754_v50  ;;  %3826 = vmatmul.mubr.msk.f32.gmra.mxu0 %vm938_vm0, %v3996_v51  ;;  %v826_v56 = vadd.f32 %v4814_v6, %v755_v49  ;;  %v4000_v59 = vpop.eup %3999  ;;  %v1592_v50 = vld [vmem:[%s6150_s5 + $0x60] sm:$0xff] }
  0xfd   : > { %v550_v54 = vpop.permute.xlu1 %549  ;;  %v545_v55 = vpop.permute.xlu0 %544  ;;  %3828 = vmatprep.mubr.msk.f32.mxu0 %vm938_vm0, %v3998_v52 }
  0xfe   : > { %v757_v57 = vmul.f32 %v4810_v3, %v550_v54  ;;  %v756_v58 = vmul.f32 %v4810_v3, %v545_v55  ;;  %4013 = vtanh.f32 %v825_v53 }
  0xff   : > { %v4002_v60 = vpop.eup %4001  ;;  %4015 = vtanh.f32 %v826_v56 }
 0x100   : > { %v827_v61 = vadd.f32 %v4814_v6, %v756_v58  ;;  %3829 = vmatmul.mubr.msk.f32.gmra.mxu0 %vm938_vm0, %v4000_v59  ;;  %v828_v0 = vadd.f32 %v4814_v6, %v757_v57  ;;  %v4004_v4 = vpop.eup %4003 }
 0x101   : > { %v560_v62 = vpop.permute.xlu1 %559  ;;  %v555_v63 = vpop.permute.xlu0 %554  ;;  %3831 = vmatprep.mubr.msk.f32.mxu0 %vm938_vm0, %v4002_v60 }
 0x102   : > { %v759_v1 = vmul.f32 %v4810_v3, %v560_v62  ;;  %v758_v2 = vmul.f32 %v4810_v3, %v555_v63  ;;  %4017 = vtanh.f32 %v827_v61 }
 0x103   : > { %v4006_v5 = vpop.eup %4005  ;;  %4019 = vtanh.f32 %v828_v0 }
 0x104   : > { %v829_v7 = vadd.f32 %v4814_v6, %v758_v2  ;;  %v830_v8 = vadd.f32 %v4814_v6, %v759_v1  ;;  %3832 = vmatmul.mubr.msk.f32.gmra.mxu0 %vm938_vm0, %v4004_v4  ;;  %v4008_v13 = vpop.eup %4007  ;;  %v1589_v4 = vld [vmem:[%s6150_s5 + $0x48] sm:$0xff] }
 0x105   : > { %v570_v9 = vpop.permute.xlu1 %569  ;;  %v565_v10 = vpop.permute.xlu0 %564  ;;  %3834 = vmatprep.mubr.msk.f32.mxu0 %vm938_vm0, %v4006_v5  ;;  %v1588_v5 = vld [vmem:[%s6150_s5 + $0x40] sm:$0xff] }
 0x106   : > { %v761_v11 = vmul.f32 %v4810_v3, %v570_v9  ;;  %v760_v12 = vmul.f32 %v4810_v3, %v565_v10  ;;  %4021 = vtanh.f32 %v829_v7 }
 0x107   : > { %v4010_v14 = vpop.eup %4009  ;;  %4023 = vtanh.f32 %v830_v8 }
 0x108   : > { %v832_v15 = vadd.f32 %v4814_v6, %v761_v11  ;;  %v831_v16 = vadd.f32 %v4814_v6, %v760_v12  ;;  %3835 = vmatmul.mubr.msk.f32.gmra.mxu0 %vm938_vm0, %v4008_v13  ;;  %v4012_v21 = vpop.eup %4011  ;;  %v1583_v11 = vld [vmem:[%s6150_s5 + $0x18] sm:$0xff]  ;;  %v1582_v12 = vld [vmem:[%s6150_s5 + $0x10] sm:$0xff] }
 0x109   : > { %v580_v17 = vpop.permute.xlu1 %579  ;;  %v575_v18 = vpop.permute.xlu0 %574  ;;  %3837 = vmatprep.mubr.msk.f32.mxu0 %vm938_vm0, %v4010_v14  ;;  %2289 = vmatprep.subr.mxu0 %v1583_v11 }
 0x10a   : > { %4025 = vtanh.f32 %v832_v15  ;;  %v763_v19 = vmul.f32 %v4810_v3, %v580_v17  ;;  %v762_v20 = vmul.f32 %v4810_v3, %v575_v18  ;;  %2290 = vmatpush1.msra.mxu0 %v1582_v12 }
 0x10b   : > { %4027 = vtanh.f32 %v831_v16  ;;  %v4014_v22 = vpop.eup %4013 }
 0x10c   : > { %v834_v23 = vadd.f32 %v4814_v6, %v763_v19  ;;  %v833_v24 = vadd.f32 %v4814_v6, %v762_v20  ;;  %3838 = vmatmul.mubr.msk.f32.gmra.mxu0 %vm938_vm0, %v4012_v21  ;;  %v4016_v29 = vpop.eup %4015 }
 0x10d   : > { %v590_v25 = vpop.permute.xlu1 %589  ;;  %v585_v26 = vpop.permute.xlu0 %584  ;;  %3840 = vmatprep.mubr.msk.f32.mxu0 %vm938_vm0, %v4014_v22 }
 0x10e   : > { %4029 = vtanh.f32 %v834_v23  ;;  %v765_v27 = vmul.f32 %v4810_v3, %v590_v25  ;;  %v764_v28 = vmul.f32 %v4810_v3, %v585_v26 }
 0x10f   : > { %4031 = vtanh.f32 %v833_v24  ;;  %v4018_v30 = vpop.eup %4017 }
 0x110   : > { %v836_v31 = vadd.f32 %v4814_v6, %v765_v27  ;;  %v835_v32 = vadd.f32 %v4814_v6, %v764_v28  ;;  %3841 = vmatmul.mubr.msk.f32.gmra.mxu0 %vm938_vm0, %v4016_v29  ;;  %v4020_v37 = vpop.eup %4019 }
 0x111   : > { %v600_v33 = vpop.permute.xlu1 %599  ;;  %v595_v34 = vpop.permute.xlu0 %594  ;;  %3843 = vmatprep.mubr.msk.f32.mxu0 %vm938_vm0, %v4018_v30  ;;  %v1585_v30 = vld [vmem:[%s6150_s5 + $0x28] sm:$0xff] }
 0x112   : > { %4033 = vtanh.f32 %v836_v31  ;;  %v767_v35 = vmul.f32 %v4810_v3, %v600_v33  ;;  %v766_v36 = vmul.f32 %v4810_v3, %v595_v34  ;;  %v1584_v34 = vld [vmem:[%s6150_s5 + $0x20] sm:$0xff] }
 0x113   : > { %4035 = vtanh.f32 %v835_v32  ;;  %v4022_v38 = vpop.eup %4021 }
 0x114   : > { %v838_v39 = vadd.f32 %v4814_v6, %v767_v35  ;;  %v837_v40 = vadd.f32 %v4814_v6, %v766_v36  ;;  %3844 = vmatmul.mubr.msk.f32.gmra.mxu0 %vm938_vm0, %v4020_v37  ;;  %v4024_v43 = vpop.eup %4023  ;;  %v1581_v37 = vld [vmem:[%s6150_s5 + $0x8] sm:$0xff] }
 0x115   : > { %v610_v41 = vpop.permute.xlu1 %609  ;;  %v605_v42 = vpop.permute.xlu0 %604  ;;  %3846 = vmatprep.mubr.msk.f32.mxu0 %vm938_vm0, %v4022_v38 }
 0x116   : > { %4037 = vtanh.f32 %v838_v39  ;;  %v769_v44 = vmul.f32 %v4810_v3, %v610_v41  ;;  %v768_v45 = vmul.f32 %v4810_v3, %v605_v42  ;;  %v4605_v42 = vmov 0.0  }
 0x117   : > { %v4026_v46 = vpop.eup %4025  ;;  %4039 = vtanh.f32 %v837_v40  ;;  %v1580_v40 = vld [vmem:[%s6150_s5] sm:$0xff] }
 0x118   : > { %v4028_v47 = vpop.eup %4027  ;;  %v840_v48 = vadd.f32 %v4814_v6, %v769_v44  ;;  %v839_v49 = vadd.f32 %v4814_v6, %v768_v45  ;;  %3847 = vmatmul.mubr.msk.f32.gmra.mxu0 %vm938_vm0, %v4024_v43 }
 0x119   : > { %3849 = vmatprep.mubr.msk.f32.mxu1 %vm938_vm0, %v4028_v47  ;;  %v620_v51 = vpop.permute.xlu1 %619  ;;  %v615_v52 = vpop.permute.xlu0 %614  ;;  %2323 = vmatprep.mubr.f32.mxu0 %v4605_v42 }
 0x11a   : > { %4041 = vtanh.f32 %v840_v48  ;;  %v771_v53 = vmul.f32 %v4810_v3, %v620_v51  ;;  %3850 = vmatmul.mubr.msk.f32.vlgmr.msra.gmra.mxu1 %vm938_vm0, %v4026_v46  ;;  %v770_v54 = vmul.f32 %v4810_v3, %v615_v52 }
 0x11b   : > { %v4030_v55 = vpop.eup %4029  ;;  %4043 = vtanh.f32 %v839_v49  ;;  %1835 = vmatpush1.msra.mxu1 %v1592_v50 }
 0x11c   : > { %v4032_v56 = vpop.eup %4031  ;;  %v842_v57 = vadd.f32 %v4814_v6, %v771_v53  ;;  %v841_v58 = vadd.f32 %v4814_v6, %v770_v54  ;;  %1836 = vmatprep.subr.mxu1 %v1589_v4 }
 0x11d   : > { %3852 = vmatprep.mubr.msk.f32.mxu1 %vm938_vm0, %v4032_v56  ;;  %v630_v59 = vpop.permute.xlu1 %629  ;;  %v625_v60 = vpop.permute.xlu0 %624  ;;  %1837 = vmatpush1.msra.mxu1 %v1588_v5 }
 0x11e   : > { %4045 = vtanh.f32 %v842_v57  ;;  %v773_v61 = vmul.f32 %v4810_v3, %v630_v59  ;;  %3853 = vmatmul.mubr.msk.f32.gmra.mxu1 %vm938_vm0, %v4030_v55  ;;  %v772_v62 = vmul.f32 %v4810_v3, %v625_v60  ;;  %1838 = vmatprep.subr.mxu1 %v1585_v30 }
 0x11f   : > { %v4034_v63 = vpop.eup %4033  ;;  %4047 = vtanh.f32 %v841_v58  ;;  %1839 = vmatpush1.msra.mxu1 %v1584_v34 }
 0x120   : > { %v4036_v0 = vpop.eup %4035  ;;  %v844_v1 = vadd.f32 %v4814_v6, %v773_v61  ;;  %v843_v2 = vadd.f32 %v4814_v6, %v772_v62  ;;  %1840 = vmatprep.subr.mxu1 %v1581_v37 }
 0x121   : > { %3855 = vmatprep.mubr.msk.f32.mxu1 %vm938_vm0, %v4036_v0  ;;  %v640_v7 = vpop.permute.xlu1 %639  ;;  %v635_v8 = vpop.permute.xlu0 %634  ;;  %1841 = vmatpush1.msra.mxu1 %v1580_v40 }
 0x122   : > { %4049 = vtanh.f32 %v844_v1  ;;  %v775_v9 = vmul.f32 %v4810_v3, %v640_v7  ;;  %3856 = vmatmul.mubr.msk.f32.gmra.mxu1 %vm938_vm0, %v4034_v63  ;;  %v774_v10 = vmul.f32 %v4810_v3, %v635_v8 }
 0x123   : > { %v4038_v13 = vpop.eup %4037  ;;  %4051 = vtanh.f32 %v843_v2 }
 0x124   : > { %v4040_v14 = vpop.eup %4039  ;;  %v846_v15 = vadd.f32 %v4814_v6, %v775_v9  ;;  %v845_v16 = vadd.f32 %v4814_v6, %v774_v10 }
 0x125   : > { %3858 = vmatprep.mubr.msk.f32.mxu1 %vm938_vm0, %v4040_v14  ;;  %v650_v17 = vpop.permute.xlu1 %649  ;;  %v645_v18 = vpop.permute.xlu0 %644 }
 0x126   : > { %4053 = vtanh.f32 %v846_v15  ;;  %v777_v19 = vmul.f32 %v4810_v3, %v650_v17  ;;  %3859 = vmatmul.mubr.msk.f32.gmra.mxu1 %vm938_vm0, %v4038_v13  ;;  %v776_v20 = vmul.f32 %v4810_v3, %v645_v18 }
 0x127   : > { %v4042_v21 = vpop.eup %4041  ;;  %4055 = vtanh.f32 %v845_v16 }
 0x128   : > { %v4044_v22 = vpop.eup %4043  ;;  %v848_v23 = vadd.f32 %v4814_v6, %v777_v19  ;;  %v847_v24 = vadd.f32 %v4814_v6, %v776_v20 }
 0x129   : > { %3861 = vmatprep.mubr.msk.f32.mxu1 %vm938_vm0, %v4044_v22  ;;  %v660_v25 = vpop.permute.xlu1 %659  ;;  %v655_v26 = vpop.permute.xlu0 %654 }
 0x12a   : > { %4057 = vtanh.f32 %v848_v23  ;;  %v779_v27 = vmul.f32 %v4810_v3, %v660_v25  ;;  %3862 = vmatmul.mubr.msk.f32.gmra.mxu1 %vm938_vm0, %v4042_v21  ;;  %v778_v28 = vmul.f32 %v4810_v3, %v655_v26 }
 0x12b   : > { %v4046_v29 = vpop.eup %4045  ;;  %4059 = vtanh.f32 %v847_v24 }
 0x12c   : > { %v4048_v31 = vpop.eup %4047  ;;  %v850_v32 = vadd.f32 %v4814_v6, %v779_v27  ;;  %v849_v33 = vadd.f32 %v4814_v6, %v778_v28 }
 0x12d   : > { %3864 = vmatprep.mubr.msk.f32.mxu1 %vm938_vm0, %v4048_v31  ;;  %v670_v35 = vpop.permute.xlu1 %669  ;;  %v665_v36 = vpop.permute.xlu0 %664  ;;  %v5058_v31 = vld [vmem:[#allocation7] ss:$0 sm:$0xff] }
 0x12e   : > { %4061 = vtanh.f32 %v850_v32  ;;  %v781_v38 = vmul.f32 %v4810_v3, %v670_v35  ;;  %3865 = vmatmul.mubr.msk.f32.gmra.mxu1 %vm938_vm0, %v4046_v29  ;;  %v780_v39 = vmul.f32 %v4810_v3, %v665_v36 }
 0x12f   : > { %v4050_v41 = vpop.eup %4049  ;;  %4063 = vtanh.f32 %v849_v33 }
 0x130   : > { %v4052_v43 = vpop.eup %4051  ;;  %v852_v44 = vadd.f32 %v4814_v6, %v781_v38  ;;  %v851_v45 = vadd.f32 %v4814_v6, %v780_v39 }
 0x131   : > { %3867 = vmatprep.mubr.msk.f32.mxu1 %vm938_vm0, %v4052_v43  ;;  %v680_v46 = vpop.permute.xlu1 %679  ;;  %v675_v47 = vpop.permute.xlu0 %674 }
 0x132   : > { %4065 = vtanh.f32 %v852_v44  ;;  %v783_v48 = vmul.f32 %v4810_v3, %v680_v46  ;;  %3868 = vmatmul.mubr.msk.f32.gmra.mxu1 %vm938_vm0, %v4050_v41  ;;  %v782_v49 = vmul.f32 %v4810_v3, %v675_v47 }
 0x133   : > { %v4054_v50 = vpop.eup %4053  ;;  %4067 = vtanh.f32 %v851_v45 }
 0x134   : > { %v4056_v51 = vpop.eup %4055  ;;  %v854_v52 = vadd.f32 %v4814_v6, %v783_v48  ;;  %v853_v53 = vadd.f32 %v4814_v6, %v782_v49 }
 0x135   : > { %3870 = vmatprep.mubr.msk.f32.mxu1 %vm938_vm0, %v4056_v51  ;;  %v690_v54 = vpop.permute.xlu1 %689  ;;  %v685_v55 = vpop.permute.xlu0 %684 }
 0x136   : > { %4069 = vtanh.f32 %v854_v52  ;;  %v785_v56 = vmul.f32 %v4810_v3, %v690_v54  ;;  %3871 = vmatmul.mubr.msk.f32.gmra.mxu1 %vm938_vm0, %v4054_v50  ;;  %v784_v57 = vmul.f32 %v4810_v3, %v685_v55 }
 0x137   : > { %v4058_v58 = vpop.eup %4057  ;;  %4071 = vtanh.f32 %v853_v53 }
 0x138   : > { %v4060_v59 = vpop.eup %4059  ;;  %v856_v60 = vadd.f32 %v4814_v6, %v785_v56  ;;  %v855_v61 = vadd.f32 %v4814_v6, %v784_v57 }
 0x139   : > { %3873 = vmatprep.mubr.msk.f32.mxu1 %vm938_vm0, %v4060_v59  ;;  %v700_v62 = vpop.permute.xlu1 %699  ;;  %v695_v63 = vpop.permute.xlu0 %694 }
 0x13a   : > { %4073 = vtanh.f32 %v856_v60  ;;  %v787_v0 = vmul.f32 %v4810_v3, %v700_v62  ;;  %3874 = vmatmul.mubr.msk.f32.gmra.mxu1 %vm938_vm0, %v4058_v58  ;;  %v786_v1 = vmul.f32 %v4810_v3, %v695_v63 }
 0x13b   : > { %v4062_v2 = vpop.eup %4061  ;;  %4075 = vtanh.f32 %v855_v61 }
 0x13c   : > { %v4064_v4 = vpop.eup %4063  ;;  %v858_v5 = vadd.f32 %v4814_v6, %v787_v0  ;;  %v857_v7 = vadd.f32 %v4814_v6, %v786_v1 }
 0x13d   : > { %3876 = vmatprep.mubr.msk.f32.mxu1 %vm938_vm0, %v4064_v4  ;;  %v710_v8 = vpop.permute.xlu1 %709  ;;  %v705_v9 = vpop.permute.xlu0 %704 }
 0x13e   : > { %4077 = vtanh.f32 %v858_v5  ;;  %v789_v10 = vmul.f32 %v4810_v3, %v710_v8  ;;  %3877 = vmatmul.mubr.msk.f32.gmra.mxu1 %vm938_vm0, %v4062_v2  ;;  %v788_v11 = vmul.f32 %v4810_v3, %v705_v9 }
 0x13f   : > { %v4066_v12 = vpop.eup %4065  ;;  %4079 = vtanh.f32 %v857_v7 }
 0x140   : > { %v4068_v13 = vpop.eup %4067  ;;  %v860_v14 = vadd.f32 %v4814_v6, %v789_v10  ;;  %v859_v15 = vadd.f32 %v4814_v6, %v788_v11 }
 0x141   : > { %3879 = vmatprep.mubr.msk.f32.mxu1 %vm938_vm0, %v4068_v13  ;;  %v720_v16 = vpop.permute.xlu1 %719  ;;  %v715_v17 = vpop.permute.xlu0 %714 }
 0x142   : > { %4081 = vtanh.f32 %v860_v14  ;;  %v791_v18 = vmul.f32 %v4810_v3, %v720_v16  ;;  %3880 = vmatmul.mubr.msk.f32.gmra.mxu1 %vm938_vm0, %v4066_v12  ;;  %v790_v19 = vmul.f32 %v4810_v3, %v715_v17 }
 0x143   : > { %v4070_v20 = vpop.eup %4069  ;;  %4083 = vtanh.f32 %v859_v15 }
 0x144   : > { %v4072_v21 = vpop.eup %4071  ;;  %v862_v22 = vadd.f32 %v4814_v6, %v791_v18  ;;  %v861_v23 = vadd.f32 %v4814_v6, %v790_v19 }
 0x145   : > { %3882 = vmatprep.mubr.msk.f32.mxu1 %vm938_vm0, %v4072_v21 }
 0x146   : > { %4085 = vtanh.f32 %v862_v22  ;;  %3883 = vmatmul.mubr.msk.f32.gmra.mxu1 %vm938_vm0, %v4070_v20 }
 0x147   : > { %v4074_v24 = vpop.eup %4073  ;;  %4087 = vtanh.f32 %v861_v23 }
 0x148   : > { %v4076_v25 = vpop.eup %4075 }
 0x149   : > { %3885 = vmatprep.mubr.msk.f32.mxu1 %vm938_vm0, %v4076_v25 }
 0x14a   : > { %3886 = vmatmul.mubr.msk.f32.gmra.mxu1 %vm938_vm0, %v4074_v24 }
 0x14b   : > { %v4078_v3 = vpop.eup %4077 }
 0x14c   : > { %v4080_v26 = vpop.eup %4079 }
 0x14d   : > { %3888 = vmatprep.mubr.msk.f32.mxu1 %vm938_vm0, %v4080_v26 }
 0x14e   : > { %3889 = vmatmul.mubr.msk.f32.gmra.mxu1 %vm938_vm0, %v4078_v3 }
 0x14f   : > { %v4082_v27 = vpop.eup %4081 }
 0x150   : > { %v4084_v6 = vpop.eup %4083 }
 0x151   : > { %3891 = vmatprep.mubr.msk.f32.mxu1 %vm938_vm0, %v4084_v6 }
 0x152   : > { %3892 = vmatmul.mubr.msk.f32.gmra.mxu1 %vm938_vm0, %v4082_v27 }
 0x153   : > { %v4086_v28 = vpop.eup %4085 }
 0x154   : > { %v4088_v29 = vpop.eup %4087 }
 0x155   : > { %3894 = vmatprep.mubr.msk.f32.mxu1 %vm938_vm0, %v4088_v29 }
 0x156   : > { %3895 = vmatmul.mubr.msk.f32.gmra.mxu1 %vm938_vm0, %v4086_v28 }
 0x157   : > { %1874 = vmatprep.mubr.f32.mxu1 %v4605_v42 }
 0x19c   : > { %v3803_v30 = vpop.f32.mrf.mxu0 }
 0x19d   : > { %v1203_v35 = vadd.f32 %v3803_v30, %v5058_v31 }
 0x19e   : > { %v1197_v32 = vpop.f32.mrf.mxu0 }
 0x19f   : > { %v1198_v33 = vadd.f32 %v5058_v31, %v1197_v32 }
 0x1a0   : > { %v3806_v34 = vpop.f32.mrf.mxu0 }
 0x1a1   : > { %4089 = vtanh.f32 %v1198_v33  ;;  %v1213_v39 = vadd.f32 %v3806_v34, %v5058_v31 }
 0x1a2   : > { %v1207_v36 = vpop.f32.mrf.mxu0  ;;  %4091 = vtanh.f32 %v1203_v35 }
 0x1a3   : > { %v1208_v37 = vadd.f32 %v5058_v31, %v1207_v36 }
 0x1a4   : > { %v3809_v38 = vpop.f32.mrf.mxu0 }
 0x1a5   : > { %4093 = vtanh.f32 %v1208_v37  ;;  %v1223_v45 = vadd.f32 %v3809_v38, %v5058_v31 }
 0x1a6   : > { %v1217_v40 = vpop.f32.mrf.mxu0  ;;  %4095 = vtanh.f32 %v1213_v39 }
 0x1a7   : > { %v1218_v41 = vadd.f32 %v5058_v31, %v1217_v40 }
 0x1a8   : > { %v3812_v44 = vpop.f32.mrf.mxu0 }
 0x1a9   : > { %4097 = vtanh.f32 %v1218_v41  ;;  %v1233_v51 = vadd.f32 %v3812_v44, %v5058_v31 }
 0x1aa   : > { %v1227_v47 = vpop.f32.mrf.mxu0  ;;  %4099 = vtanh.f32 %v1223_v45 }
 0x1ab   : > { %v1228_v48 = vadd.f32 %v5058_v31, %v1227_v47 }
 0x1ac   : > { %v3815_v50 = vpop.f32.mrf.mxu0 }
 0x1ad   : > { %4101 = vtanh.f32 %v1228_v48  ;;  %v1243_v57 = vadd.f32 %v3815_v50, %v5058_v31 }
 0x1ae   : > { %v4090_v43 = vpop.eup %4089  ;;  %v1237_v53 = vpop.f32.mrf.mxu0  ;;  %4103 = vtanh.f32 %v1233_v51 }
 0x1af   : > { %3531 = vmatmul.mubr.msk.f32.vlgmr.msra.gmra.mxu1 %vm938_vm0, %v4090_v43  ;;  %3595 = vmatmul.mubr.msk.f32.vlgmr.msra.gmra.mxu0 %vm938_vm0, %v4090_v43  ;;  %v4092_v46 = vpop.eup %4091  ;;  %v1238_v54 = vadd.f32 %v5058_v31, %v1237_v53 }
 0x1b0   : > { %1880 = vmatprep.mubr.f32.mxu1 %v4605_v42  ;;  %2329 = vmatprep.mubr.f32.mxu0 %v4605_v42  ;;  %v3818_v56 = vpop.f32.mrf.mxu0 }
 0x1b1   : > { %4105 = vtanh.f32 %v1238_v54  ;;  %v1253_v63 = vadd.f32 %v3818_v56, %v5058_v31 }
 0x1b2   : > { %v4094_v49 = vpop.eup %4093  ;;  %v1247_v59 = vpop.f32.mrf.mxu0  ;;  %4107 = vtanh.f32 %v1243_v57 }
 0x1b3   : > { %3532 = vmatmul.mubr.msk.f32.gmra.mxu1 %vm938_vm0, %v4092_v46  ;;  %3596 = vmatmul.mubr.msk.f32.gmra.mxu0 %vm938_vm0, %v4092_v46  ;;  %v4096_v52 = vpop.eup %4095  ;;  %v1248_v60 = vadd.f32 %v5058_v31, %v1247_v59 }
 0x1b4   : > { %1886 = vmatprep.mubr.f32.mxu1 %v4605_v42  ;;  %2335 = vmatprep.mubr.f32.mxu0 %v4605_v42  ;;  %v3821_v62 = vpop.f32.mrf.mxu0 }
 0x1b5   : > { %4109 = vtanh.f32 %v1248_v60  ;;  %v1263_v7 = vadd.f32 %v3821_v62, %v5058_v31 }
 0x1b6   : > { %v4098_v55 = vpop.eup %4097  ;;  %v1257_v1 = vpop.f32.mrf.mxu0  ;;  %4111 = vtanh.f32 %v1253_v63 }
 0x1b7   : > { %3533 = vmatmul.mubr.msk.f32.gmra.mxu1 %vm938_vm0, %v4094_v49  ;;  %3597 = vmatmul.mubr.msk.f32.gmra.mxu0 %vm938_vm0, %v4094_v49  ;;  %v4100_v58 = vpop.eup %4099  ;;  %v1258_v2 = vadd.f32 %v5058_v31, %v1257_v1 }
 0x1b8   : > { %1892 = vmatprep.mubr.f32.mxu1 %v4605_v42  ;;  %2341 = vmatprep.mubr.f32.mxu0 %v4605_v42  ;;  %v3824_v5 = vpop.f32.mrf.mxu0 }
 0x1b9   : > { %4113 = vtanh.f32 %v1258_v2  ;;  %v1273_v13 = vadd.f32 %v3824_v5, %v5058_v31 }
 0x1ba   : > { %v4102_v61 = vpop.eup %4101  ;;  %v1267_v9 = vpop.f32.mrf.mxu0  ;;  %4115 = vtanh.f32 %v1263_v7 }
 0x1bb   : > { %3534 = vmatmul.mubr.msk.f32.gmra.mxu1 %vm938_vm0, %v4096_v52  ;;  %3598 = vmatmul.mubr.msk.f32.gmra.mxu0 %vm938_vm0, %v4096_v52  ;;  %v4104_v0 = vpop.eup %4103  ;;  %v1268_v10 = vadd.f32 %v5058_v31, %v1267_v9 }
 0x1bc   : > { %1898 = vmatprep.mubr.f32.mxu1 %v4605_v42  ;;  %2347 = vmatprep.mubr.f32.mxu0 %v4605_v42  ;;  %v3827_v12 = vpop.f32.mrf.mxu0 }
 0x1bd   : > { %4117 = vtanh.f32 %v1268_v10  ;;  %v1283_v19 = vadd.f32 %v3827_v12, %v5058_v31 }
 0x1be   : > { %v4106_v4 = vpop.eup %4105  ;;  %v1277_v15 = vpop.f32.mrf.mxu0  ;;  %4119 = vtanh.f32 %v1273_v13 }
 0x1bf   : > { %3535 = vmatmul.mubr.msk.f32.gmra.mxu1 %vm938_vm0, %v4098_v55  ;;  %3599 = vmatmul.mubr.msk.f32.gmra.mxu0 %vm938_vm0, %v4098_v55  ;;  %v4108_v8 = vpop.eup %4107  ;;  %v1278_v16 = vadd.f32 %v5058_v31, %v1277_v15 }
 0x1c0   : > { %1904 = vmatprep.mubr.f32.mxu1 %v4605_v42  ;;  %2353 = vmatprep.mubr.f32.mxu0 %v4605_v42  ;;  %v3830_v18 = vpop.f32.mrf.mxu0 }
 0x1c1   : > { %4121 = vtanh.f32 %v1278_v16  ;;  %v1293_v25 = vadd.f32 %v3830_v18, %v5058_v31 }
 0x1c2   : > { %v4110_v11 = vpop.eup %4109  ;;  %v1287_v21 = vpop.f32.mrf.mxu0  ;;  %4123 = vtanh.f32 %v1283_v19 }
 0x1c3   : > { %3536 = vmatmul.mubr.msk.f32.gmra.mxu1 %vm938_vm0, %v4100_v58  ;;  %3600 = vmatmul.mubr.msk.f32.gmra.mxu0 %vm938_vm0, %v4100_v58  ;;  %v4112_v14 = vpop.eup %4111  ;;  %v1288_v22 = vadd.f32 %v5058_v31, %v1287_v21 }
 0x1c4   : > { %1910 = vmatprep.mubr.f32.mxu1 %v4605_v42  ;;  %2359 = vmatprep.mubr.f32.mxu0 %v4605_v42  ;;  %v3833_v24 = vpop.f32.mrf.mxu0 }
 0x1c5   : > { %4125 = vtanh.f32 %v1288_v22  ;;  %v1303_v29 = vadd.f32 %v3833_v24, %v5058_v31 }
 0x1c6   : > { %v4114_v17 = vpop.eup %4113  ;;  %v1297_v26 = vpop.f32.mrf.mxu0  ;;  %4127 = vtanh.f32 %v1293_v25 }
 0x1c7   : > { %3537 = vmatmul.mubr.msk.f32.gmra.mxu1 %vm938_vm0, %v4102_v61  ;;  %3601 = vmatmul.mubr.msk.f32.gmra.mxu0 %vm938_vm0, %v4102_v61  ;;  %v4116_v20 = vpop.eup %4115  ;;  %v1298_v27 = vadd.f32 %v5058_v31, %v1297_v26 }
 0x1c8   : > { %1916 = vmatprep.mubr.f32.mxu1 %v4605_v42  ;;  %2365 = vmatprep.mubr.f32.mxu0 %v4605_v42  ;;  %v3836_v28 = vpop.f32.mrf.mxu0 }
 0x1c9   : > { %4129 = vtanh.f32 %v1298_v27  ;;  %v1313_v38 = vadd.f32 %v3836_v28, %v5058_v31 }
 0x1ca   : > { %v4118_v23 = vpop.eup %4117  ;;  %v1307_v33 = vpop.f32.mrf.mxu0  ;;  %4131 = vtanh.f32 %v1303_v29 }
 0x1cb   : > { %3538 = vmatmul.mubr.msk.f32.gmra.mxu1 %vm938_vm0, %v4104_v0  ;;  %3602 = vmatmul.mubr.msk.f32.gmra.mxu0 %vm938_vm0, %v4104_v0  ;;  %v4120_v3 = vpop.eup %4119  ;;  %v1308_v34 = vadd.f32 %v5058_v31, %v1307_v33 }
 0x1cc   : > { %1922 = vmatprep.mubr.f32.mxu1 %v4605_v42  ;;  %2371 = vmatprep.mubr.f32.mxu0 %v4605_v42  ;;  %v3839_v37 = vpop.f32.mrf.mxu0 }
 0x1cd   : > { %4133 = vtanh.f32 %v1308_v34  ;;  %v1323_v47 = vadd.f32 %v3839_v37, %v5058_v31 }
 0x1ce   : > { %v4122_v6 = vpop.eup %4121  ;;  %v1317_v41 = vpop.f32.mrf.mxu0  ;;  %4135 = vtanh.f32 %v1313_v38 }
 0x1cf   : > { %3539 = vmatmul.mubr.msk.f32.gmra.mxu1 %vm938_vm0, %v4106_v4  ;;  %3603 = vmatmul.mubr.msk.f32.gmra.mxu0 %vm938_vm0, %v4106_v4  ;;  %v4124_v32 = vpop.eup %4123  ;;  %v1318_v43 = vadd.f32 %v5058_v31, %v1317_v41 }
 0x1d0   : > { %1928 = vmatprep.mubr.f32.mxu1 %v4605_v42  ;;  %2377 = vmatprep.mubr.f32.mxu0 %v4605_v42  ;;  %v3842_v46 = vpop.f32.mrf.mxu0 }
 0x1d1   : > { %4137 = vtanh.f32 %v1318_v43  ;;  %v1333_v55 = vadd.f32 %v3842_v46, %v5058_v31 }
 0x1d2   : > { %v4126_v36 = vpop.eup %4125  ;;  %v1327_v50 = vpop.f32.mrf.mxu0  ;;  %4139 = vtanh.f32 %v1323_v47 }
 0x1d3   : > { %3540 = vmatmul.mubr.msk.f32.gmra.mxu1 %vm938_vm0, %v4108_v8  ;;  %3604 = vmatmul.mubr.msk.f32.gmra.mxu0 %vm938_vm0, %v4108_v8  ;;  %v4128_v40 = vpop.eup %4127  ;;  %v1328_v51 = vadd.f32 %v5058_v31, %v1327_v50 }
 0x1d4   : > { %1934 = vmatprep.mubr.f32.mxu1 %v4605_v42  ;;  %2383 = vmatprep.mubr.f32.mxu0 %v4605_v42  ;;  %v3845_v54 = vpop.f32.mrf.mxu0 }
 0x1d5   : > { %4141 = vtanh.f32 %v1328_v51  ;;  %v1343_v63 = vadd.f32 %v3845_v54, %v5058_v31 }
 0x1d6   : > { %v4130_v45 = vpop.eup %4129  ;;  %v1337_v58 = vpop.f32.mrf.mxu0  ;;  %4143 = vtanh.f32 %v1333_v55 }
 0x1d7   : > { %3541 = vmatmul.mubr.msk.f32.gmra.mxu1 %vm938_vm0, %v4110_v11  ;;  %3605 = vmatmul.mubr.msk.f32.gmra.mxu0 %vm938_vm0, %v4110_v11  ;;  %v4132_v49 = vpop.eup %4131  ;;  %v1338_v59 = vadd.f32 %v5058_v31, %v1337_v58 }
 0x1d8   : > { %1940 = vmatprep.mubr.f32.mxu1 %v4605_v42  ;;  %2389 = vmatprep.mubr.f32.mxu0 %v4605_v42  ;;  %v3848_v62 = vpop.f32.mrf.mxu0 }
 0x1d9   : > { %4145 = vtanh.f32 %v1338_v59  ;;  %v1353_v8 = vadd.f32 %v3848_v62, %v5058_v31  ;;  %v1598_v62 = vlaneseq }
 0x1da   : > { %v5150_v30 = vpop.f32.mrf.mxu1  ;;  %v4134_v53 = vpop.eup %4133  ;;  %4147 = vtanh.f32 %v1343_v63 }
 0x1db   : > { %3542 = vmatmul.mubr.msk.f32.gmra.mxu1 %vm938_vm0, %v4112_v14  ;;  %3606 = vmatmul.mubr.msk.f32.gmra.mxu0 %vm938_vm0, %v4112_v14  ;;  %v4136_v57 = vpop.eup %4135  ;;  %v1347_v2 = vpop.f32.mrf.mxu0  ;;  %v1363_v14 = vadd.f32 %v5150_v30, %v5058_v31 }
 0x1dc   : > { %1946 = vmatprep.mubr.f32.mxu1 %v4605_v42  ;;  %2395 = vmatprep.mubr.f32.mxu0 %v4605_v42  ;;  %v5157_v35 = vpop.f32.mrf.mxu1  ;;  %v1348_v4 = vadd.f32 %v5058_v31, %v1347_v2  ;;  %v5370_v2 = vshrl.u32 %v1598_v62, 7 }
 0x1dd   : > { %v1358_v11 = vadd.f32 %v5058_v31, %v5157_v35 }
 0x1de   : > { %v5164_v39 = vpop.f32.mrf.mxu1  ;;  %v4138_v61 = vpop.eup %4137  ;;  %4149 = vtanh.f32 %v1348_v4 }
 0x1df   : > { %3543 = vmatmul.mubr.msk.f32.gmra.mxu1 %vm938_vm0, %v4114_v17  ;;  %3607 = vmatmul.mubr.msk.f32.gmra.mxu0 %vm938_vm0, %v4114_v17  ;;  %v4140_v1 = vpop.eup %4139  ;;  %4151 = vtanh.f32 %v1353_v8  ;;  %v1600_v8 = vsub.s32 0, %v5370_v2 }
 0x1e0   : > { %1952 = vmatprep.mubr.f32.mxu1 %v4605_v42  ;;  %2401 = vmatprep.mubr.f32.mxu0 %v4605_v42  ;;  %v5171_v44 = vpop.f32.mrf.mxu1  ;;  %4153 = vtanh.f32 %v1358_v11 }
 0x1e1   : > { %4155 = vtanh.f32 %v1363_v14  ;;  %v1368_v17 = vadd.f32 %v5058_v31, %v5171_v44  ;;  %v1612_v14 = vsub.s32 3, %v5370_v2 }
 0x1e2   : > { %v5178_v48 = vpop.f32.mrf.mxu1  ;;  %v4142_v7 = vpop.eup %4141 }
 0x1e3   : > { %3544 = vmatmul.mubr.msk.f32.gmra.mxu1 %vm938_vm0, %v4116_v20  ;;  %3608 = vmatmul.mubr.msk.f32.gmra.mxu0 %vm938_vm0, %v4116_v20  ;;  %v4144_v10 = vpop.eup %4143  ;;  %v1373_v20 = vadd.f32 %v5164_v39, %v5058_v31  ;;  %4157 = vtanh.f32 %v1368_v17 }
 0x1e4   : > { %1958 = vmatprep.mubr.f32.mxu1 %v4605_v42  ;;  %2407 = vmatprep.mubr.f32.mxu0 %v4605_v42  ;;  %v5185_v52 = vpop.f32.mrf.mxu1 }
 0x1e5   : > { %4159 = vtanh.f32 %v1373_v20 }
 0x1e6   : > { %v5192_v56 = vpop.f32.mrf.mxu1  ;;  %v4146_v13 = vpop.eup %4145 }
 0x1e7   : > { %3545 = vmatmul.mubr.msk.f32.gmra.mxu1 %vm938_vm0, %v4118_v23  ;;  %3609 = vmatmul.mubr.msk.f32.gmra.mxu0 %vm938_vm0, %v4118_v23  ;;  %v4148_v16 = vpop.eup %4147  ;;  %v1378_v23 = vadd.f32 %v5058_v31, %v5185_v52  ;;  %v1393_v30 = vadd.f32 %v5192_v56, %v5058_v31 }
 0x1e8   : > { %1964 = vmatprep.mubr.f32.mxu1 %v4605_v42  ;;  %2413 = vmatprep.mubr.f32.mxu0 %v4605_v42  ;;  %v5199_v60 = vpop.f32.mrf.mxu1 }
 0x1e9   : > { %4161 = vtanh.f32 %v1378_v23 }
 0x1ea   : > { %v5206_v0 = vpop.f32.mrf.mxu1 }
 0x1eb   : > { %3546 = vmatmul.mubr.msk.f32.gmra.mxu1 %vm938_vm0, %v4120_v3  ;;  %3610 = vmatmul.mubr.msk.f32.gmra.mxu0 %vm938_vm0, %v4120_v3  ;;  %v4150_v19 = vpop.eup %4149  ;;  %v1383_v3 = vadd.f32 %v5178_v48, %v5058_v31  ;;  %v1403_v37 = vadd.f32 %v5206_v0, %v5058_v31 }
 0x1ec   : > { %1970 = vmatprep.mubr.f32.mxu1 %v4605_v42  ;;  %2419 = vmatprep.mubr.f32.mxu0 %v4605_v42  ;;  %v5213_v5 = vpop.f32.mrf.mxu1  ;;  %v4152_v22 = vpop.eup %4151 }
 0x1ed   : > { %v4154_v25 = vpop.eup %4153  ;;  %4163 = vtanh.f32 %v1383_v3  ;;  %v1398_v34 = vadd.f32 %v5058_v31, %v5213_v5 }
 0x1ee   : > { %v5220_v9 = vpop.f32.mrf.mxu1  ;;  %v4156_v27 = vpop.eup %4155 }
 0x1ef   : > { %3547 = vmatmul.mubr.msk.f32.gmra.mxu1 %vm938_vm0, %v4122_v6  ;;  %3611 = vmatmul.mubr.msk.f32.gmra.mxu0 %vm938_vm0, %v4122_v6  ;;  %v1388_v6 = vadd.f32 %v5058_v31, %v5199_v60  ;;  %v1413_v44 = vadd.f32 %v5220_v9, %v5058_v31  ;;  %v1608_v9 = vsub.s32 2, %v5370_v2 }
 0x1f0   : > { %1976 = vmatprep.mubr.f32.mxu1 %v4605_v42  ;;  %2425 = vmatprep.mubr.f32.mxu0 %v4605_v42  ;;  %v5228_v12 = vpop.f32.mrf.mxu1  ;;  %v4158_v29 = vpop.eup %4157 }
 0x1f1   : > { %4165 = vtanh.f32 %v1388_v6 }
 0x1f2   : > { %v5236_v15 = vpop.f32.mrf.mxu1  ;;  %v4160_v33 = vpop.eup %4159  ;;  %4167 = vtanh.f32 %v1393_v30 }
 0x1f3   : > { %3548 = vmatmul.mubr.msk.f32.gmra.mxu1 %vm938_vm0, %v4124_v32  ;;  %3612 = vmatmul.mubr.msk.f32.gmra.mxu0 %vm938_vm0, %v4124_v32  ;;  %4169 = vtanh.f32 %v1398_v34  ;;  %v1423_v50 = vadd.f32 %v5236_v15, %v5058_v31 }
 0x1f4   : > { %1982 = vmatprep.mubr.f32.mxu1 %v4605_v42  ;;  %2431 = vmatprep.mubr.f32.mxu0 %v4605_v42  ;;  %v5244_v18 = vpop.f32.mrf.mxu1  ;;  %4171 = vtanh.f32 %v1403_v37 }
 0x1f5   : > { %v1418_v47 = vadd.f32 %v5058_v31, %v5244_v18 }
 0x1f6   : > { %v5252_v21 = vpop.f32.mrf.mxu1 }
 0x1f7   : > { %3549 = vmatmul.mubr.msk.f32.gmra.mxu1 %vm938_vm0, %v4126_v36  ;;  %3613 = vmatmul.mubr.msk.f32.gmra.mxu0 %vm938_vm0, %v4126_v36  ;;  %v4162_v36 = vpop.eup %4161  ;;  %v1433_v56 = vadd.f32 %v5252_v21, %v5058_v31 }
 0x1f8   : > { %1988 = vmatprep.mubr.f32.mxu1 %v4605_v42  ;;  %2437 = vmatprep.mubr.f32.mxu0 %v4605_v42  ;;  %v5260_v24 = vpop.f32.mrf.mxu1 }
 0x1fa   : > { %v5268_v26 = vpop.f32.mrf.mxu1  ;;  %v4164_v39 = vpop.eup %4163 }
 0x1fb   : > { %3550 = vmatmul.mubr.msk.f32.gmra.mxu1 %vm938_vm0, %v4128_v40  ;;  %3614 = vmatmul.mubr.msk.f32.gmra.mxu0 %vm938_vm0, %v4128_v40  ;;  %v1408_v40 = vadd.f32 %v5058_v31, %v5228_v12  ;;  %v1443_v63 = vadd.f32 %v5268_v26, %v5058_v31  ;;  %v5389_v12 = vld [vmem:[%s6151_s6] sm:$0xf] }
 0x1fc   : > { %1994 = vmatprep.mubr.f32.mxu1 %v4605_v42  ;;  %2443 = vmatprep.mubr.f32.mxu0 %v4605_v42  ;;  %v5276_v28 = vpop.f32.mrf.mxu1  ;;  %v5398_v15 = vrot.slane %v5389_v12, %v1600_v8  ;;  %v5408_v20 = vrot.slane %v5389_v12, %v1612_v14 }
 0x1fd   : > { %4173 = vtanh.f32 %v1408_v40  ;;  %v1438_v59 = vadd.f32 %v5058_v31, %v5276_v28 }
 0x1fe   : > { %v5284_v32 = vpop.f32.mrf.mxu1  ;;  %v4166_v43 = vpop.eup %4165  ;;  %4175 = vtanh.f32 %v1413_v44 }
 0x1ff   : > { %3551 = vmatmul.mubr.msk.f32.gmra.mxu1 %vm938_vm0, %v4130_v45  ;;  %3615 = vmatmul.mubr.msk.f32.gmra.mxu0 %vm938_vm0, %v4130_v45  ;;  %v4168_v46 = vpop.eup %4167  ;;  %4177 = vtanh.f32 %v1418_v47 }
 0x200   : > { %2000 = vmatprep.mubr.f32.mxu1 %v4605_v42  ;;  %2449 = vmatprep.mubr.f32.mxu0 %v4605_v42  ;;  %v5292_v35 = vpop.f32.mrf.mxu1  ;;  %4179 = vtanh.f32 %v1423_v50 }
 0x201   : > { %v1448_v4 = vadd.f32 %v5058_v31, %v5292_v35 }
 0x202   : > { %v5300_v38 = vpop.f32.mrf.mxu1 }
 0x203   : > { %3552 = vmatmul.mubr.msk.f32.gmra.mxu1 %vm938_vm0, %v4132_v49  ;;  %3616 = vmatmul.mubr.msk.f32.gmra.mxu0 %vm938_vm0, %v4132_v49  ;;  %v4170_v49 = vpop.eup %4169 }
 0x204   : > { %2006 = vmatprep.mubr.f32.mxu1 %v4605_v42  ;;  %2455 = vmatprep.mubr.f32.mxu0 %v4605_v42  ;;  %v5308_v41 = vpop.f32.mrf.mxu1  ;;  %v4172_v52 = vpop.eup %4171 }
 0x205   : > { %v1458_v17 = vadd.f32 %v5058_v31, %v5308_v41 }
 0x206   : > { %v5316_v45 = vpop.f32.mrf.mxu1 }
 0x207   : > { %3553 = vmatmul.mubr.msk.f32.gmra.mxu1 %vm938_vm0, %v4134_v53  ;;  %3617 = vmatmul.mubr.msk.f32.gmra.mxu0 %vm938_vm0, %v4134_v53  ;;  %v1428_v53 = vadd.f32 %v5058_v31, %v5260_v24 }
 0x208   : > { %2012 = vmatprep.mubr.f32.mxu1 %v4605_v42  ;;  %2461 = vmatprep.mubr.f32.mxu0 %v4605_v42  ;;  %v5324_v48 = vpop.f32.mrf.mxu1 }
 0x209   : > { %4181 = vtanh.f32 %v1428_v53  ;;  %v1468_v34 = vadd.f32 %v5058_v31, %v5324_v48 }
 0x20a   : > { %v5332_v51 = vpop.f32.mrf.mxu1  ;;  %v4174_v55 = vpop.eup %4173  ;;  %4183 = vtanh.f32 %v1433_v56 }
 0x20b   : > { %3554 = vmatmul.mubr.msk.f32.gmra.mxu1 %vm938_vm0, %v4136_v57  ;;  %3618 = vmatmul.mubr.msk.f32.gmra.mxu0 %vm938_vm0, %v4136_v57  ;;  %v4176_v58 = vpop.eup %4175  ;;  %4185 = vtanh.f32 %v1438_v59 }
 0x20c   : > { %2018 = vmatprep.mubr.f32.mxu1 %v4605_v42  ;;  %2467 = vmatprep.mubr.f32.mxu0 %v4605_v42  ;;  %v5340_v54 = vpop.f32.mrf.mxu1  ;;  %4187 = vtanh.f32 %v1443_v63 }
 0x20d   : > { %4189 = vtanh.f32 %v1448_v4  ;;  %v1483_v4 = vadd.f32 %v5332_v51, %v5058_v31 }
 0x20e   : > { %v5348_v57 = vpop.f32.mrf.mxu1 }
 0x20f   : > { %3555 = vmatmul.mubr.msk.f32.gmra.mxu1 %vm938_vm0, %v4138_v61  ;;  %3619 = vmatmul.mubr.msk.f32.gmra.mxu0 %vm938_vm0, %v4138_v61  ;;  %v4178_v61 = vpop.eup %4177 }
 0x210   : > { %2024 = vmatprep.mubr.f32.mxu1 %v4605_v42  ;;  %2473 = vmatprep.mubr.f32.mxu0 %v4605_v42  ;;  %v5356_v60 = vpop.f32.mrf.mxu1 }
 0x212   : > { %v5364_v0 = vpop.f32.mrf.mxu1 }
 0x213   : > { %3556 = vmatmul.mubr.msk.f32.gmra.mxu1 %vm938_vm0, %v4140_v1  ;;  %3620 = vmatmul.mubr.msk.f32.gmra.mxu0 %vm938_vm0, %v4140_v1  ;;  %v4180_v1 = vpop.eup %4179 }
 0x214   : > { %2030 = vmatprep.mubr.f32.mxu1 %v4605_v42  ;;  %2479 = vmatprep.mubr.f32.mxu0 %v4605_v42  ;;  %v5374_v5 = vpop.f32.mrf.mxu1 }
 0x216   : > { %v5384_v11 = vpop.f32.mrf.mxu1 }
 0x217   : > { %3557 = vmatmul.mubr.msk.f32.gmra.mxu1 %vm938_vm0, %v4142_v7  ;;  %3621 = vmatmul.mubr.msk.f32.gmra.mxu0 %vm938_vm0, %v4142_v7  ;;  %v4182_v7 = vpop.eup %4181 }
 0x218   : > { %2036 = vmatprep.mubr.f32.mxu1 %v4605_v42  ;;  %2485 = vmatprep.mubr.f32.mxu0 %v4605_v42  ;;  %v5405_v18 = vpop.f32.mrf.mxu1 }
 0x21b   : > { %3558 = vmatmul.mubr.msk.f32.gmra.mxu1 %vm938_vm0, %v4144_v10  ;;  %3622 = vmatmul.mubr.msk.f32.gmra.mxu0 %vm938_vm0, %v4144_v10  ;;  %v1453_v10 = vadd.f32 %v5284_v32, %v5058_v31 }
 0x21c   : > { %2042 = vmatprep.mubr.f32.mxu1 %v4605_v42  ;;  %2491 = vmatprep.mubr.f32.mxu0 %v4605_v42 }
 0x21d   : > { %4191 = vtanh.f32 %v1453_v10 }
 0x21e   : > { %4193 = vtanh.f32 %v1458_v17 }
 0x21f   : > { %3559 = vmatmul.mubr.msk.f32.gmra.mxu1 %vm938_vm0, %v4146_v13  ;;  %3623 = vmatmul.mubr.msk.f32.gmra.mxu0 %vm938_vm0, %v4146_v13  ;;  %v4184_v13 = vpop.eup %4183 }
 0x220   : > { %2048 = vmatprep.mubr.f32.mxu1 %v4605_v42  ;;  %2497 = vmatprep.mubr.f32.mxu0 %v4605_v42 }
 0x223   : > { %3560 = vmatmul.mubr.msk.f32.gmra.mxu1 %vm938_vm0, %v4148_v16  ;;  %3624 = vmatmul.mubr.msk.f32.gmra.mxu0 %vm938_vm0, %v4148_v16  ;;  %v5401_v16 = vrot.slane %v5389_v12, %v1608_v9 }
 0x224   : > { %2054 = vmatprep.mubr.f32.mxu1 %v4605_v42  ;;  %2503 = vmatprep.mubr.f32.mxu0 %v4605_v42 }
 0x227   : > { %3561 = vmatmul.mubr.msk.f32.gmra.mxu1 %vm938_vm0, %v4150_v19  ;;  %3625 = vmatmul.mubr.msk.f32.gmra.mxu0 %vm938_vm0, %v4150_v19  ;;  %v4186_v19 = vpop.eup %4185 }
 0x228   : > { %2060 = vmatprep.mubr.f32.mxu1 %v4605_v42  ;;  %2509 = vmatprep.mubr.f32.mxu0 %v4605_v42 }
 0x22b   : > { %3562 = vmatmul.mubr.msk.f32.gmra.mxu1 %vm938_vm0, %v4152_v22  ;;  %3626 = vmatmul.mubr.msk.f32.gmra.mxu0 %vm938_vm0, %v4152_v22 }
 0x22c   : > { %2066 = vmatprep.mubr.f32.mxu1 %v4605_v42  ;;  %2515 = vmatprep.mubr.f32.mxu0 %v4605_v42 }
 0x22f   : > { %3563 = vmatmul.mubr.msk.f32.gmra.mxu1 %vm938_vm0, %v4154_v25  ;;  %3627 = vmatmul.mubr.msk.f32.gmra.mxu0 %vm938_vm0, %v4154_v25  ;;  %v1463_v25 = vadd.f32 %v5300_v38, %v5058_v31 }
 0x230   : > { %2072 = vmatprep.mubr.f32.mxu1 %v4605_v42  ;;  %2521 = vmatprep.mubr.f32.mxu0 %v4605_v42 }
 0x233   : > { %3564 = vmatmul.mubr.msk.f32.gmra.mxu1 %vm938_vm0, %v4156_v27  ;;  %3628 = vmatmul.mubr.msk.f32.gmra.mxu0 %vm938_vm0, %v4156_v27  ;;  %v4188_v27 = vpop.eup %4187 }
 0x234   : > { %2078 = vmatprep.mubr.f32.mxu1 %v4605_v42  ;;  %2527 = vmatprep.mubr.f32.mxu0 %v4605_v42  ;;  %v4190_v37 = vpop.eup %4189 }
 0x237   : > { %3565 = vmatmul.mubr.msk.f32.gmra.mxu1 %vm938_vm0, %v4158_v29  ;;  %3629 = vmatmul.mubr.msk.f32.gmra.mxu0 %vm938_vm0, %v4158_v29 }
 0x238   : > { %2084 = vmatprep.mubr.f32.mxu1 %v4605_v42  ;;  %2533 = vmatprep.mubr.f32.mxu0 %v4605_v42 }
 0x23b   : > { %3566 = vmatmul.mubr.msk.f32.gmra.mxu1 %vm938_vm0, %v4160_v33  ;;  %3630 = vmatmul.mubr.msk.f32.gmra.mxu0 %vm938_vm0, %v4160_v33 }
 0x23c   : > { %2090 = vmatprep.mubr.f32.mxu1 %v4605_v42  ;;  %2539 = vmatprep.mubr.f32.mxu0 %v4605_v42 }
 0x23f   : > { %3567 = vmatmul.mubr.msk.f32.gmra.mxu1 %vm938_vm0, %v4162_v36  ;;  %3631 = vmatmul.mubr.msk.f32.gmra.mxu0 %vm938_vm0, %v4162_v36 }
 0x240   : > { %2096 = vmatprep.mubr.f32.mxu1 %v4605_v42  ;;  %2545 = vmatprep.mubr.f32.mxu0 %v4605_v42 }
 0x243   : > { %3568 = vmatmul.mubr.msk.f32.gmra.mxu1 %vm938_vm0, %v4164_v39  ;;  %3632 = vmatmul.mubr.msk.f32.gmra.mxu0 %vm938_vm0, %v4164_v39 }
 0x244   : > { %2102 = vmatprep.mubr.f32.mxu1 %v4605_v42  ;;  %2551 = vmatprep.mubr.f32.mxu0 %v4605_v42 }
 0x247   : > { %3569 = vmatmul.mubr.msk.f32.gmra.mxu1 %vm938_vm0, %v4166_v43  ;;  %3633 = vmatmul.mubr.msk.f32.gmra.mxu0 %vm938_vm0, %v4166_v43 }
 0x248   : > { %2108 = vmatprep.mubr.f32.mxu1 %v4605_v42  ;;  %2557 = vmatprep.mubr.f32.mxu0 %v4605_v42 }
 0x24b   : > { %3570 = vmatmul.mubr.msk.f32.gmra.mxu1 %vm938_vm0, %v4168_v46  ;;  %3634 = vmatmul.mubr.msk.f32.gmra.mxu0 %vm938_vm0, %v4168_v46  ;;  %v1473_v46 = vadd.f32 %v5316_v45, %v5058_v31 }
 0x24c   : > { %2114 = vmatprep.mubr.f32.mxu1 %v4605_v42  ;;  %2563 = vmatprep.mubr.f32.mxu0 %v4605_v42 }
 0x24f   : > { %3571 = vmatmul.mubr.msk.f32.gmra.mxu1 %vm938_vm0, %v4170_v49  ;;  %3635 = vmatmul.mubr.msk.f32.gmra.mxu0 %vm938_vm0, %v4170_v49  ;;  %v4192_v49 = vpop.eup %4191 }
 0x250   : > { %2120 = vmatprep.mubr.f32.mxu1 %v4605_v42  ;;  %2569 = vmatprep.mubr.f32.mxu0 %v4605_v42  ;;  %v4194_v62 = vpop.eup %4193 }
 0x253   : > { %3572 = vmatmul.mubr.msk.f32.gmra.mxu1 %vm938_vm0, %v4172_v52  ;;  %3636 = vmatmul.mubr.msk.f32.gmra.mxu0 %vm938_vm0, %v4172_v52 }
 0x254   : > { %2126 = vmatprep.mubr.f32.mxu1 %v4605_v42  ;;  %2575 = vmatprep.mubr.f32.mxu0 %v4605_v42 }
 0x257   : > { %3573 = vmatmul.mubr.msk.f32.gmra.mxu1 %vm938_vm0, %v4174_v55  ;;  %3637 = vmatmul.mubr.msk.f32.gmra.mxu0 %vm938_vm0, %v4174_v55 }
 0x258   : > { %2132 = vmatprep.mubr.f32.mxu1 %v4605_v42  ;;  %2581 = vmatprep.mubr.f32.mxu0 %v4605_v42 }
 0x25b   : > { %3574 = vmatmul.mubr.msk.f32.gmra.mxu1 %vm938_vm0, %v4176_v58  ;;  %3638 = vmatmul.mubr.msk.f32.gmra.mxu0 %vm938_vm0, %v4176_v58  ;;  %v1478_v58 = vadd.f32 %v5058_v31, %v5340_v54 }
 0x25c   : > { %2138 = vmatprep.mubr.f32.mxu1 %v4605_v42  ;;  %2587 = vmatprep.mubr.f32.mxu0 %v4605_v42 }
 0x25f   : > { %3575 = vmatmul.mubr.msk.f32.gmra.mxu1 %vm938_vm0, %v4178_v61  ;;  %3639 = vmatmul.mubr.msk.f32.gmra.mxu0 %vm938_vm0, %v4178_v61 }
 0x260   : > { %2144 = vmatprep.mubr.f32.mxu1 %v4605_v42  ;;  %2593 = vmatprep.mubr.f32.mxu0 %v4605_v42 }
 0x263   : > { %3576 = vmatmul.mubr.msk.f32.gmra.mxu1 %vm938_vm0, %v4180_v1  ;;  %3640 = vmatmul.mubr.msk.f32.gmra.mxu0 %vm938_vm0, %v4180_v1 }
 0x264   : > { %2150 = vmatprep.mubr.f32.mxu1 %v4605_v42  ;;  %2599 = vmatprep.mubr.f32.mxu0 %v4605_v42 }
 0x267   : > { %3577 = vmatmul.mubr.msk.f32.gmra.mxu1 %vm938_vm0, %v4182_v7  ;;  %3641 = vmatmul.mubr.msk.f32.gmra.mxu0 %vm938_vm0, %v4182_v7 }
 0x268   : > { %2156 = vmatprep.mubr.f32.mxu1 %v4605_v42  ;;  %2605 = vmatprep.mubr.f32.mxu0 %v4605_v42 }
 0x26b   : > { %3578 = vmatmul.mubr.msk.f32.gmra.mxu1 %vm938_vm0, %v4184_v13  ;;  %3642 = vmatmul.mubr.msk.f32.gmra.mxu0 %vm938_vm0, %v4184_v13 }
 0x26c   : > { %2162 = vmatprep.mubr.f32.mxu1 %v4605_v42  ;;  %2611 = vmatprep.mubr.f32.mxu0 %v4605_v42 }
 0x26f   : > { %v1876_v21 = vpop.f32.mrf.mxu1  ;;  %3579 = vmatmul.mubr.msk.f32.gmra.mxu1 %vm938_vm0, %v4186_v19  ;;  %v2325_v22 = vpop.f32.mrf.mxu0  ;;  %3643 = vmatmul.mubr.msk.f32.gmra.mxu0 %vm938_vm0, %v4186_v19 }
 0x270   : > { %v1877_v23 = vadd.f32 %v1876_v21, %v5398_v15  ;;  %v2326_v24 = vadd.f32 %v2325_v22, %v5401_v16  ;;  %2168 = vmatprep.mubr.f32.mxu1 %v4605_v42  ;;  %2617 = vmatprep.mubr.f32.mxu0 %v4605_v42  ;;  %v5479_v21 = vld [vmem:[#allocation7] ss:$0 sm:$0xff] }
 0x271   : > { %v5423_v3 = vpop.f32.mrf.mxu1  ;;  %v2327_v26 = vpop.f32.mrf.mxu0  ;;  %v1488_v22 = vadd.f32 %v5479_v21, %v5356_v60 }
 0x272   : > { %2708 = vst [vmem:[%s5413_s12] sm:$0xff] %v1877_v23  ;;  %v3659_v6 = vmul.f32 -1.442695, %v2326_v24  ;;  %v2328_v28 = vadd.f32 %v2327_v26, %v5408_v20 }
 0x273   : > { %v1882_v29 = vpop.f32.mrf.mxu1  ;;  %3580 = vmatmul.mubr.msk.f32.gmra.mxu1 %vm938_vm0, %v4188_v27  ;;  %v2331_v30 = vpop.f32.mrf.mxu0  ;;  %3644 = vmatmul.mubr.msk.f32.gmra.mxu0 %vm938_vm0, %v4188_v27 }
 0x274   : > { %4195 = vpow2.f32 %v3659_v6  ;;  %3284 = vst [vmem:[%s5413_s12 + $0x10] sm:$0xff] %v2328_v28  ;;  %v1883_v32 = vadd.f32 %v1882_v29, %v5398_v15  ;;  %v2332_v33 = vadd.f32 %v2331_v30, %v5401_v16  ;;  %2174 = vmatprep.mubr.f32.mxu1 %v4605_v42  ;;  %2623 = vmatprep.mubr.f32.mxu0 %v4605_v42 }
 0x275   : > { %4197 = vtanh.f32 %v1463_v25  ;;  %v5436_v35 = vpop.f32.mrf.mxu1  ;;  %v2333_v36 = vpop.f32.mrf.mxu0 }
 0x276   : > { %2709 = vst [vmem:[%s5413_s12 + $0x18] sm:$0xff] %v1883_v32  ;;  %v3660_v38 = vmul.f32 -1.442695, %v2332_v33  ;;  %v2334_v39 = vadd.f32 %v2333_v36, %v5408_v20  ;;  %v1493_v33 = vadd.f32 %v5479_v21, %v5348_v57 }
 0x277   : > { %v1888_v40 = vpop.f32.mrf.mxu1  ;;  %3581 = vmatmul.mubr.msk.f32.gmra.mxu1 %vm938_vm0, %v4190_v37  ;;  %v2337_v41 = vpop.f32.mrf.mxu0  ;;  %3645 = vmatmul.mubr.msk.f32.gmra.mxu0 %vm938_vm0, %v4190_v37  ;;  %v1604_v37 = vsub.s32 1, %v5370_v2 }
 0x278   : > { %4199 = vpow2.f32 %v3660_v38  ;;  %3285 = vst [vmem:[%s5413_s12 + $0x28] sm:$0xff] %v2334_v39  ;;  %v1889_v43 = vadd.f32 %v1888_v40, %v5398_v15  ;;  %v2338_v44 = vadd.f32 %v2337_v41, %v5401_v16  ;;  %2180 = vmatprep.mubr.f32.mxu1 %v4605_v42  ;;  %2629 = vmatprep.mubr.f32.mxu0 %v4605_v42 }
 0x279   : > { %4201 = vtanh.f32 %v1468_v34  ;;  %v5449_v47 = vpop.f32.mrf.mxu1  ;;  %v2339_v48 = vpop.f32.mrf.mxu0 }
 0x27a   : > { %2710 = vst [vmem:[%s5413_s12 + $0x30] sm:$0xff] %v1889_v43  ;;  %v3661_v50 = vmul.f32 -1.442695, %v2338_v44  ;;  %v2340_v52 = vadd.f32 %v2339_v48, %v5408_v20  ;;  %v1498_v48 = vadd.f32 %v5479_v21, %v5374_v5 }
 0x27b   : > { %v1894_v53 = vpop.f32.mrf.mxu1  ;;  %3582 = vmatmul.mubr.msk.f32.gmra.mxu1 %vm938_vm0, %v4192_v49  ;;  %v2343_v55 = vpop.f32.mrf.mxu0  ;;  %3646 = vmatmul.mubr.msk.f32.gmra.mxu0 %vm938_vm0, %v4192_v49 }
 0x27c   : > { %4203 = vpow2.f32 %v3661_v50  ;;  %3286 = vst [vmem:[%s5413_s12 + $0x40] sm:$0xff] %v2340_v52  ;;  %v1895_v45 = vadd.f32 %v1894_v53, %v5398_v15  ;;  %v2344_v56 = vadd.f32 %v2343_v55, %v5401_v16  ;;  %2186 = vmatprep.mubr.f32.mxu1 %v4605_v42  ;;  %2635 = vmatprep.mubr.f32.mxu0 %v4605_v42 }
 0x27d   : > { %4205 = vtanh.f32 %v1473_v46  ;;  %v5462_v59 = vpop.f32.mrf.mxu1  ;;  %v2345_v61 = vpop.f32.mrf.mxu0  ;;  %v5513_v52 = vrot.slane %v5389_v12, %v1604_v37 }
 0x27e   : > { %2711 = vst [vmem:[%s5413_s12 + $0x48] sm:$0xff] %v1895_v45  ;;  %v3662_v63 = vmul.f32 -1.442695, %v2344_v56  ;;  %v2346_v1 = vadd.f32 %v2345_v61, %v5408_v20 }
 0x27f   : > { %v1900_v7 = vpop.f32.mrf.mxu1  ;;  %3583 = vmatmul.mubr.msk.f32.gmra.mxu1 %vm938_vm0, %v4194_v62  ;;  %v2349_v8 = vpop.f32.mrf.mxu0  ;;  %3647 = vmatmul.mubr.msk.f32.gmra.mxu0 %vm938_vm0, %v4194_v62 }
 0x280   : > { %4207 = vpow2.f32 %v3662_v63  ;;  %3287 = vst [vmem:[%s5413_s12 + $0x58] sm:$0xff] %v2346_v1  ;;  %v1901_v54 = vadd.f32 %v1900_v7, %v5398_v15  ;;  %v2350_v9 = vadd.f32 %v2349_v8, %v5401_v16  ;;  %2192 = vmatprep.mubr.f32.mxu1 %v4605_v42  ;;  %2641 = vmatprep.mubr.f32.mxu0 %v4605_v42 }
 0x281   : > { %v4196_v10 = vpop.eup %4195  ;;  %4209 = vtanh.f32 %v1478_v58  ;;  %v5475_v31 = vpop.f32.mrf.mxu1  ;;  %v1503_v63 = vadd.f32 %v5479_v21, %v5364_v0  ;;  %v1879_v8 = vadd.f32 %v5423_v3, %v5513_v52 }
 0x282   : > { %v2351_v51 = vpop.f32.mrf.mxu0  ;;  %v4198_v13 = vpop.eup %4197  ;;  %v2964_v14 = vadd.f32 1.0, %v4196_v10  ;;  %2712 = vst [vmem:[%s5413_s12 + $0x60] sm:$0xff] %v1901_v54  ;;  %v3663_v17 = vmul.f32 -1.442695, %v2350_v9  ;;  %4211 = vtanh.f32 %v1483_v4 }
 0x283   : > { %v2352_v19 = vadd.f32 %v2351_v51, %v5408_v20  ;;  %v1906_v23 = vpop.f32.mrf.mxu1  ;;  %3584 = vmatmul.mubr.msk.f32.gmra.mxu1 %vm938_vm0, %v4198_v13  ;;  %3648 = vmatmul.mubr.msk.f32.gmra.mxu0 %vm938_vm0, %v4198_v13 }
 0x284   : > { %v2355_v24 = vpop.f32.mrf.mxu0  ;;  %4213 = vrcp.f32 %v2964_v14  ;;  %v1907_v25 = vadd.f32 %v1906_v23, %v5398_v15  ;;  %2198 = vmatprep.mubr.f32.mxu1 %v4605_v42  ;;  %2647 = vmatprep.mubr.f32.mxu0 %v4605_v42 }
 0x285   : > { %3288 = vst [vmem:[%s5413_s12 + $0x70] sm:$0xff] %v2352_v19  ;;  %v2356_v26 = vadd.f32 %v2355_v24, %v5401_v16  ;;  %v4200_v27 = vpop.eup %4199  ;;  %4215 = vpow2.f32 %v3663_v17  ;;  %v5490_v60 = vpop.f32.mrf.mxu1  ;;  %v1508_v19 = vadd.f32 %v5479_v21, %v5405_v18 }
 0x286   : > { %v2357_v6 = vpop.f32.mrf.mxu0  ;;  %v4202_v28 = vpop.eup %4201  ;;  %v2965_v29 = vadd.f32 1.0, %v4200_v27  ;;  %2713 = vst [vmem:[%s5413_s12 + $0x78] sm:$0xff] %v1907_v25  ;;  %4217 = vtanh.f32 %v1488_v22 }
 0x287   : > { %v3664_v30 = vmul.f32 -1.442695, %v2356_v26  ;;  %v2358_v32 = vadd.f32 %v2357_v6, %v5408_v20  ;;  %v1912_v34 = vpop.f32.mrf.mxu1  ;;  %3585 = vmatmul.mubr.msk.f32.gmra.mxu1 %vm938_vm0, %v4202_v28  ;;  %3649 = vmatmul.mubr.msk.f32.gmra.mxu0 %vm938_vm0, %v4202_v28  ;;  %v1885_v26 = vadd.f32 %v5436_v35, %v5513_v52 }
 0x288   : > { %v2361_v36 = vpop.f32.mrf.mxu0  ;;  %4219 = vrcp.f32 %v2965_v29  ;;  %v1913_v38 = vadd.f32 %v1912_v34, %v5398_v15  ;;  %2204 = vmatprep.mubr.f32.mxu1 %v4605_v42  ;;  %2653 = vmatprep.mubr.f32.mxu0 %v4605_v42  ;;  %v1513_v34 = vadd.f32 %v5479_v21, %v5384_v11 }
 0x289   : > { %3289 = vst [vmem:[%s5413_s12 + $0x88] sm:$0xff] %v2358_v32  ;;  %v2362_v39 = vadd.f32 %v2361_v36, %v5401_v16  ;;  %v4204_v57 = vpop.eup %4203  ;;  %4221 = vpow2.f32 %v3664_v30  ;;  %v5504_v40 = vpop.f32.mrf.mxu1 }
 0x28a   : > { %v2363_v41 = vpop.f32.mrf.mxu0  ;;  %v4206_v43 = vpop.eup %4205  ;;  %v2966_v44 = vadd.f32 1.0, %v4204_v57  ;;  %2714 = vst [vmem:[%s5413_s12 + $0x90] sm:$0xff] %v1913_v38  ;;  %4223 = vtanh.f32 %v1493_v33  ;;  %v1891_v57 = vadd.f32 %v5449_v47, %v5513_v52 }
 0x28b   : > { %v3665_v2 = vmul.f32 -1.442695, %v2362_v39  ;;  %v2364_v46 = vadd.f32 %v2363_v41, %v5408_v20  ;;  %v1918_v49 = vpop.f32.mrf.mxu1  ;;  %3586 = vmatmul.mubr.msk.f32.gmra.mxu1 %vm938_vm0, %v4206_v43  ;;  %3650 = vmatmul.mubr.msk.f32.gmra.mxu0 %vm938_vm0, %v4206_v43 }
 0x28c   : > { %v2367_v50 = vpop.f32.mrf.mxu0  ;;  %4225 = vrcp.f32 %v2966_v44  ;;  %v1919_v53 = vadd.f32 %v1918_v49, %v5398_v15  ;;  %2210 = vmatprep.mubr.f32.mxu1 %v4605_v42  ;;  %2659 = vmatprep.mubr.f32.mxu0 %v4605_v42 }
 0x28d   : > { %3290 = vst [vmem:[%s5413_s12 + $0xa0] sm:$0xff] %v2364_v46  ;;  %v2368_v55 = vadd.f32 %v2367_v50, %v5401_v16  ;;  %v4208_v5 = vpop.eup %4207  ;;  %4227 = vpow2.f32 %v3665_v2  ;;  %v5520_v45 = vpop.f32.mrf.mxu1 }
 0x28e   : > { %v2369_v56 = vpop.f32.mrf.mxu0  ;;  %v4210_v58 = vpop.eup %4209  ;;  %v2967_v61 = vadd.f32 1.0, %v4208_v5  ;;  %2715 = vst [vmem:[%s5413_s12 + $0xa8] sm:$0xff] %v1919_v53  ;;  %4229 = vtanh.f32 %v1498_v48  ;;  %v1897_v5 = vadd.f32 %v5462_v59, %v5513_v52 }
 0x28f   : > { %v3666_v12 = vmul.f32 -1.442695, %v2368_v55  ;;  %v2370_v62 = vadd.f32 %v2369_v56, %v5408_v20  ;;  %v1924_v1 = vpop.f32.mrf.mxu1  ;;  %3587 = vmatmul.mubr.msk.f32.gmra.mxu1 %vm938_vm0, %v4210_v58  ;;  %3651 = vmatmul.mubr.msk.f32.gmra.mxu0 %vm938_vm0, %v4210_v58  ;;  %v4212_v7 = vpop.eup %4211 }
 0x290   : > { %v2373_v4 = vpop.f32.mrf.mxu0  ;;  %4231 = vrcp.f32 %v2967_v61  ;;  %v1925_v54 = vadd.f32 %v1924_v1, %v5398_v15  ;;  %2216 = vmatprep.mubr.f32.mxu1 %v4605_v42  ;;  %2665 = vmatprep.mubr.f32.mxu0 %v4605_v42 }
 0x291   : > { %3291 = vst [vmem:[%s5413_s12 + $0xb8] sm:$0xff] %v2370_v62  ;;  %v2374_v9 = vadd.f32 %v2373_v4, %v5401_v16  ;;  %v4214_v0 = vpop.eup %4213  ;;  %4233 = vpow2.f32 %v3666_v12  ;;  %v5535_v10 = vpop.f32.mrf.mxu1 }
 0x292   : > { %v2375_v51 = vpop.f32.mrf.mxu0  ;;  %v4216_v13 = vpop.eup %4215  ;;  %v3156_v14 = vmul.f32 %v4214_v0, %v1879_v8  ;;  %2716 = vst [vmem:[%s5413_s12 + $0xc0] sm:$0xff] %v1925_v54  ;;  %4235 = vtanh.f32 %v1503_v63 }
 0x293   : > { %v3667_v3 = vmul.f32 -1.442695, %v2374_v9  ;;  %v2376_v17 = vadd.f32 %v2375_v51, %v5408_v20  ;;  %v2968_v22 = vadd.f32 1.0, %v4216_v13  ;;  %v1930_v23 = vpop.f32.mrf.mxu1  ;;  %3588 = vmatmul.mubr.msk.f32.gmra.mxu1 %vm938_vm0, %v4212_v7  ;;  %3652 = vmatmul.mubr.msk.f32.gmra.mxu0 %vm938_vm0, %v4212_v7  ;;  %v4218_v25 = vpop.eup %4217 }
 0x294   : > { %v2379_v24 = vpop.f32.mrf.mxu0  ;;  %3220 = vst [vmem:[%s5413_s12 + $0x8] sm:$0xff] %v3156_v14  ;;  %v1931_v27 = vadd.f32 %v1930_v23, %v5398_v15  ;;  %2222 = vmatprep.mubr.f32.mxu1 %v4605_v42  ;;  %2671 = vmatprep.mubr.f32.mxu0 %v4605_v42  ;;  %v1903_v14 = vadd.f32 %v5475_v31, %v5513_v52 }
 0x295   : > { %4237 = vpow2.f32 %v3667_v3  ;;  %3292 = vst [vmem:[%s5413_s12 + $0xd0] sm:$0xff] %v2376_v17  ;;  %v2380_v6 = vadd.f32 %v2379_v24, %v5401_v16  ;;  %v4220_v18 = vpop.eup %4219  ;;  %v5551_v28 = vpop.f32.mrf.mxu1 }
 0x296   : > { %4239 = vrcp.f32 %v2968_v22  ;;  %v2381_v29 = vpop.f32.mrf.mxu0  ;;  %v4222_v30 = vpop.eup %4221  ;;  %v3157_v32 = vmul.f32 %v4220_v18, %v1885_v26  ;;  %2717 = vst [vmem:[%s5413_s12 + $0xd8] sm:$0xff] %v1931_v27 }
 0x297   : > { %v3668_v35 = vmul.f32 -1.442695, %v2380_v6  ;;  %v2382_v33 = vadd.f32 %v2381_v29, %v5408_v20  ;;  %4241 = vtanh.f32 %v1508_v19  ;;  %v2969_v36 = vadd.f32 1.0, %v4222_v30  ;;  %v1936_v37 = vpop.f32.mrf.mxu1  ;;  %3589 = vmatmul.mubr.msk.f32.gmra.mxu1 %vm938_vm0, %v4218_v25  ;;  %3653 = vmatmul.mubr.msk.f32.gmra.mxu0 %vm938_vm0, %v4218_v25  ;;  %v4224_v39 = vpop.eup %4223 }
 0x298   : > { %v2385_v38 = vpop.f32.mrf.mxu0  ;;  %3221 = vst [vmem:[%s5413_s12 + $0x20] sm:$0xff] %v3157_v32  ;;  %v1937_v41 = vadd.f32 %v1936_v37, %v5398_v15  ;;  %2228 = vmatprep.mubr.f32.mxu1 %v4605_v42  ;;  %2677 = vmatprep.mubr.f32.mxu0 %v4605_v42  ;;  %v1909_v30 = vadd.f32 %v5490_v60, %v5513_v52 }
 0x299   : > { %4243 = vpow2.f32 %v3668_v35  ;;  %3293 = vst [vmem:[%s5413_s12 + $0xe8] sm:$0xff] %v2382_v33  ;;  %v2386_v11 = vadd.f32 %v2385_v38, %v5401_v16  ;;  %v4226_v21 = vpop.eup %4225  ;;  %v5567_v43 = vpop.f32.mrf.mxu1 }
 0x29a   : > { %4245 = vrcp.f32 %v2969_v36  ;;  %v2387_v44 = vpop.f32.mrf.mxu0  ;;  %v4228_v2 = vpop.eup %4227  ;;  %v3158_v46 = vmul.f32 %v4226_v21, %v1891_v57  ;;  %2718 = vst [vmem:[%s5413_s12 + $0xf0] sm:$0xff] %v1937_v41 }
 0x29b   : > { %v3669_v47 = vmul.f32 -1.442695, %v2386_v11  ;;  %v2388_v48 = vadd.f32 %v2387_v44, %v5408_v20  ;;  %4247 = vtanh.f32 %v1513_v34  ;;  %v2970_v49 = vadd.f32 1.0, %v4228_v2  ;;  %v1942_v50 = vpop.f32.mrf.mxu1  ;;  %3590 = vmatmul.mubr.msk.f32.gmra.mxu1 %vm938_vm0, %v4224_v39  ;;  %3654 = vmatmul.mubr.msk.f32.gmra.mxu0 %vm938_vm0, %v4224_v39  ;;  %v4230_v55 = vpop.eup %4229 }
 0x29c   : > { %v2391_v53 = vpop.f32.mrf.mxu0  ;;  %3222 = vst [vmem:[%s5413_s12 + $0x38] sm:$0xff] %v3158_v46  ;;  %v1943_v56 = vadd.f32 %v1942_v50, %v5398_v15  ;;  %2234 = vmatprep.mubr.f32.mxu1 %v4605_v42  ;;  %2683 = vmatprep.mubr.f32.mxu0 %v4605_v42  ;;  %v1915_v44 = vadd.f32 %v5504_v40, %v5513_v52 }
 0x29d   : > { %4249 = vpow2.f32 %v3669_v47  ;;  %3294 = vst [vmem:[%s5413_s12 + $0x100] sm:$0xff] %v2388_v48  ;;  %v2392_v58 = vadd.f32 %v2391_v53, %v5401_v16  ;;  %v4232_v61 = vpop.eup %4231  ;;  %v5581_v12 = vpop.f32.mrf.mxu1 }
 0x29e   : > { %4251 = vrcp.f32 %v2970_v49  ;;  %v2393_v62 = vpop.f32.mrf.mxu0  ;;  %v4234_v63 = vpop.eup %4233  ;;  %v3159_v1 = vmul.f32 %v4232_v61, %v1897_v5  ;;  %2719 = vst [vmem:[%s5413_s12 + $0x108] sm:$0xff] %v1943_v56 }
 0x29f   : > { %v3670_v59 = vmul.f32 -1.442695, %v2392_v58  ;;  %v2394_v4 = vadd.f32 %v2393_v62, %v5408_v20  ;;  %v2971_v7 = vadd.f32 1.0, %v4234_v63  ;;  %v1948_v8 = vpop.f32.mrf.mxu1  ;;  %3591 = vmatmul.mubr.msk.f32.gmra.mxu1 %vm938_vm0, %v4230_v55  ;;  %3655 = vmatmul.mubr.msk.f32.gmra.mxu0 %vm938_vm0, %v4230_v55  ;;  %v4236_v9 = vpop.eup %4235  ;;  %v1921_v58 = vadd.f32 %v5520_v45, %v5513_v52 }
 0x2a0   : > { %v2397_v54 = vpop.f32.mrf.mxu0  ;;  %3223 = vst [vmem:[%s5413_s12 + $0x50] sm:$0xff] %v3159_v1  ;;  %v1949_v0 = vadd.f32 %v1948_v8, %v5398_v15  ;;  %2240 = vmatprep.mubr.f32.mxu1 %v4605_v42  ;;  %2689 = vmatprep.mubr.f32.mxu0 %v4605_v42 }
 0x2a1   : > { %4253 = vpow2.f32 %v3670_v59  ;;  %3295 = vst [vmem:[%s5413_s12 + $0x118] sm:$0xff] %v2394_v4  ;;  %v2398_v51 = vadd.f32 %v2397_v54, %v5401_v16  ;;  %v5595_v3 = vpop.f32.mrf.mxu1 }
 0x2a2   : > { %v4238_v13 = vpop.eup %4237  ;;  %4255 = vrcp.f32 %v2971_v7  ;;  %v2399_v17 = vpop.f32.mrf.mxu0  ;;  %2720 = vst [vmem:[%s5413_s12 + $0x120] sm:$0xff] %v1949_v0 }
 0x2a3   : > { %v4240_v19 = vpop.eup %4239  ;;  %v2972_v22 = vadd.f32 1.0, %v4238_v13  ;;  %v3671_v23 = vmul.f32 -1.442695, %v2398_v51  ;;  %v2400_v24 = vadd.f32 %v2399_v17, %v5408_v20  ;;  %v1954_v26 = vpop.f32.mrf.mxu1  ;;  %3592 = vmatmul.mubr.msk.f32.gmra.mxu1 %vm938_vm0, %v4236_v9  ;;  %3656 = vmatmul.mubr.msk.f32.gmra.mxu0 %vm938_vm0, %v4236_v9  ;;  %v1927_v9 = vadd.f32 %v5535_v10, %v5513_v52 }
 0x2a4   : > { %v3160_v25 = vmul.f32 %v4240_v19, %v1903_v14  ;;  %v2403_v27 = vpop.f32.mrf.mxu0  ;;  %v4242_v31 = vpop.eup %4241  ;;  %v1955_v6 = vadd.f32 %v1954_v26, %v5398_v15  ;;  %2246 = vmatprep.mubr.f32.mxu1 %v4605_v42  ;;  %2695 = vmatprep.mubr.f32.mxu0 %v4605_v42  ;;  %v1933_v26 = vadd.f32 %v5551_v28, %v5513_v52 }
 0x2a5   : > { %4257 = vrcp.f32 %v2972_v22  ;;  %3296 = vst [vmem:[%s5413_s12 + $0x130] sm:$0xff] %v2400_v24  ;;  %v2404_v18 = vadd.f32 %v2403_v27, %v5401_v16  ;;  %v5609_v32 = vpop.f32.mrf.mxu1 }
 0x2a6   : > { %v4244_v29 = vpop.eup %4243  ;;  %3224 = vst [vmem:[%s5413_s12 + $0x68] sm:$0xff] %v3160_v25  ;;  %4259 = vpow2.f32 %v3671_v23  ;;  %v2405_v35 = vpop.f32.mrf.mxu0  ;;  %2721 = vst [vmem:[%s5413_s12 + $0x138] sm:$0xff] %v1955_v6 }
 0x2a7   : > { %v4246_v33 = vpop.eup %4245  ;;  %v2973_v34 = vadd.f32 1.0, %v4244_v29  ;;  %v3672_v36 = vmul.f32 -1.442695, %v2404_v18  ;;  %v2406_v37 = vadd.f32 %v2405_v35, %v5408_v20  ;;  %v1960_v39 = vpop.f32.mrf.mxu1  ;;  %3593 = vmatmul.mubr.msk.f32.gmra.mxu1 %vm938_vm0, %v4242_v31  ;;  %3657 = vmatmul.mubr.msk.f32.gmra.mxu0 %vm938_vm0, %v4242_v31 }
 0x2a8   : > { %v3161_v38 = vmul.f32 %v4246_v33, %v1909_v30  ;;  %v2409_v57 = vpop.f32.mrf.mxu0  ;;  %v4248_v60 = vpop.eup %4247  ;;  %v1961_v41 = vadd.f32 %v1960_v39, %v5398_v15  ;;  %2252 = vmatprep.mubr.f32.mxu1 %v4605_v42  ;;  %2701 = vmatprep.mubr.f32.mxu0 %v4605_v42 }
 0x2a9   : > { %4261 = vrcp.f32 %v2973_v34  ;;  %3297 = vst [vmem:[%s5413_s12 + $0x148] sm:$0xff] %v2406_v37  ;;  %v2410_v11 = vadd.f32 %v2409_v57, %v5401_v16  ;;  %v5623_v2 = vpop.f32.mrf.mxu1 }
 0x2aa   : > { %v4250_v21 = vpop.eup %4249  ;;  %3225 = vst [vmem:[%s5413_s12 + $0x80] sm:$0xff] %v3161_v38  ;;  %4263 = vpow2.f32 %v3672_v36  ;;  %v2411_v46 = vpop.f32.mrf.mxu0  ;;  %2722 = vst [vmem:[%s5413_s12 + $0x150] sm:$0xff] %v1961_v41  ;;  %v1939_v38 = vadd.f32 %v5567_v43, %v5513_v52 }
 0x2ab   : > { %v4252_v47 = vpop.eup %4251  ;;  %v2974_v48 = vadd.f32 1.0, %v4250_v21  ;;  %v3673_v49 = vmul.f32 -1.442695, %v2410_v11  ;;  %v2412_v50 = vadd.f32 %v2411_v46, %v5408_v20  ;;  %v1966_v55 = vpop.f32.mrf.mxu1  ;;  %3594 = vmatmul.mubr.msk.f32.gmra.mxu1 %vm938_vm0, %v4248_v60  ;;  %3658 = vmatmul.mubr.msk.f32.gmra.mxu0 %vm938_vm0, %v4248_v60 }
 0x2ac   : > { %v3162_v53 = vmul.f32 %v4252_v47, %v1915_v44  ;;  %v2415_v42 = vpop.f32.mrf.mxu0  ;;  %v1967_v40 = vadd.f32 %v1966_v55, %v5398_v15 }
 0x2ad   : > { %4265 = vrcp.f32 %v2974_v48  ;;  %3298 = vst [vmem:[%s5413_s12 + $0x160] sm:$0xff] %v2412_v50  ;;  %v2416_v5 = vadd.f32 %v2415_v42, %v5401_v16  ;;  %v5635_v61 = vpop.f32.mrf.mxu1  ;;  %v1945_v50 = vadd.f32 %v5581_v12, %v5513_v52 }
 0x2ae   : > { %v4254_v56 = vpop.eup %4253  ;;  %3226 = vst [vmem:[%s5413_s12 + $0x98] sm:$0xff] %v3162_v53  ;;  %4267 = vpow2.f32 %v3673_v49  ;;  %v2417_v62 = vpop.f32.mrf.mxu0  ;;  %2723 = vst [vmem:[%s5413_s12 + $0x168] sm:$0xff] %v1967_v40 }
 0x2af   : > { %v4256_v63 = vpop.eup %4255  ;;  %v2975_v1 = vadd.f32 1.0, %v4254_v56  ;;  %v3674_v59 = vmul.f32 -1.442695, %v2416_v5  ;;  %v2418_v4 = vadd.f32 %v2417_v62, %v5408_v20  ;;  %v1972_v8 = vpop.f32.mrf.mxu1 }
 0x2b0   : > { %v3163_v7 = vmul.f32 %v4256_v63, %v1921_v58  ;;  %v2421_v54 = vpop.f32.mrf.mxu0  ;;  %v1973_v45 = vadd.f32 %v1972_v8, %v5398_v15 }
 0x2b1   : > { %4269 = vrcp.f32 %v2975_v1  ;;  %3299 = vst [vmem:[%s5413_s12 + $0x178] sm:$0xff] %v2418_v4  ;;  %v2422_v0 = vadd.f32 %v2421_v54, %v5401_v16  ;;  %v5645_v13 = vpop.f32.mrf.mxu1  ;;  %v1951_v54 = vadd.f32 %v5595_v3, %v5513_v52 }
 0x2b2   : > { %v4258_v51 = vpop.eup %4257  ;;  %3227 = vst [vmem:[%s5413_s12 + $0xb0] sm:$0xff] %v3163_v7  ;;  %4271 = vpow2.f32 %v3674_v59  ;;  %v2423_v14 = vpop.f32.mrf.mxu0  ;;  %2724 = vst [vmem:[%s5413_s12 + $0x180] sm:$0xff] %v1973_v45 }
 0x2b3   : > { %v4260_v17 = vpop.eup %4259  ;;  %v3164_v19 = vmul.f32 %v4258_v51, %v1927_v9  ;;  %v3675_v22 = vmul.f32 -1.442695, %v2422_v0  ;;  %v2424_v10 = vadd.f32 %v2423_v14, %v5408_v20  ;;  %v1978_v24 = vpop.f32.mrf.mxu1 }
 0x2b4   : > { %v2976_v23 = vadd.f32 1.0, %v4260_v17  ;;  %v2427_v25 = vpop.f32.mrf.mxu0  ;;  %v1979_v27 = vadd.f32 %v1978_v24, %v5398_v15 }
 0x2b5   : > { %3228 = vst [vmem:[%s5413_s12 + $0xc8] sm:$0xff] %v3164_v19  ;;  %4273 = vpow2.f32 %v3675_v22  ;;  %3300 = vst [vmem:[%s5413_s12 + $0x190] sm:$0xff] %v2424_v10  ;;  %v2428_v31 = vadd.f32 %v2427_v25, %v5401_v16  ;;  %v5655_v18 = vpop.f32.mrf.mxu1  ;;  %v1957_v25 = vadd.f32 %v5609_v32, %v5513_v52 }
 0x2b6   : > { %v4262_v6 = vpop.eup %4261  ;;  %4275 = vrcp.f32 %v2976_v23  ;;  %v2429_v29 = vpop.f32.mrf.mxu0  ;;  %2725 = vst [vmem:[%s5413_s12 + $0x198] sm:$0xff] %v1979_v27 }
 0x2b7   : > { %v4264_v30 = vpop.eup %4263  ;;  %v3165_v35 = vmul.f32 %v4262_v6, %v1933_v26  ;;  %v3676_v33 = vmul.f32 -1.442695, %v2428_v31  ;;  %v2430_v34 = vadd.f32 %v2429_v29, %v5408_v20  ;;  %v1984_v36 = vpop.f32.mrf.mxu1 }
 0x2b8   : > { %v2977_v28 = vadd.f32 1.0, %v4264_v30  ;;  %v2433_v37 = vpop.f32.mrf.mxu0  ;;  %v1985_v39 = vadd.f32 %v1984_v36, %v5398_v15 }
 0x2b9   : > { %3229 = vst [vmem:[%s5413_s12 + $0xe0] sm:$0xff] %v3165_v35  ;;  %4277 = vpow2.f32 %v3676_v33  ;;  %3301 = vst [vmem:[%s5413_s12 + $0x1a8] sm:$0xff] %v2430_v34  ;;  %v2434_v57 = vadd.f32 %v2433_v37, %v5401_v16  ;;  %v5665_v41 = vpop.f32.mrf.mxu1  ;;  %v1963_v37 = vadd.f32 %v5623_v2, %v5513_v52 }
 0x2ba   : > { %v4266_v60 = vpop.eup %4265  ;;  %4279 = vrcp.f32 %v2977_v28  ;;  %v2435_v11 = vpop.f32.mrf.mxu0  ;;  %2726 = vst [vmem:[%s5413_s12 + $0x1b0] sm:$0xff] %v1985_v39 }
 0x2bb   : > { %v4268_v21 = vpop.eup %4267  ;;  %v3166_v44 = vmul.f32 %v4266_v60, %v1939_v38  ;;  %v3677_v46 = vmul.f32 -1.442695, %v2434_v57  ;;  %v2436_v47 = vadd.f32 %v2435_v11, %v5408_v20  ;;  %v1990_v48 = vpop.f32.mrf.mxu1 }
 0x2bc   : > { %v2978_v43 = vadd.f32 1.0, %v4268_v21  ;;  %v2439_v49 = vpop.f32.mrf.mxu0  ;;  %v1991_v53 = vadd.f32 %v1990_v48, %v5398_v15 }
 0x2bd   : > { %3230 = vst [vmem:[%s5413_s12 + $0xf8] sm:$0xff] %v3166_v44  ;;  %4281 = vpow2.f32 %v3677_v46  ;;  %3302 = vst [vmem:[%s5413_s12 + $0x1c0] sm:$0xff] %v2436_v47  ;;  %v2440_v55 = vadd.f32 %v2439_v49, %v5401_v16  ;;  %v5675_v40 = vpop.f32.mrf.mxu1  ;;  %v1969_v49 = vadd.f32 %v5635_v61, %v5513_v52 }
 0x2be   : > { %v4270_v42 = vpop.eup %4269  ;;  %4283 = vrcp.f32 %v2978_v43  ;;  %v2441_v5 = vpop.f32.mrf.mxu0  ;;  %2727 = vst [vmem:[%s5413_s12 + $0x1c8] sm:$0xff] %v1991_v53 }
 0x2bf   : > { %v4272_v56 = vpop.eup %4271  ;;  %v3167_v58 = vmul.f32 %v4270_v42, %v1945_v50  ;;  %v3678_v62 = vmul.f32 -1.442695, %v2440_v55  ;;  %v2442_v63 = vadd.f32 %v2441_v5, %v5408_v20  ;;  %v1996_v1 = vpop.f32.mrf.mxu1 }
 0x2c0   : > { %v2979_v12 = vadd.f32 1.0, %v4272_v56  ;;  %v2445_v59 = vpop.f32.mrf.mxu0  ;;  %v1997_v4 = vadd.f32 %v1996_v1, %v5398_v15 }
 0x2c1   : > { %3231 = vst [vmem:[%s5413_s12 + $0x110] sm:$0xff] %v3167_v58  ;;  %4285 = vpow2.f32 %v3678_v62  ;;  %3303 = vst [vmem:[%s5413_s12 + $0x1d8] sm:$0xff] %v2442_v63  ;;  %v2446_v7 = vadd.f32 %v2445_v59, %v5401_v16  ;;  %v5685_v9 = vpop.f32.mrf.mxu1 }
 0x2c2   : > { %v4274_v8 = vpop.eup %4273  ;;  %4287 = vrcp.f32 %v2979_v12  ;;  %v2447_v45 = vpop.f32.mrf.mxu0  ;;  %2728 = vst [vmem:[%s5413_s12 + $0x1e0] sm:$0xff] %v1997_v4  ;;  %v1975_v12 = vadd.f32 %v5645_v13, %v5513_v52 }
 0x2c3   : > { %v4276_v0 = vpop.eup %4275  ;;  %v2980_v51 = vadd.f32 1.0, %v4274_v8  ;;  %v3679_v14 = vmul.f32 -1.442695, %v2446_v7  ;;  %v2448_v17 = vadd.f32 %v2447_v45, %v5408_v20  ;;  %v2002_v22 = vpop.f32.mrf.mxu1 }
 0x2c4   : > { %v3168_v19 = vmul.f32 %v4276_v0, %v1951_v54  ;;  %v2451_v10 = vpop.f32.mrf.mxu0  ;;  %v2003_v23 = vadd.f32 %v2002_v22, %v5398_v15 }
 0x2c5   : > { %4289 = vrcp.f32 %v2980_v51  ;;  %3304 = vst [vmem:[%s5413_s12 + $0x1f0] sm:$0xff] %v2448_v17  ;;  %v2452_v3 = vadd.f32 %v2451_v10, %v5401_v16  ;;  %v5695_v26 = vpop.f32.mrf.mxu1  ;;  %v1981_v17 = vadd.f32 %v5655_v18, %v5513_v52 }
 0x2c6   : > { %v4278_v24 = vpop.eup %4277  ;;  %3232 = vst [vmem:[%s5413_s12 + $0x128] sm:$0xff] %v3168_v19  ;;  %4291 = vpow2.f32 %v3679_v14  ;;  %v2453_v27 = vpop.f32.mrf.mxu0  ;;  %2729 = vst [vmem:[%s5413_s12 + $0x1f8] sm:$0xff] %v2003_v23 }
 0x2c7   : > { %v4280_v31 = vpop.eup %4279  ;;  %v2981_v6 = vadd.f32 1.0, %v4278_v24  ;;  %v3680_v29 = vmul.f32 -1.442695, %v2452_v3  ;;  %v2454_v30 = vadd.f32 %v2453_v27, %v5408_v20  ;;  %v2008_v33 = vpop.f32.mrf.mxu1 }
 0x2c8   : > { %v3169_v35 = vmul.f32 %v4280_v31, %v1957_v25  ;;  %v2457_v34 = vpop.f32.mrf.mxu0  ;;  %v2009_v28 = vadd.f32 %v2008_v33, %v5398_v15 }
 0x2c9   : > { %4293 = vrcp.f32 %v2981_v6  ;;  %3305 = vst [vmem:[%s5413_s12 + $0x208] sm:$0xff] %v2454_v30  ;;  %v2458_v32 = vadd.f32 %v2457_v34, %v5401_v16  ;;  %v5705_v38 = vpop.f32.mrf.mxu1  ;;  %v1987_v30 = vadd.f32 %v5665_v41, %v5513_v52 }
 0x2ca   : > { %v4282_v36 = vpop.eup %4281  ;;  %3233 = vst [vmem:[%s5413_s12 + $0x140] sm:$0xff] %v3169_v35  ;;  %4295 = vpow2.f32 %v3680_v29  ;;  %v2459_v39 = vpop.f32.mrf.mxu0  ;;  %2730 = vst [vmem:[%s5413_s12 + $0x210] sm:$0xff] %v2009_v28 }
 0x2cb   : > { %v4284_v57 = vpop.eup %4283  ;;  %v2982_v60 = vadd.f32 1.0, %v4282_v36  ;;  %v3681_v11 = vmul.f32 -1.442695, %v2458_v32  ;;  %v2460_v21 = vadd.f32 %v2459_v39, %v5408_v20  ;;  %v2014_v46 = vpop.f32.mrf.mxu1 }
 0x2cc   : > { %v3170_v44 = vmul.f32 %v4284_v57, %v1963_v37  ;;  %v2463_v47 = vpop.f32.mrf.mxu0  ;;  %v2015_v43 = vadd.f32 %v2014_v46, %v5398_v15 }
 0x2cd   : > { %4297 = vrcp.f32 %v2982_v60  ;;  %3306 = vst [vmem:[%s5413_s12 + $0x220] sm:$0xff] %v2460_v21  ;;  %v2464_v2 = vadd.f32 %v2463_v47, %v5401_v16  ;;  %v5715_v50 = vpop.f32.mrf.mxu1  ;;  %v1993_v21 = vadd.f32 %v5675_v40, %v5513_v52 }
 0x2ce   : > { %v4286_v48 = vpop.eup %4285  ;;  %3234 = vst [vmem:[%s5413_s12 + $0x158] sm:$0xff] %v3170_v44  ;;  %4299 = vpow2.f32 %v3681_v11  ;;  %v2465_v53 = vpop.f32.mrf.mxu0  ;;  %2731 = vst [vmem:[%s5413_s12 + $0x228] sm:$0xff] %v2015_v43 }
 0x2cf   : > { %v4288_v55 = vpop.eup %4287  ;;  %v2983_v42 = vadd.f32 1.0, %v4286_v48  ;;  %v3682_v5 = vmul.f32 -1.442695, %v2464_v2  ;;  %v2466_v56 = vadd.f32 %v2465_v53, %v5408_v20  ;;  %v2020_v62 = vpop.f32.mrf.mxu1 }
 0x2d0   : > { %v3171_v58 = vmul.f32 %v4288_v55, %v1969_v49  ;;  %v2469_v63 = vpop.f32.mrf.mxu0  ;;  %v2021_v61 = vadd.f32 %v2020_v62, %v5398_v15 }
 0x2d1   : > { %4301 = vrcp.f32 %v2983_v42  ;;  %3307 = vst [vmem:[%s5413_s12 + $0x238] sm:$0xff] %v2466_v56  ;;  %v2470_v1 = vadd.f32 %v2469_v63, %v5401_v16  ;;  %v5725_v4 = vpop.f32.mrf.mxu1  ;;  %v1999_v63 = vadd.f32 %v5685_v9, %v5513_v52 }
 0x2d2   : > { %v4290_v59 = vpop.eup %4289  ;;  %3235 = vst [vmem:[%s5413_s12 + $0x170] sm:$0xff] %v3171_v58  ;;  %4303 = vpow2.f32 %v3682_v5  ;;  %v2471_v7 = vpop.f32.mrf.mxu0  ;;  %2732 = vst [vmem:[%s5413_s12 + $0x240] sm:$0xff] %v2021_v61 }
 0x2d3   : > { %v4292_v8 = vpop.eup %4291  ;;  %v3172_v54 = vmul.f32 %v4290_v59, %v1975_v12  ;;  %v3683_v45 = vmul.f32 -1.442695, %v2470_v1  ;;  %v2472_v13 = vadd.f32 %v2471_v7, %v5408_v20  ;;  %v2026_v51 = vpop.f32.mrf.mxu1 }
 0x2d4   : > { %v2984_v0 = vadd.f32 1.0, %v4292_v8  ;;  %v2475_v14 = vpop.f32.mrf.mxu0  ;;  %v2027_v19 = vadd.f32 %v2026_v51, %v5398_v15 }
 0x2d5   : > { %3236 = vst [vmem:[%s5413_s12 + $0x188] sm:$0xff] %v3172_v54  ;;  %4305 = vpow2.f32 %v3683_v45  ;;  %3308 = vst [vmem:[%s5413_s12 + $0x250] sm:$0xff] %v2472_v13  ;;  %v2476_v22 = vadd.f32 %v2475_v14, %v5401_v16  ;;  %v5735_v23 = vpop.f32.mrf.mxu1  ;;  %v2005_v14 = vadd.f32 %v5695_v26, %v5513_v52 }
 0x2d6   : > { %v4294_v10 = vpop.eup %4293  ;;  %4307 = vrcp.f32 %v2984_v0  ;;  %v2477_v3 = vpop.f32.mrf.mxu0  ;;  %2733 = vst [vmem:[%s5413_s12 + $0x258] sm:$0xff] %v2027_v19 }
 0x2d7   : > { %v4296_v24 = vpop.eup %4295  ;;  %v3173_v25 = vmul.f32 %v4294_v10, %v1981_v17  ;;  %v3684_v27 = vmul.f32 -1.442695, %v2476_v22  ;;  %v2478_v31 = vadd.f32 %v2477_v3, %v5408_v20  ;;  %v2032_v6 = vpop.f32.mrf.mxu1 }
 0x2d8   : > { %v2985_v18 = vadd.f32 1.0, %v4296_v24  ;;  %v2481_v29 = vpop.f32.mrf.mxu0  ;;  %v2033_v35 = vadd.f32 %v2032_v6, %v5398_v15 }
 0x2d9   : > { %3237 = vst [vmem:[%s5413_s12 + $0x1a0] sm:$0xff] %v3173_v25  ;;  %4309 = vpow2.f32 %v3684_v27  ;;  %3309 = vst [vmem:[%s5413_s12 + $0x268] sm:$0xff] %v2478_v31  ;;  %v2482_v33 = vadd.f32 %v2481_v29, %v5401_v16  ;;  %v5745_v28 = vpop.f32.mrf.mxu1  ;;  %v2011_v29 = vadd.f32 %v5705_v38, %v5513_v52 }
 0x2da   : > { %v4298_v34 = vpop.eup %4297  ;;  %4311 = vrcp.f32 %v2985_v18  ;;  %v2483_v32 = vpop.f32.mrf.mxu0  ;;  %2734 = vst [vmem:[%s5413_s12 + $0x270] sm:$0xff] %v2033_v35 }
 0x2db   : > { %v4300_v36 = vpop.eup %4299  ;;  %v3174_v37 = vmul.f32 %v4298_v34, %v1987_v30  ;;  %v3685_v39 = vmul.f32 -1.442695, %v2482_v33  ;;  %v2484_v57 = vadd.f32 %v2483_v32, %v5408_v20  ;;  %v2038_v60 = vpop.f32.mrf.mxu1 }
 0x2dc   : > { %v2986_v41 = vadd.f32 1.0, %v4300_v36  ;;  %v2487_v11 = vpop.f32.mrf.mxu0  ;;  %v2039_v44 = vadd.f32 %v2038_v60, %v5398_v15 }
 0x2dd   : > { %3238 = vst [vmem:[%s5413_s12 + $0x1b8] sm:$0xff] %v3174_v37  ;;  %4313 = vpow2.f32 %v3685_v39  ;;  %3310 = vst [vmem:[%s5413_s12 + $0x280] sm:$0xff] %v2484_v57  ;;  %v2488_v46 = vadd.f32 %v2487_v11, %v5401_v16  ;;  %v5755_v43 = vpop.f32.mrf.mxu1  ;;  %v2017_v11 = vadd.f32 %v5715_v50, %v5513_v52 }
 0x2de   : > { %v4302_v47 = vpop.eup %4301  ;;  %4315 = vrcp.f32 %v2986_v41  ;;  %v2489_v2 = vpop.f32.mrf.mxu0  ;;  %2735 = vst [vmem:[%s5413_s12 + $0x288] sm:$0xff] %v2039_v44 }
 0x2df   : > { %v4304_v48 = vpop.eup %4303  ;;  %v3175_v49 = vmul.f32 %v4302_v47, %v1993_v21  ;;  %v3686_v53 = vmul.f32 -1.442695, %v2488_v46  ;;  %v2490_v55 = vadd.f32 %v2489_v2, %v5408_v20  ;;  %v2044_v42 = vpop.f32.mrf.mxu1 }
 0x2e0   : > { %v2987_v40 = vadd.f32 1.0, %v4304_v48  ;;  %v2493_v5 = vpop.f32.mrf.mxu0  ;;  %v2045_v56 = vadd.f32 %v2044_v42, %v5398_v15 }
 0x2e1   : > { %3239 = vst [vmem:[%s5413_s12 + $0x1d0] sm:$0xff] %v3175_v49  ;;  %4317 = vpow2.f32 %v3686_v53  ;;  %3311 = vst [vmem:[%s5413_s12 + $0x298] sm:$0xff] %v2490_v55  ;;  %v2494_v58 = vadd.f32 %v2493_v5, %v5401_v16  ;;  %v5765_v12 = vpop.f32.mrf.mxu1 }
 0x2e2   : > { %v4306_v62 = vpop.eup %4305  ;;  %4319 = vrcp.f32 %v2987_v40  ;;  %v2495_v61 = vpop.f32.mrf.mxu0  ;;  %2736 = vst [vmem:[%s5413_s12 + $0x2a0] sm:$0xff] %v2045_v56  ;;  %v2023_v40 = vadd.f32 %v5725_v4, %v5513_v52 }
 0x2e3   : > { %v4308_v1 = vpop.eup %4307  ;;  %v2988_v59 = vadd.f32 1.0, %v4306_v62  ;;  %v3687_v7 = vmul.f32 -1.442695, %v2494_v58  ;;  %v2496_v8 = vadd.f32 %v2495_v61, %v5408_v20  ;;  %v2050_v45 = vpop.f32.mrf.mxu1 }
 0x2e4   : > { %v3176_v54 = vmul.f32 %v4308_v1, %v1999_v63  ;;  %v2499_v13 = vpop.f32.mrf.mxu0  ;;  %v2051_v0 = vadd.f32 %v2050_v45, %v5398_v15 }
 0x2e5   : > { %4321 = vrcp.f32 %v2988_v59  ;;  %3312 = vst [vmem:[%s5413_s12 + $0x2b0] sm:$0xff] %v2496_v8  ;;  %v2500_v9 = vadd.f32 %v2499_v13, %v5401_v16  ;;  %v5775_v17 = vpop.f32.mrf.mxu1  ;;  %v2029_v8 = vadd.f32 %v5735_v23, %v5513_v52 }
 0x2e6   : > { %v4310_v51 = vpop.eup %4309  ;;  %3240 = vst [vmem:[%s5413_s12 + $0x1e8] sm:$0xff] %v3176_v54  ;;  %4323 = vpow2.f32 %v3687_v7  ;;  %v2501_v19 = vpop.f32.mrf.mxu0  ;;  %2737 = vst [vmem:[%s5413_s12 + $0x2b8] sm:$0xff] %v2051_v0 }
 0x2e7   : > { %v4312_v22 = vpop.eup %4311  ;;  %v2989_v10 = vadd.f32 1.0, %v4310_v51  ;;  %v3688_v3 = vmul.f32 -1.442695, %v2500_v9  ;;  %v2502_v24 = vadd.f32 %v2501_v19, %v5408_v20  ;;  %v2056_v27 = vpop.f32.mrf.mxu1 }
 0x2e8   : > { %v3177_v25 = vmul.f32 %v4312_v22, %v2005_v14  ;;  %v2505_v31 = vpop.f32.mrf.mxu0  ;;  %v2057_v18 = vadd.f32 %v2056_v27, %v5398_v15 }
 0x2e9   : > { %4325 = vrcp.f32 %v2989_v10  ;;  %3313 = vst [vmem:[%s5413_s12 + $0x2c8] sm:$0xff] %v2502_v24  ;;  %v2506_v26 = vadd.f32 %v2505_v31, %v5401_v16  ;;  %v5785_v30 = vpop.f32.mrf.mxu1  ;;  %v2035_v24 = vadd.f32 %v5745_v28, %v5513_v52 }
 0x2ea   : > { %v4314_v6 = vpop.eup %4313  ;;  %3241 = vst [vmem:[%s5413_s12 + $0x200] sm:$0xff] %v3177_v25  ;;  %4327 = vpow2.f32 %v3688_v3  ;;  %v2507_v35 = vpop.f32.mrf.mxu0  ;;  %2738 = vst [vmem:[%s5413_s12 + $0x2d0] sm:$0xff] %v2057_v18 }
 0x2eb   : > { %v4316_v33 = vpop.eup %4315  ;;  %v2990_v34 = vadd.f32 1.0, %v4314_v6  ;;  %v3689_v32 = vmul.f32 -1.442695, %v2506_v26  ;;  %v2508_v36 = vadd.f32 %v2507_v35, %v5408_v20  ;;  %v2062_v39 = vpop.f32.mrf.mxu1 }
 0x2ec   : > { %v3178_v37 = vmul.f32 %v4316_v33, %v2011_v29  ;;  %v2511_v57 = vpop.f32.mrf.mxu0  ;;  %v2063_v41 = vadd.f32 %v2062_v39, %v5398_v15 }
 0x2ed   : > { %4329 = vrcp.f32 %v2990_v34  ;;  %3314 = vst [vmem:[%s5413_s12 + $0x2e0] sm:$0xff] %v2508_v36  ;;  %v2512_v38 = vadd.f32 %v2511_v57, %v5401_v16  ;;  %v5795_v21 = vpop.f32.mrf.mxu1  ;;  %v2041_v36 = vadd.f32 %v5755_v43, %v5513_v52 }
 0x2ee   : > { %v4318_v60 = vpop.eup %4317  ;;  %3242 = vst [vmem:[%s5413_s12 + $0x218] sm:$0xff] %v3178_v37  ;;  %4331 = vpow2.f32 %v3689_v32  ;;  %v2513_v44 = vpop.f32.mrf.mxu0  ;;  %2739 = vst [vmem:[%s5413_s12 + $0x2e8] sm:$0xff] %v2063_v41 }
 0x2ef   : > { %v4320_v46 = vpop.eup %4319  ;;  %v2991_v47 = vadd.f32 1.0, %v4318_v60  ;;  %v3690_v2 = vmul.f32 -1.442695, %v2512_v38  ;;  %v2514_v48 = vadd.f32 %v2513_v44, %v5408_v20  ;;  %v2068_v53 = vpop.f32.mrf.mxu1 }
 0x2f0   : > { %v3179_v49 = vmul.f32 %v4320_v46, %v2017_v11  ;;  %v2517_v55 = vpop.f32.mrf.mxu0  ;;  %v2069_v50 = vadd.f32 %v2068_v53, %v5398_v15 }
 0x2f1   : > { %4333 = vrcp.f32 %v2991_v47  ;;  %3315 = vst [vmem:[%s5413_s12 + $0x2f8] sm:$0xff] %v2514_v48  ;;  %v2518_v42 = vadd.f32 %v2517_v55, %v5401_v16  ;;  %v5805_v56 = vpop.f32.mrf.mxu1  ;;  %v2047_v55 = vadd.f32 %v5765_v12, %v5513_v52 }
 0x2f2   : > { %v4322_v5 = vpop.eup %4321  ;;  %3243 = vst [vmem:[%s5413_s12 + $0x230] sm:$0xff] %v3179_v49  ;;  %4335 = vpow2.f32 %v3690_v2  ;;  %v2519_v58 = vpop.f32.mrf.mxu0  ;;  %2740 = vst [vmem:[%s5413_s12 + $0x300] sm:$0xff] %v2069_v50 }
 0x2f3   : > { %v4324_v62 = vpop.eup %4323  ;;  %v3180_v63 = vmul.f32 %v4322_v5, %v2023_v40  ;;  %v3691_v61 = vmul.f32 -1.442695, %v2518_v42  ;;  %v2520_v4 = vadd.f32 %v2519_v58, %v5408_v20  ;;  %v2074_v59 = vpop.f32.mrf.mxu1 }
 0x2f4   : > { %v2992_v1 = vadd.f32 1.0, %v4324_v62  ;;  %v2523_v7 = vpop.f32.mrf.mxu0  ;;  %v2075_v54 = vadd.f32 %v2074_v59, %v5398_v15 }
 0x2f5   : > { %3244 = vst [vmem:[%s5413_s12 + $0x248] sm:$0xff] %v3180_v63  ;;  %4337 = vpow2.f32 %v3691_v61  ;;  %3316 = vst [vmem:[%s5413_s12 + $0x310] sm:$0xff] %v2520_v4  ;;  %v2524_v45 = vadd.f32 %v2523_v7, %v5401_v16  ;;  %v5815_v0 = vpop.f32.mrf.mxu1  ;;  %v2053_v7 = vadd.f32 %v5775_v17, %v5513_v52 }
 0x2f6   : > { %v4326_v13 = vpop.eup %4325  ;;  %4339 = vrcp.f32 %v2992_v1  ;;  %v2525_v9 = vpop.f32.mrf.mxu0  ;;  %2741 = vst [vmem:[%s5413_s12 + $0x318] sm:$0xff] %v2075_v54 }
 0x2f7   : > { %v4328_v51 = vpop.eup %4327  ;;  %v3181_v14 = vmul.f32 %v4326_v13, %v2029_v8  ;;  %v3692_v19 = vmul.f32 -1.442695, %v2524_v45  ;;  %v2526_v22 = vadd.f32 %v2525_v9, %v5408_v20  ;;  %v2080_v10 = vpop.f32.mrf.mxu1 }
 0x2f8   : > { %v2993_v23 = vadd.f32 1.0, %v4328_v51  ;;  %v2529_v3 = vpop.f32.mrf.mxu0  ;;  %v2081_v25 = vadd.f32 %v2080_v10, %v5398_v15 }
 0x2f9   : > { %3245 = vst [vmem:[%s5413_s12 + $0x260] sm:$0xff] %v3181_v14  ;;  %4341 = vpow2.f32 %v3692_v19  ;;  %3317 = vst [vmem:[%s5413_s12 + $0x328] sm:$0xff] %v2526_v22  ;;  %v2530_v27 = vadd.f32 %v2529_v3, %v5401_v16  ;;  %v5825_v18 = vpop.f32.mrf.mxu1  ;;  %v2059_v3 = vadd.f32 %v5785_v30, %v5513_v52 }
 0x2fa   : > { %v4330_v31 = vpop.eup %4329  ;;  %4343 = vrcp.f32 %v2993_v23  ;;  %v2531_v26 = vpop.f32.mrf.mxu0  ;;  %2742 = vst [vmem:[%s5413_s12 + $0x330] sm:$0xff] %v2081_v25 }
 0x2fb   : > { %v4332_v6 = vpop.eup %4331  ;;  %v3182_v29 = vmul.f32 %v4330_v31, %v2035_v24  ;;  %v3693_v35 = vmul.f32 -1.442695, %v2530_v27  ;;  %v2532_v33 = vadd.f32 %v2531_v26, %v5408_v20  ;;  %v2086_v34 = vpop.f32.mrf.mxu1 }
 0x2fc   : > { %v2994_v28 = vadd.f32 1.0, %v4332_v6  ;;  %v2535_v32 = vpop.f32.mrf.mxu0  ;;  %v2087_v37 = vadd.f32 %v2086_v34, %v5398_v15 }
 0x2fd   : > { %3246 = vst [vmem:[%s5413_s12 + $0x278] sm:$0xff] %v3182_v29  ;;  %4345 = vpow2.f32 %v3693_v35  ;;  %3318 = vst [vmem:[%s5413_s12 + $0x340] sm:$0xff] %v2532_v33  ;;  %v2536_v39 = vadd.f32 %v2535_v32, %v5401_v16  ;;  %v5835_v41 = vpop.f32.mrf.mxu1  ;;  %v2065_v32 = vadd.f32 %v5795_v21, %v5513_v52 }
 0x2fe   : > { %v4334_v57 = vpop.eup %4333  ;;  %4347 = vrcp.f32 %v2994_v28  ;;  %v2537_v38 = vpop.f32.mrf.mxu0  ;;  %2743 = vst [vmem:[%s5413_s12 + $0x348] sm:$0xff] %v2087_v37 }
 0x2ff   : > { %v4336_v60 = vpop.eup %4335  ;;  %v3183_v11 = vmul.f32 %v4334_v57, %v2041_v36  ;;  %v3694_v44 = vmul.f32 -1.442695, %v2536_v39  ;;  %v2538_v46 = vadd.f32 %v2537_v38, %v5408_v20  ;;  %v2092_v47 = vpop.f32.mrf.mxu1 }
 0x300   : > { %v2995_v43 = vadd.f32 1.0, %v4336_v60  ;;  %v2541_v2 = vpop.f32.mrf.mxu0  ;;  %v2093_v48 = vadd.f32 %v2092_v47, %v5398_v15 }
 0x301   : > { %3247 = vst [vmem:[%s5413_s12 + $0x290] sm:$0xff] %v3183_v11  ;;  %4349 = vpow2.f32 %v3694_v44  ;;  %3319 = vst [vmem:[%s5413_s12 + $0x358] sm:$0xff] %v2538_v46  ;;  %v2542_v49 = vadd.f32 %v2541_v2, %v5401_v16  ;;  %v5845_v40 = vpop.f32.mrf.mxu1 }
 0x302   : > { %v4338_v53 = vpop.eup %4337  ;;  %4351 = vrcp.f32 %v2995_v43  ;;  %v2543_v50 = vpop.f32.mrf.mxu0  ;;  %2744 = vst [vmem:[%s5413_s12 + $0x360] sm:$0xff] %v2093_v48  ;;  %v2071_v43 = vadd.f32 %v5805_v56, %v5513_v52 }
 0x303   : > { %v4340_v42 = vpop.eup %4339  ;;  %v2996_v5 = vadd.f32 1.0, %v4338_v53  ;;  %v3695_v58 = vmul.f32 -1.442695, %v2542_v49  ;;  %v2544_v62 = vadd.f32 %v2543_v50, %v5408_v20  ;;  %v2098_v61 = vpop.f32.mrf.mxu1 }
 0x304   : > { %v3184_v63 = vmul.f32 %v4340_v42, %v2047_v55  ;;  %v2547_v4 = vpop.f32.mrf.mxu0  ;;  %v2099_v1 = vadd.f32 %v2098_v61, %v5398_v15 }
 0x305   : > { %4353 = vrcp.f32 %v2996_v5  ;;  %3320 = vst [vmem:[%s5413_s12 + $0x370] sm:$0xff] %v2544_v62  ;;  %v2548_v12 = vadd.f32 %v2547_v4, %v5401_v16  ;;  %v5855_v8 = vpop.f32.mrf.mxu1  ;;  %v2077_v62 = vadd.f32 %v5815_v0, %v5513_v52 }
 0x306   : > { %v4342_v59 = vpop.eup %4341  ;;  %3248 = vst [vmem:[%s5413_s12 + $0x2a8] sm:$0xff] %v3184_v63  ;;  %4355 = vpow2.f32 %v3695_v58  ;;  %v2549_v54 = vpop.f32.mrf.mxu0  ;;  %2745 = vst [vmem:[%s5413_s12 + $0x378] sm:$0xff] %v2099_v1 }
 0x307   : > { %v4344_v45 = vpop.eup %4343  ;;  %v2997_v13 = vadd.f32 1.0, %v4342_v59  ;;  %v3696_v9 = vmul.f32 -1.442695, %v2548_v12  ;;  %v2550_v51 = vadd.f32 %v2549_v54, %v5408_v20  ;;  %v2104_v19 = vpop.f32.mrf.mxu1 }
 0x308   : > { %v3185_v14 = vmul.f32 %v4344_v45, %v2053_v7  ;;  %v2553_v22 = vpop.f32.mrf.mxu0  ;;  %v2105_v23 = vadd.f32 %v2104_v19, %v5398_v15 }
 0x309   : > { %4357 = vrcp.f32 %v2997_v13  ;;  %3321 = vst [vmem:[%s5413_s12 + $0x388] sm:$0xff] %v2550_v51  ;;  %v2554_v17 = vadd.f32 %v2553_v22, %v5401_v16  ;;  %v5865_v24 = vpop.f32.mrf.mxu1  ;;  %v2083_v51 = vadd.f32 %v5825_v18, %v5513_v52 }
 0x30a   : > { %v4346_v10 = vpop.eup %4345  ;;  %3249 = vst [vmem:[%s5413_s12 + $0x2c0] sm:$0xff] %v3185_v14  ;;  %4359 = vpow2.f32 %v3696_v9  ;;  %v2555_v25 = vpop.f32.mrf.mxu0  ;;  %2746 = vst [vmem:[%s5413_s12 + $0x390] sm:$0xff] %v2105_v23 }
 0x30b   : > { %v4348_v27 = vpop.eup %4347  ;;  %v2998_v31 = vadd.f32 1.0, %v4346_v10  ;;  %v3697_v26 = vmul.f32 -1.442695, %v2554_v17  ;;  %v2556_v6 = vadd.f32 %v2555_v25, %v5408_v20  ;;  %v2110_v35 = vpop.f32.mrf.mxu1 }
 0x30c   : > { %v3186_v29 = vmul.f32 %v4348_v27, %v2059_v3  ;;  %v2559_v33 = vpop.f32.mrf.mxu0  ;;  %v2111_v28 = vadd.f32 %v2110_v35, %v5398_v15 }
 0x30d   : > { %4361 = vrcp.f32 %v2998_v31  ;;  %3322 = vst [vmem:[%s5413_s12 + $0x3a0] sm:$0xff] %v2556_v6  ;;  %v2560_v30 = vadd.f32 %v2559_v33, %v5401_v16  ;;  %v5875_v36 = vpop.f32.mrf.mxu1  ;;  %v2089_v6 = vadd.f32 %v5835_v41, %v5513_v52 }
 0x30e   : > { %v4350_v34 = vpop.eup %4349  ;;  %3250 = vst [vmem:[%s5413_s12 + $0x2d8] sm:$0xff] %v3186_v29  ;;  %4363 = vpow2.f32 %v3697_v26  ;;  %v2561_v37 = vpop.f32.mrf.mxu0  ;;  %2747 = vst [vmem:[%s5413_s12 + $0x3a8] sm:$0xff] %v2111_v28 }
 0x30f   : > { %v4352_v39 = vpop.eup %4351  ;;  %v2999_v57 = vadd.f32 1.0, %v4350_v34  ;;  %v3698_v38 = vmul.f32 -1.442695, %v2560_v30  ;;  %v2562_v60 = vadd.f32 %v2561_v37, %v5408_v20  ;;  %v2116_v44 = vpop.f32.mrf.mxu1 }
 0x310   : > { %v3187_v11 = vmul.f32 %v4352_v39, %v2065_v32  ;;  %v2565_v46 = vpop.f32.mrf.mxu0  ;;  %v2117_v21 = vadd.f32 %v2116_v44, %v5398_v15 }
 0x311   : > { %4365 = vrcp.f32 %v2999_v57  ;;  %3323 = vst [vmem:[%s5413_s12 + $0x3b8] sm:$0xff] %v2562_v60  ;;  %v2566_v47 = vadd.f32 %v2565_v46, %v5401_v16  ;;  %v5885_v48 = vpop.f32.mrf.mxu1  ;;  %v2095_v46 = vadd.f32 %v5845_v40, %v5513_v52 }
 0x312   : > { %v4354_v2 = vpop.eup %4353  ;;  %3251 = vst [vmem:[%s5413_s12 + $0x2f0] sm:$0xff] %v3187_v11  ;;  %4367 = vpow2.f32 %v3698_v38  ;;  %v2567_v49 = vpop.f32.mrf.mxu0  ;;  %2748 = vst [vmem:[%s5413_s12 + $0x3c0] sm:$0xff] %v2117_v21 }
 0x313   : > { %v4356_v53 = vpop.eup %4355  ;;  %v3188_v55 = vmul.f32 %v4354_v2, %v2071_v43  ;;  %v3699_v50 = vmul.f32 -1.442695, %v2566_v47  ;;  %v2568_v56 = vadd.f32 %v2567_v49, %v5408_v20  ;;  %v2122_v5 = vpop.f32.mrf.mxu1 }
 0x314   : > { %v3000_v42 = vadd.f32 1.0, %v4356_v53  ;;  %v2571_v58 = vpop.f32.mrf.mxu0  ;;  %v2123_v63 = vadd.f32 %v2122_v5, %v5398_v15 }
 0x315   : > { %3252 = vst [vmem:[%s5413_s12 + $0x308] sm:$0xff] %v3188_v55  ;;  %4369 = vpow2.f32 %v3699_v50  ;;  %3324 = vst [vmem:[%s5413_s12 + $0x3d0] sm:$0xff] %v2568_v56  ;;  %v2572_v61 = vadd.f32 %v2571_v58, %v5401_v16  ;;  %v5895_v1 = vpop.f32.mrf.mxu1  ;;  %v2101_v58 = vadd.f32 %v5855_v8, %v5513_v52 }
 0x316   : > { %v4358_v4 = vpop.eup %4357  ;;  %4371 = vrcp.f32 %v3000_v42  ;;  %v2573_v12 = vpop.f32.mrf.mxu0  ;;  %2749 = vst [vmem:[%s5413_s12 + $0x3d8] sm:$0xff] %v2123_v63 }
 0x317   : > { %v4360_v59 = vpop.eup %4359  ;;  %v3189_v7 = vmul.f32 %v4358_v4, %v2077_v62  ;;  %v3700_v54 = vmul.f32 -1.442695, %v2572_v61  ;;  %v2574_v45 = vadd.f32 %v2573_v12, %v5408_v20  ;;  %v2128_v13 = vpop.f32.mrf.mxu1 }
 0x318   : > { %v3001_v0 = vadd.f32 1.0, %v4360_v59  ;;  %v2577_v9 = vpop.f32.mrf.mxu0  ;;  %v2129_v14 = vadd.f32 %v2128_v13, %v5398_v15 }
 0x319   : > { %3253 = vst [vmem:[%s5413_s12 + $0x320] sm:$0xff] %v3189_v7  ;;  %4373 = vpow2.f32 %v3700_v54  ;;  %3325 = vst [vmem:[%s5413_s12 + $0x3e8] sm:$0xff] %v2574_v45  ;;  %v2578_v19 = vadd.f32 %v2577_v9, %v5401_v16  ;;  %v5905_v23 = vpop.f32.mrf.mxu1  ;;  %v2107_v9 = vadd.f32 %v5865_v24, %v5513_v52 }
 0x31a   : > { %v4362_v22 = vpop.eup %4361  ;;  %4375 = vrcp.f32 %v3001_v0  ;;  %v2579_v17 = vpop.f32.mrf.mxu0  ;;  %2750 = vst [vmem:[%s5413_s12 + $0x3f0] sm:$0xff] %v2129_v14 }
 0x31b   : > { %v4364_v10 = vpop.eup %4363  ;;  %v3190_v3 = vmul.f32 %v4362_v22, %v2083_v51  ;;  %v3701_v25 = vmul.f32 -1.442695, %v2578_v19  ;;  %v2580_v27 = vadd.f32 %v2579_v17, %v5408_v20  ;;  %v2134_v31 = vpop.f32.mrf.mxu1 }
 0x31c   : > { %v3002_v18 = vadd.f32 1.0, %v4364_v10  ;;  %v2583_v26 = vpop.f32.mrf.mxu0  ;;  %v2135_v29 = vadd.f32 %v2134_v31, %v5398_v15 }
 0x31d   : > { %3254 = vst [vmem:[%s5413_s12 + $0x338] sm:$0xff] %v3190_v3  ;;  %4377 = vpow2.f32 %v3701_v25  ;;  %3326 = vst [vmem:[%s5413_s12 + $0x400] sm:$0xff] %v2580_v27  ;;  %v2584_v35 = vadd.f32 %v2583_v26, %v5401_v16  ;;  %v5915_v28 = vpop.f32.mrf.mxu1  ;;  %v2113_v26 = vadd.f32 %v5875_v36, %v5513_v52 }
 0x31e   : > { %v4366_v33 = vpop.eup %4365  ;;  %4379 = vrcp.f32 %v3002_v18  ;;  %v2585_v30 = vpop.f32.mrf.mxu0  ;;  %2751 = vst [vmem:[%s5413_s12 + $0x408] sm:$0xff] %v2135_v29 }
 0x31f   : > { %v4368_v34 = vpop.eup %4367  ;;  %v3191_v32 = vmul.f32 %v4366_v33, %v2089_v6  ;;  %v3702_v37 = vmul.f32 -1.442695, %v2584_v35  ;;  %v2586_v39 = vadd.f32 %v2585_v30, %v5408_v20  ;;  %v2140_v57 = vpop.f32.mrf.mxu1 }
 0x320   : > { %v3003_v41 = vadd.f32 1.0, %v4368_v34  ;;  %v2589_v38 = vpop.f32.mrf.mxu0  ;;  %v2141_v60 = vadd.f32 %v2140_v57, %v5398_v15 }
 0x321   : > { %3255 = vst [vmem:[%s5413_s12 + $0x350] sm:$0xff] %v3191_v32  ;;  %4381 = vpow2.f32 %v3702_v37  ;;  %3327 = vst [vmem:[%s5413_s12 + $0x418] sm:$0xff] %v2586_v39  ;;  %v2590_v11 = vadd.f32 %v2589_v38, %v5401_v16  ;;  %v5925_v43 = vpop.f32.mrf.mxu1 }
 0x322   : > { %v4370_v44 = vpop.eup %4369  ;;  %4383 = vrcp.f32 %v3003_v41  ;;  %v2591_v21 = vpop.f32.mrf.mxu0  ;;  %2752 = vst [vmem:[%s5413_s12 + $0x420] sm:$0xff] %v2141_v60  ;;  %v2119_v41 = vadd.f32 %v5885_v48, %v5513_v52 }
 0x323   : > { %v4372_v47 = vpop.eup %4371  ;;  %v3004_v2 = vadd.f32 1.0, %v4370_v44  ;;  %v3703_v49 = vmul.f32 -1.442695, %v2590_v11  ;;  %v2592_v53 = vadd.f32 %v2591_v21, %v5408_v20  ;;  %v2146_v50 = vpop.f32.mrf.mxu1 }
 0x324   : > { %v3192_v55 = vmul.f32 %v4372_v47, %v2095_v46  ;;  %v2595_v56 = vpop.f32.mrf.mxu0  ;;  %v2147_v42 = vadd.f32 %v2146_v50, %v5398_v15 }
 0x325   : > { %4385 = vrcp.f32 %v3004_v2  ;;  %3328 = vst [vmem:[%s5413_s12 + $0x430] sm:$0xff] %v2592_v53  ;;  %v2596_v40 = vadd.f32 %v2595_v56, %v5401_v16  ;;  %v5935_v62 = vpop.f32.mrf.mxu1  ;;  %v2125_v53 = vadd.f32 %v5895_v1, %v5513_v52 }
 0x326   : > { %v4374_v5 = vpop.eup %4373  ;;  %3256 = vst [vmem:[%s5413_s12 + $0x368] sm:$0xff] %v3192_v55  ;;  %4387 = vpow2.f32 %v3703_v49  ;;  %v2597_v63 = vpop.f32.mrf.mxu0  ;;  %2753 = vst [vmem:[%s5413_s12 + $0x438] sm:$0xff] %v2147_v42 }
 0x327   : > { %v4376_v61 = vpop.eup %4375  ;;  %v3005_v4 = vadd.f32 1.0, %v4374_v5  ;;  %v3704_v12 = vmul.f32 -1.442695, %v2596_v40  ;;  %v2598_v59 = vadd.f32 %v2597_v63, %v5408_v20  ;;  %v2152_v54 = vpop.f32.mrf.mxu1 }
 0x328   : > { %v3193_v7 = vmul.f32 %v4376_v61, %v2101_v58  ;;  %v2601_v45 = vpop.f32.mrf.mxu0  ;;  %v2153_v0 = vadd.f32 %v2152_v54, %v5398_v15 }
 0x329   : > { %4389 = vrcp.f32 %v3005_v4  ;;  %3329 = vst [vmem:[%s5413_s12 + $0x448] sm:$0xff] %v2598_v59  ;;  %v2602_v8 = vadd.f32 %v2601_v45, %v5401_v16  ;;  %v5945_v51 = vpop.f32.mrf.mxu1  ;;  %v2131_v59 = vadd.f32 %v5905_v23, %v5513_v52 }
 0x32a   : > { %v4378_v13 = vpop.eup %4377  ;;  %3257 = vst [vmem:[%s5413_s12 + $0x380] sm:$0xff] %v3193_v7  ;;  %4391 = vpow2.f32 %v3704_v12  ;;  %v2603_v14 = vpop.f32.mrf.mxu0  ;;  %2754 = vst [vmem:[%s5413_s12 + $0x450] sm:$0xff] %v2153_v0 }
 0x32b   : > { %v4380_v19 = vpop.eup %4379  ;;  %v3006_v22 = vadd.f32 1.0, %v4378_v13  ;;  %v3705_v17 = vmul.f32 -1.442695, %v2602_v8  ;;  %v2604_v10 = vadd.f32 %v2603_v14, %v5408_v20  ;;  %v2158_v25 = vpop.f32.mrf.mxu1 }
 0x32c   : > { %v3194_v3 = vmul.f32 %v4380_v19, %v2107_v9  ;;  %v2607_v27 = vpop.f32.mrf.mxu0  ;;  %v2159_v18 = vadd.f32 %v2158_v25, %v5398_v15 }
 0x32d   : > { %4393 = vrcp.f32 %v3006_v22  ;;  %3330 = vst [vmem:[%s5413_s12 + $0x460] sm:$0xff] %v2604_v10  ;;  %v2608_v24 = vadd.f32 %v2607_v27, %v5401_v16  ;;  %v5955_v6 = vpop.f32.mrf.mxu1  ;;  %v2137_v10 = vadd.f32 %v5915_v28, %v5513_v52 }
 0x32e   : > { %v4382_v31 = vpop.eup %4381  ;;  %3258 = vst [vmem:[%s5413_s12 + $0x398] sm:$0xff] %v3194_v3  ;;  %4395 = vpow2.f32 %v3705_v17  ;;  %v2609_v29 = vpop.f32.mrf.mxu0  ;;  %2755 = vst [vmem:[%s5413_s12 + $0x468] sm:$0xff] %v2159_v18 }
 0x32f   : > { %v4384_v35 = vpop.eup %4383  ;;  %v3007_v33 = vadd.f32 1.0, %v4382_v31  ;;  %v3706_v30 = vmul.f32 -1.442695, %v2608_v24  ;;  %v2610_v34 = vadd.f32 %v2609_v29, %v5408_v20  ;;  %v2164_v37 = vpop.f32.mrf.mxu1 }
 0x330   : > { %v3195_v32 = vmul.f32 %v4384_v35, %v2113_v26  ;;  %v2613_v39 = vpop.f32.mrf.mxu0  ;;  %v2165_v36 = vadd.f32 %v2164_v37, %v5398_v15 }
 0x331   : > { %4397 = vrcp.f32 %v3007_v33  ;;  %3331 = vst [vmem:[%s5413_s12 + $0x478] sm:$0xff] %v2610_v34  ;;  %v2614_v57 = vadd.f32 %v2613_v39, %v5401_v16  ;;  %v5965_v60 = vpop.f32.mrf.mxu1  ;;  %v2143_v39 = vadd.f32 %v5925_v43, %v5513_v52 }
 0x332   : > { %v4386_v38 = vpop.eup %4385  ;;  %3259 = vst [vmem:[%s5413_s12 + $0x3b0] sm:$0xff] %v3195_v32  ;;  %4399 = vpow2.f32 %v3706_v30  ;;  %v2615_v11 = vpop.f32.mrf.mxu0  ;;  %2756 = vst [vmem:[%s5413_s12 + $0x480] sm:$0xff] %v2165_v36 }
 0x333   : > { %v4388_v44 = vpop.eup %4387  ;;  %v3196_v46 = vmul.f32 %v4386_v38, %v2119_v41  ;;  %v3707_v21 = vmul.f32 -1.442695, %v2614_v57  ;;  %v2616_v48 = vadd.f32 %v2615_v11, %v5408_v20  ;;  %v2170_v2 = vpop.f32.mrf.mxu1 }
 0x334   : > { %v3008_v47 = vadd.f32 1.0, %v4388_v44  ;;  %v2619_v49 = vpop.f32.mrf.mxu0  ;;  %v2171_v55 = vadd.f32 %v2170_v2, %v5398_v15 }
 0x335   : > { %3260 = vst [vmem:[%s5413_s12 + $0x3c8] sm:$0xff] %v3196_v46  ;;  %4401 = vpow2.f32 %v3707_v21  ;;  %3332 = vst [vmem:[%s5413_s12 + $0x490] sm:$0xff] %v2616_v48  ;;  %v2620_v50 = vadd.f32 %v2619_v49, %v5401_v16  ;;  %v5975_v42 = vpop.f32.mrf.mxu1  ;;  %v2149_v49 = vadd.f32 %v5935_v62, %v5513_v52 }
 0x336   : > { %v4390_v56 = vpop.eup %4389  ;;  %4403 = vrcp.f32 %v3008_v47  ;;  %v2621_v40 = vpop.f32.mrf.mxu0  ;;  %2757 = vst [vmem:[%s5413_s12 + $0x498] sm:$0xff] %v2171_v55 }
 0x337   : > { %v4392_v5 = vpop.eup %4391  ;;  %v3197_v58 = vmul.f32 %v4390_v56, %v2125_v53  ;;  %v3708_v63 = vmul.f32 -1.442695, %v2620_v50  ;;  %v2622_v61 = vadd.f32 %v2621_v40, %v5408_v20  ;;  %v2176_v4 = vpop.f32.mrf.mxu1 }
 0x338   : > { %v3009_v1 = vadd.f32 1.0, %v4392_v5  ;;  %v2625_v12 = vpop.f32.mrf.mxu0  ;;  %v2177_v7 = vadd.f32 %v2176_v4, %v5398_v15 }
 0x339   : > { %3261 = vst [vmem:[%s5413_s12 + $0x3e0] sm:$0xff] %v3197_v58  ;;  %4405 = vpow2.f32 %v3708_v63  ;;  %3333 = vst [vmem:[%s5413_s12 + $0x4a8] sm:$0xff] %v2622_v61  ;;  %v2626_v54 = vadd.f32 %v2625_v12, %v5401_v16  ;;  %v5985_v0 = vpop.f32.mrf.mxu1  ;;  %v2155_v12 = vadd.f32 %v5945_v51, %v5513_v52 }
 0x33a   : > { %v4394_v45 = vpop.eup %4393  ;;  %4407 = vrcp.f32 %v3009_v1  ;;  %v2627_v8 = vpop.f32.mrf.mxu0  ;;  %2758 = vst [vmem:[%s5413_s12 + $0x4b0] sm:$0xff] %v2177_v7 }
 0x33b   : > { %v4396_v13 = vpop.eup %4395  ;;  %v3198_v9 = vmul.f32 %v4394_v45, %v2131_v59  ;;  %v3709_v14 = vmul.f32 -1.442695, %v2626_v54  ;;  %v2628_v19 = vadd.f32 %v2627_v8, %v5408_v20  ;;  %v2182_v22 = vpop.f32.mrf.mxu1 }
 0x33c   : > { %v3010_v23 = vadd.f32 1.0, %v4396_v13  ;;  %v2631_v17 = vpop.f32.mrf.mxu0  ;;  %v2183_v3 = vadd.f32 %v2182_v22, %v5398_v15 }
 0x33d   : > { %3262 = vst [vmem:[%s5413_s12 + $0x3f8] sm:$0xff] %v3198_v9  ;;  %4409 = vpow2.f32 %v3709_v14  ;;  %3334 = vst [vmem:[%s5413_s12 + $0x4c0] sm:$0xff] %v2628_v19  ;;  %v2632_v25 = vadd.f32 %v2631_v17, %v5401_v16  ;;  %v5995_v18 = vpop.f32.mrf.mxu1  ;;  %v2161_v17 = vadd.f32 %v5955_v6, %v5513_v52 }
 0x33e   : > { %v4398_v27 = vpop.eup %4397  ;;  %4411 = vrcp.f32 %v3010_v23  ;;  %v2633_v24 = vpop.f32.mrf.mxu0  ;;  %2759 = vst [vmem:[%s5413_s12 + $0x4c8] sm:$0xff] %v2183_v3 }
 0x33f   : > { %v4400_v31 = vpop.eup %4399  ;;  %v3199_v26 = vmul.f32 %v4398_v27, %v2137_v10  ;;  %v3710_v29 = vmul.f32 -1.442695, %v2632_v25  ;;  %v2634_v35 = vadd.f32 %v2633_v24, %v5408_v20  ;;  %v2188_v33 = vpop.f32.mrf.mxu1 }
 0x340   : > { %v3011_v28 = vadd.f32 1.0, %v4400_v31  ;;  %v2637_v30 = vpop.f32.mrf.mxu0  ;;  %v2189_v34 = vadd.f32 %v2188_v33, %v5398_v15 }
 0x341   : > { %3263 = vst [vmem:[%s5413_s12 + $0x410] sm:$0xff] %v3199_v26  ;;  %4413 = vpow2.f32 %v3710_v29  ;;  %3335 = vst [vmem:[%s5413_s12 + $0x4d8] sm:$0xff] %v2634_v35  ;;  %v2638_v32 = vadd.f32 %v2637_v30, %v5401_v16  ;;  %v6005_v41 = vpop.f32.mrf.mxu1 }
 0x342   : > { %v4402_v37 = vpop.eup %4401  ;;  %4415 = vrcp.f32 %v3011_v28  ;;  %v2639_v36 = vpop.f32.mrf.mxu0  ;;  %2760 = vst [vmem:[%s5413_s12 + $0x4e0] sm:$0xff] %v2189_v34  ;;  %v2167_v28 = vadd.f32 %v5965_v60, %v5513_v52 }
 0x343   : > { %v4404_v57 = vpop.eup %4403  ;;  %v3012_v38 = vadd.f32 1.0, %v4402_v37  ;;  %v3711_v11 = vmul.f32 -1.442695, %v2638_v32  ;;  %v2640_v44 = vadd.f32 %v2639_v36, %v5408_v20  ;;  %v2194_v21 = vpop.f32.mrf.mxu1 }
 0x344   : > { %v3200_v46 = vmul.f32 %v4404_v57, %v2143_v39  ;;  %v2643_v48 = vpop.f32.mrf.mxu0  ;;  %v2195_v47 = vadd.f32 %v2194_v21, %v5398_v15 }
 0x345   : > { %4417 = vrcp.f32 %v3012_v38  ;;  %3336 = vst [vmem:[%s5413_s12 + $0x4f0] sm:$0xff] %v2640_v44  ;;  %v2644_v43 = vadd.f32 %v2643_v48, %v5401_v16  ;;  %v6015_v53 = vpop.f32.mrf.mxu1  ;;  %v2173_v44 = vadd.f32 %v5975_v42, %v5513_v52 }
 0x346   : > { %v4406_v2 = vpop.eup %4405  ;;  %3264 = vst [vmem:[%s5413_s12 + $0x428] sm:$0xff] %v3200_v46  ;;  %4419 = vpow2.f32 %v3711_v11  ;;  %v2645_v55 = vpop.f32.mrf.mxu0  ;;  %2761 = vst [vmem:[%s5413_s12 + $0x4f8] sm:$0xff] %v2195_v47 }
 0x347   : > { %v4408_v50 = vpop.eup %4407  ;;  %v3013_v56 = vadd.f32 1.0, %v4406_v2  ;;  %v3712_v40 = vmul.f32 -1.442695, %v2644_v43  ;;  %v2646_v5 = vadd.f32 %v2645_v55, %v5408_v20  ;;  %v2200_v63 = vpop.f32.mrf.mxu1 }
 0x348   : > { %v3201_v58 = vmul.f32 %v4408_v50, %v2149_v49  ;;  %v2649_v61 = vpop.f32.mrf.mxu0  ;;  %v2201_v1 = vadd.f32 %v2200_v63, %v5398_v15 }
 0x349   : > { %4421 = vrcp.f32 %v3013_v56  ;;  %3337 = vst [vmem:[%s5413_s12 + $0x508] sm:$0xff] %v2646_v5  ;;  %v2650_v62 = vadd.f32 %v2649_v61, %v5401_v16  ;;  %v6025_v59 = vpop.f32.mrf.mxu1  ;;  %v2179_v5 = vadd.f32 %v5985_v0, %v5513_v52 }
 0x34a   : > { %v4410_v4 = vpop.eup %4409  ;;  %3265 = vst [vmem:[%s5413_s12 + $0x440] sm:$0xff] %v3201_v58  ;;  %4423 = vpow2.f32 %v3712_v40  ;;  %v2651_v7 = vpop.f32.mrf.mxu0  ;;  %2762 = vst [vmem:[%s5413_s12 + $0x510] sm:$0xff] %v2201_v1 }
 0x34b   : > { %v4412_v54 = vpop.eup %4411  ;;  %v3014_v45 = vadd.f32 1.0, %v4410_v4  ;;  %v3713_v8 = vmul.f32 -1.442695, %v2650_v62  ;;  %v2652_v13 = vadd.f32 %v2651_v7, %v5408_v20  ;;  %v2206_v14 = vpop.f32.mrf.mxu1 }
 0x34c   : > { %v3202_v9 = vmul.f32 %v4412_v54, %v2155_v12  ;;  %v2655_v19 = vpop.f32.mrf.mxu0  ;;  %v2207_v23 = vadd.f32 %v2206_v14, %v5398_v15 }
 0x34d   : > { %4425 = vrcp.f32 %v3014_v45  ;;  %3338 = vst [vmem:[%s5413_s12 + $0x520] sm:$0xff] %v2652_v13  ;;  %v2656_v51 = vadd.f32 %v2655_v19, %v5401_v16  ;;  %v6035_v10 = vpop.f32.mrf.mxu1  ;;  %v2185_v13 = vadd.f32 %v5995_v18, %v5513_v52 }
 0x34e   : > { %v4414_v22 = vpop.eup %4413  ;;  %3266 = vst [vmem:[%s5413_s12 + $0x458] sm:$0xff] %v3202_v9  ;;  %4427 = vpow2.f32 %v3713_v8  ;;  %v2657_v3 = vpop.f32.mrf.mxu0  ;;  %2763 = vst [vmem:[%s5413_s12 + $0x528] sm:$0xff] %v2207_v23 }
 0x34f   : > { %v4416_v25 = vpop.eup %4415  ;;  %v3015_v27 = vadd.f32 1.0, %v4414_v22  ;;  %v3714_v24 = vmul.f32 -1.442695, %v2656_v51  ;;  %v2658_v31 = vadd.f32 %v2657_v3, %v5408_v20  ;;  %v2212_v29 = vpop.f32.mrf.mxu1 }
 0x350   : > { %v3203_v26 = vmul.f32 %v4416_v25, %v2161_v17  ;;  %v2661_v35 = vpop.f32.mrf.mxu0  ;;  %v2213_v6 = vadd.f32 %v2212_v29, %v5398_v15 }
 0x351   : > { %4429 = vrcp.f32 %v3015_v27  ;;  %3339 = vst [vmem:[%s5413_s12 + $0x538] sm:$0xff] %v2658_v31  ;;  %v2662_v33 = vadd.f32 %v2661_v35, %v5401_v16  ;;  %v6045_v34 = vpop.f32.mrf.mxu1  ;;  %v2191_v35 = vadd.f32 %v6005_v41, %v5513_v52 }
 0x352   : > { %v4418_v30 = vpop.eup %4417  ;;  %3267 = vst [vmem:[%s5413_s12 + $0x470] sm:$0xff] %v3203_v26  ;;  %4431 = vpow2.f32 %v3714_v24  ;;  %v2663_v32 = vpop.f32.mrf.mxu0  ;;  %2764 = vst [vmem:[%s5413_s12 + $0x540] sm:$0xff] %v2213_v6 }
 0x353   : > { %v4420_v37 = vpop.eup %4419  ;;  %v3204_v39 = vmul.f32 %v4418_v30, %v2167_v28  ;;  %v3715_v36 = vmul.f32 -1.442695, %v2662_v33  ;;  %v2664_v60 = vadd.f32 %v2663_v32, %v5408_v20  ;;  %v2218_v38 = vpop.f32.mrf.mxu1 }
 0x354   : > { %v3016_v57 = vadd.f32 1.0, %v4420_v37  ;;  %v2667_v11 = vpop.f32.mrf.mxu0  ;;  %v2219_v46 = vadd.f32 %v2218_v38, %v5398_v15 }
 0x355   : > { %3268 = vst [vmem:[%s5413_s12 + $0x488] sm:$0xff] %v3204_v39  ;;  %4433 = vpow2.f32 %v3715_v36  ;;  %3340 = vst [vmem:[%s5413_s12 + $0x550] sm:$0xff] %v2664_v60  ;;  %v2668_v21 = vadd.f32 %v2667_v11, %v5401_v16  ;;  %v6055_v47 = vpop.f32.mrf.mxu1  ;;  %v2197_v11 = vadd.f32 %v6015_v53, %v5513_v52 }
 0x356   : > { %v4422_v48 = vpop.eup %4421  ;;  %4435 = vrcp.f32 %v3016_v57  ;;  %v2669_v43 = vpop.f32.mrf.mxu0  ;;  %2765 = vst [vmem:[%s5413_s12 + $0x558] sm:$0xff] %v2219_v46 }
 0x357   : > { %v4424_v2 = vpop.eup %4423  ;;  %v3205_v49 = vmul.f32 %v4422_v48, %v2173_v44  ;;  %v3716_v55 = vmul.f32 -1.442695, %v2668_v21  ;;  %v2670_v50 = vadd.f32 %v2669_v43, %v5408_v20  ;;  %v2224_v56 = vpop.f32.mrf.mxu1 }
 0x358   : > { %v3017_v42 = vadd.f32 1.0, %v4424_v2  ;;  %v2673_v40 = vpop.f32.mrf.mxu0  ;;  %v2225_v58 = vadd.f32 %v2224_v56, %v5398_v15 }
 0x359   : > { %3269 = vst [vmem:[%s5413_s12 + $0x4a0] sm:$0xff] %v3205_v49  ;;  %4437 = vpow2.f32 %v3716_v55  ;;  %3341 = vst [vmem:[%s5413_s12 + $0x568] sm:$0xff] %v2670_v50  ;;  %v2674_v63 = vadd.f32 %v2673_v40, %v5401_v16  ;;  %v6065_v1 = vpop.f32.mrf.mxu1  ;;  %v2203_v40 = vadd.f32 %v6025_v59, %v5513_v52 }
 0x35a   : > { %v4426_v61 = vpop.eup %4425  ;;  %4439 = vrcp.f32 %v3017_v42  ;;  %v2675_v62 = vpop.f32.mrf.mxu0  ;;  %2766 = vst [vmem:[%s5413_s12 + $0x570] sm:$0xff] %v2225_v58 }
 0x35b   : > { %v4428_v4 = vpop.eup %4427  ;;  %v3206_v12 = vmul.f32 %v4426_v61, %v2179_v5  ;;  %v3717_v7 = vmul.f32 -1.442695, %v2674_v63  ;;  %v2676_v54 = vadd.f32 %v2675_v62, %v5408_v20  ;;  %v2230_v45 = vpop.f32.mrf.mxu1 }
 0x35c   : > { %v3018_v0 = vadd.f32 1.0, %v4428_v4  ;;  %v2679_v8 = vpop.f32.mrf.mxu0  ;;  %v2231_v9 = vadd.f32 %v2230_v45, %v5398_v15 }
 0x35d   : > { %3270 = vst [vmem:[%s5413_s12 + $0x4b8] sm:$0xff] %v3206_v12  ;;  %4441 = vpow2.f32 %v3717_v7  ;;  %3342 = vst [vmem:[%s5413_s12 + $0x580] sm:$0xff] %v2676_v54  ;;  %v2680_v14 = vadd.f32 %v2679_v8, %v5401_v16  ;;  %v6075_v23 = vpop.f32.mrf.mxu1  ;;  %v2209_v8 = vadd.f32 %v6035_v10, %v5513_v52 }
 0x35e   : > { %v4430_v19 = vpop.eup %4429  ;;  %4443 = vrcp.f32 %v3018_v0  ;;  %v2681_v51 = vpop.f32.mrf.mxu0  ;;  %2767 = vst [vmem:[%s5413_s12 + $0x588] sm:$0xff] %v2231_v9 }
 0x35f   : > { %v4432_v22 = vpop.eup %4431  ;;  %v3207_v17 = vmul.f32 %v4430_v19, %v2185_v13  ;;  %v3718_v3 = vmul.f32 -1.442695, %v2680_v14  ;;  %v2682_v25 = vadd.f32 %v2681_v51, %v5408_v20  ;;  %v2236_v27 = vpop.f32.mrf.mxu1 }
 0x360   : > { %v3019_v18 = vadd.f32 1.0, %v4432_v22  ;;  %v2685_v24 = vpop.f32.mrf.mxu0  ;;  %v2237_v31 = vadd.f32 %v2236_v27, %v5398_v15 }
 0x361   : > { %3271 = vst [vmem:[%s5413_s12 + $0x4d0] sm:$0xff] %v3207_v17  ;;  %4445 = vpow2.f32 %v3718_v3  ;;  %3343 = vst [vmem:[%s5413_s12 + $0x598] sm:$0xff] %v2682_v25  ;;  %v2686_v26 = vadd.f32 %v2685_v24, %v5401_v16  ;;  %v6085_v28 = vpop.f32.mrf.mxu1  ;;  %v2221_v25 = vadd.f32 %v6055_v47, %v5513_v52  ;;  %v2227_v24 = vadd.f32 %v6065_v1, %v5513_v52 }
 0x362   : > { %v4434_v29 = vpop.eup %4433  ;;  %4447 = vrcp.f32 %v3019_v18  ;;  %v2687_v6 = vpop.f32.mrf.mxu0  ;;  %2768 = vst [vmem:[%s5413_s12 + $0x5a0] sm:$0xff] %v2237_v31  ;;  %v2233_v47 = vadd.f32 %v6075_v23, %v5513_v52  ;;  %v2239_v1 = vadd.f32 %v6085_v28, %v5513_v52 }
 0x363   : > { %v4436_v33 = vpop.eup %4435  ;;  %v3020_v30 = vadd.f32 1.0, %v4434_v29  ;;  %v3719_v32 = vmul.f32 -1.442695, %v2686_v26  ;;  %v2688_v37 = vadd.f32 %v2687_v6, %v5408_v20  ;;  %v2242_v36 = vpop.f32.mrf.mxu1 }
 0x364   : > { %v3208_v39 = vmul.f32 %v4436_v33, %v2191_v35  ;;  %v2691_v60 = vpop.f32.mrf.mxu0  ;;  %v2243_v57 = vadd.f32 %v2242_v36, %v5398_v15 }
 0x365   : > { %4449 = vrcp.f32 %v3020_v30  ;;  %3344 = vst [vmem:[%s5413_s12 + $0x5b0] sm:$0xff] %v2688_v37  ;;  %v2692_v41 = vadd.f32 %v2691_v60, %v5401_v16  ;;  %v6095_v44 = vpop.f32.mrf.mxu1 }
 0x366   : > { %v4438_v38 = vpop.eup %4437  ;;  %3272 = vst [vmem:[%s5413_s12 + $0x4e8] sm:$0xff] %v3208_v39  ;;  %4451 = vpow2.f32 %v3719_v32  ;;  %v2693_v46 = vpop.f32.mrf.mxu0  ;;  %2769 = vst [vmem:[%s5413_s12 + $0x5b8] sm:$0xff] %v2243_v57  ;;  %v2245_v36 = vadd.f32 %v6095_v44, %v5513_v52 }
 0x367   : > { %v4440_v21 = vpop.eup %4439  ;;  %v3021_v48 = vadd.f32 1.0, %v4438_v38  ;;  %v3720_v43 = vmul.f32 -1.442695, %v2692_v41  ;;  %v2694_v2 = vadd.f32 %v2693_v46, %v5408_v20  ;;  %v2248_v55 = vpop.f32.mrf.mxu1 }
 0x368   : > { %v3209_v49 = vmul.f32 %v4440_v21, %v2197_v11  ;;  %v2697_v50 = vpop.f32.mrf.mxu0  ;;  %v2249_v42 = vadd.f32 %v2248_v55, %v5398_v15 }
 0x369   : > { %4453 = vrcp.f32 %v3021_v48  ;;  %3345 = vst [vmem:[%s5413_s12 + $0x5c8] sm:$0xff] %v2694_v2  ;;  %v2698_v53 = vadd.f32 %v2697_v50, %v5401_v16  ;;  %v6105_v5 = vpop.f32.mrf.mxu1 }
 0x36a   : > { %v4442_v56 = vpop.eup %4441  ;;  %3273 = vst [vmem:[%s5413_s12 + $0x500] sm:$0xff] %v3209_v49  ;;  %4455 = vpow2.f32 %v3720_v43  ;;  %v2699_v58 = vpop.f32.mrf.mxu0  ;;  %2770 = vst [vmem:[%s5413_s12 + $0x5d0] sm:$0xff] %v2249_v42  ;;  %v2251_v57 = vadd.f32 %v6105_v5, %v5513_v52 }
 0x36b   : > { %v4444_v63 = vpop.eup %4443  ;;  %v3022_v61 = vadd.f32 1.0, %v4442_v56  ;;  %v3721_v62 = vmul.f32 -1.442695, %v2698_v53  ;;  %v2700_v4 = vadd.f32 %v2699_v58, %v5408_v20  ;;  %v2254_v7 = vpop.f32.mrf.mxu1 }
 0x36c   : > { %v3210_v12 = vmul.f32 %v4444_v63, %v2203_v40  ;;  %v2703_v54 = vpop.f32.mrf.mxu0  ;;  %v2255_v59 = vadd.f32 %v2254_v7, %v5398_v15  ;;  %v2215_v15 = vadd.f32 %v6045_v34, %v5513_v52 }
 0x36d   : > { %4457 = vrcp.f32 %v3022_v61  ;;  %3346 = vst [vmem:[%s5413_s12 + $0x5e0] sm:$0xff] %v2700_v4  ;;  %v2704_v0 = vadd.f32 %v2703_v54, %v5401_v16  ;;  %v2256_v38 = vpop.f32.mrf.mxu1 }
 0x36e   : > { %v4446_v45 = vpop.eup %4445  ;;  %3274 = vst [vmem:[%s5413_s12 + $0x518] sm:$0xff] %v3210_v12  ;;  %4459 = vpow2.f32 %v3721_v62  ;;  %v2705_v13 = vpop.f32.mrf.mxu0  ;;  %2771 = vst [vmem:[%s5413_s12 + $0x5e8] sm:$0xff] %v2255_v59  ;;  %v2257_v28 = vadd.f32 %v2256_v38, %v5513_v52 }
 0x36f   : > { %v4448_v9 = vpop.eup %4447  ;;  %v3023_v14 = vadd.f32 1.0, %v4446_v45  ;;  %v3722_v19 = vmul.f32 -1.442695, %v2704_v0  ;;  %v2706_v51 = vadd.f32 %v2705_v13, %v5408_v20 }
 0x370   : > { %v3211_v22 = vmul.f32 %v4448_v9, %v2209_v8 }
 0x371   : > { %4461 = vrcp.f32 %v3023_v14  ;;  %3347 = vst [vmem:[%s5413_s12 + $0x5f8] sm:$0xff] %v2706_v51 }
 0x372   : > { %v4450_v16 = vpop.eup %4449  ;;  %3275 = vst [vmem:[%s5413_s12 + $0x530] sm:$0xff] %v3211_v22  ;;  %4463 = vpow2.f32 %v3722_v19 }
 0x373   : > { %v4452_v10 = vpop.eup %4451  ;;  %v3212_v17 = vmul.f32 %v4450_v16, %v2215_v15 }
 0x374   : > { %v3024_v3 = vadd.f32 1.0, %v4452_v10 }
 0x375   : > { %3276 = vst [vmem:[%s5413_s12 + $0x548] sm:$0xff] %v3212_v17 }
 0x376   : > { %v4454_v18 = vpop.eup %4453  ;;  %4465 = vrcp.f32 %v3024_v3 }
 0x377   : > { %v4456_v20 = vpop.eup %4455  ;;  %v3213_v27 = vmul.f32 %v4454_v18, %v2221_v25 }
 0x378   : > { %v3025_v34 = vadd.f32 1.0, %v4456_v20 }
 0x379   : > { %3277 = vst [vmem:[%s5413_s12 + $0x560] sm:$0xff] %v3213_v27 }
 0x37a   : > { %v4458_v31 = vpop.eup %4457  ;;  %4467 = vrcp.f32 %v3025_v34 }
 0x37b   : > { %v4460_v26 = vpop.eup %4459  ;;  %v3214_v29 = vmul.f32 %v4458_v31, %v2227_v24 }
 0x37c   : > { %v3026_v35 = vadd.f32 1.0, %v4460_v26 }
 0x37d   : > { %3278 = vst [vmem:[%s5413_s12 + $0x578] sm:$0xff] %v3214_v29 }
 0x37e   : > { %v4462_v6 = vpop.eup %4461  ;;  %4469 = vrcp.f32 %v3026_v35 }
 0x37f   : > { %v4464_v33 = vpop.eup %4463  ;;  %v3215_v30 = vmul.f32 %v4462_v6, %v2233_v47 }
 0x380   : > { %v3027_v32 = vadd.f32 1.0, %v4464_v33 }
 0x381   : > { %3279 = vst [vmem:[%s5413_s12 + $0x590] sm:$0xff] %v3215_v30 }
 0x382   : > { %4471 = vrcp.f32 %v3027_v32 }
 0x383   : > { %v4466_v37 = vpop.eup %4465 }
 0x384   : > { %v3216_v39 = vmul.f32 %v4466_v37, %v2239_v1 }
 0x386   : > { %3280 = vst [vmem:[%s5413_s12 + $0x5a8] sm:$0xff] %v3216_v39 }
 0x387   : > { %v4468_v60 = vpop.eup %4467 }
 0x388   : > { %v3217_v23 = vmul.f32 %v4468_v60, %v2245_v36 }
 0x38a   : > { %3281 = vst [vmem:[%s5413_s12 + $0x5c0] sm:$0xff] %v3217_v23 }
 0x38b   : > { %v4470_v41 = vpop.eup %4469 }
 0x38c   : > { %v3218_v11 = vmul.f32 %v4470_v41, %v2251_v57 }
 0x38e   : > { %3282 = vst [vmem:[%s5413_s12 + $0x5d8] sm:$0xff] %v3218_v11 }
 0x38f   : > { %v4472_v46 = vpop.eup %4471 }
 0x390   : > { %v3219_v21 = vmul.f32 %v4472_v46, %v2257_v28 }
 0x392   : > { %3283 = vst [vmem:[%s5413_s12 + $0x5f0] sm:$0xff] %v3219_v21 }
 0x393 PF: > { %s20_s24 = sadd.s32 1, %s4596_s24  }
 0x394   : > { %p17_p2 = scmp.ge.s32.totalorder %s20_s24, 4  }
 0x396   :  { %19 = sbr.rel (!%p17_p2) target bundleno = 3 (0x3), region = 95 }
 0x39b   :  { %3372 = vsyncpa [#allocation3], 1 }
 0x39c   :  { %3374 = vsyncpa [#allocation3 + $0x1], 1 }
 0x39d   :  { %3375 = vsyncpa [#allocation5], 1 }
 0x39e   :  { %3376 = vsyncpa [#allocation8], 1 }

</bundles_post_ra>
